<compile_context>
chip_gen: v5e
topology: v5e:2x2
jax: 0.10.0
libtpu: 0.0.40
codegen_flags: <defaults>
</compile_context>

<pallas_src>
import functools
import math

import jax
import jax.numpy as jnp
from jax.experimental import pallas as pl
from jax.experimental.pallas import tpu as pltpu

_MXU_DTYPE = jnp.bfloat16          # MXU operand / activation storage dtype
_LN_EPS = 1e-5
_VMEM_LIMIT = 48 * 1024 * 1024     # explicit scoped-VMEM budget for heavy kernels
_NEG_INF = -1e30


def _pick_tile(dim, preferred, align):
    """Largest divisor of `dim` that is <= `preferred` and a multiple of `align`.

    Falls back to the full extent only when the dim is already small or has no
    aligned divisor (never silently produces a non-dividing tile)."""
    if dim <= preferred:
        return dim
    t = (preferred // align) * align
    while t >= align:
        if dim % t == 0:
            return t
        t -= align
    return dim


# ----------------------------- shared epilogues -----------------------------

def _ln_rows(y, g, bt):
    mu = jnp.mean(y, axis=-1, keepdims=True)
    yc = y - mu
    var = jnp.mean(yc * yc, axis=-1, keepdims=True)
    return yc * jax.lax.rsqrt(var + _LN_EPS) * g + bt


def _softmax_rows(s, sk_valid):
    # s: (Sq, Sk) f32 scores; mask padded keys (static sk_valid) with -inf.
    if sk_valid < s.shape[-1]:
        kmask = jax.lax.broadcasted_iota(jnp.int32, s.shape, 1) < sk_valid
        s = jnp.where(kmask, s, _NEG_INF)
    s = s - jnp.max(s, axis=-1, keepdims=True)
    p = jnp.exp(s)
    return p * pl.reciprocal(jnp.sum(p, axis=-1, keepdims=True), approx=True)


def _attend_one_head(q, k, v, scale, sk_valid):
    # q,k,v: (S, dh) f32 -> (S, dh) f32
    s = jax.lax.dot_general(q.astype(_MXU_DTYPE), k.astype(_MXU_DTYPE),
                            (((1,), (1,)), ((), ())),
                            preferred_element_type=jnp.float32) * scale
    p = _softmax_rows(s, sk_valid)
    return jnp.dot(p.astype(_MXU_DTYPE), v.astype(_MXU_DTYPE),
                   preferred_element_type=jnp.float32)


# ----------------------------- tiled linear -----------------------------

def _linear_kernel_single(x_ref, w_ref, b_ref, o_ref, *, activation):
    y = jnp.dot(x_ref[...], w_ref[...], preferred_element_type=jnp.float32)
    y = y + b_ref[...]
    if activation == "relu":
        y = jnp.maximum(y, 0.0)
    o_ref[...] = y.astype(o_ref.dtype)


def _linear_kernel_acc(x_ref, w_ref, b_ref, o_ref, acc_ref, *, activation):
    @pl.when(pl.program_id(2) == 0)
    def _():
        acc_ref[...] = jnp.zeros_like(acc_ref)

    acc_ref[...] += jnp.dot(x_ref[...], w_ref[...],
                            preferred_element_type=jnp.float32)

    @pl.when(pl.program_id(2) == pl.num_programs(2) - 1)
    def _():
        y = acc_ref[...] + b_ref[...]
        if activation == "relu":
            y = jnp.maximum(y, 0.0)
        o_ref[...] = y.astype(o_ref.dtype)


def linear(x, w, b, activation=None, out_dtype=None, *, tm=256, tn=512, tk=512):
    """x: (M, K) bf16, w: (K, N) bf16, b: (N,) f32 -> (M, N)."""
    M, K = x.shape
    N = w.shape[1]
    out_dtype = out_dtype or x.dtype
    tm = _pick_tile(M, tm, 8)
    tn = _pick_tile(N, tn, 128)
    tk = _pick_tile(K, tk, 128)
    gm, gn, gk = M // tm, N // tn, K // tk
    b2 = b.reshape(1, N)

    if gk == 1:
        return pl.pallas_call(
            functools.partial(_linear_kernel_single, activation=activation),
            out_shape=jax.ShapeDtypeStruct((M, N), out_dtype),
            grid=(gm, gn),
            in_specs=[
                pl.BlockSpec((tm, K), lambda i, j: (i, 0)),
                pl.BlockSpec((K, tn), lambda i, j: (0, j)),
                pl.BlockSpec((1, tn), lambda i, j: (0, j)),
            ],
            out_specs=pl.BlockSpec((tm, tn), lambda i, j: (i, j)),
            compiler_params=pltpu.CompilerParams(
                dimension_semantics=("parallel", "parallel"),
                vmem_limit_bytes=_VMEM_LIMIT),
        )(x, w, b2)

    return pl.pallas_call(
        functools.partial(_linear_kernel_acc, activation=activation),
        out_shape=jax.ShapeDtypeStruct((M, N), out_dtype),
        grid=(gm, gn, gk),
        in_specs=[
            pl.BlockSpec((tm, tk), lambda i, j, k: (i, k)),
            pl.BlockSpec((tk, tn), lambda i, j, k: (k, j)),
            pl.BlockSpec((1, tn), lambda i, j, k: (0, j)),
        ],
        out_specs=pl.BlockSpec((tm, tn), lambda i, j, k: (i, j)),
        scratch_shapes=[pltpu.VMEM((tm, tn), jnp.float32)],
        compiler_params=pltpu.CompilerParams(
            dimension_semantics=("parallel", "parallel", "arbitrary"),
            vmem_limit_bytes=_VMEM_LIMIT),
    )(x, w, b2)


# ----------------------------- layernorm -----------------------------

def _layernorm_kernel(x_ref, g_ref, b_ref, o_ref):
    y = _ln_rows(x_ref[...].astype(jnp.float32), g_ref[...], b_ref[...])
    o_ref[...] = y.astype(o_ref.dtype)


def layernorm(x, gamma, beta, *, tm=256):
    M, D = x.shape
    tm = _pick_tile(M, tm, 8)
    return pl.pallas_call(
        _layernorm_kernel,
        out_shape=jax.ShapeDtypeStruct((M, D), x.dtype),
        grid=(M // tm,),
        in_specs=[
            pl.BlockSpec((tm, D), lambda i: (i, 0)),
            pl.BlockSpec((1, D), lambda i: (0, 0)),
            pl.BlockSpec((1, D), lambda i: (0, 0)),
        ],
        out_specs=pl.BlockSpec((tm, D), lambda i: (i, 0)),
        compiler_params=pltpu.CompilerParams(dimension_semantics=("parallel",)),
    )(x, gamma.reshape(1, D), beta.reshape(1, D))


# --------------- fused FFN (DFF-tiled) + residual + layernorm ---------------

def _ffn_res_ln_kernel(x_ref, w1_ref, b1_ref, w2_ref, b2_ref, g_ref, bb_ref,
                       o_ref, acc_ref):
    k = pl.program_id(1)

    @pl.when(k == 0)
    def _():
        acc_ref[...] = jnp.zeros_like(acc_ref)

    h = jnp.dot(x_ref[...], w1_ref[...], preferred_element_type=jnp.float32)
    h = jnp.maximum(h + b1_ref[...], 0.0)
    acc_ref[...] += jnp.dot(h.astype(_MXU_DTYPE), w2_ref[...],
                            preferred_element_type=jnp.float32)

    @pl.when(k == pl.num_programs(1) - 1)
    def _():
        y = acc_ref[...] + b2_ref[...] + x_ref[...].astype(jnp.float32)
        o_ref[...] = _ln_rows(y, g_ref[...], bb_ref[...]).astype(o_ref.dtype)


def ffn_residual_ln(x, w1, b1, w2, b2, gamma, beta, *, tm=256, tdff=512):
    """LN(x + relu(x @ w1 + b1) @ w2 + b2); (tm, DFF) intermediate stays in VMEM."""
    M, D = x.shape
    DFF = w1.shape[1]
    tm = _pick_tile(M, tm, 8)
    tdff = _pick_tile(DFF, tdff, 128)
    return pl.pallas_call(
        _ffn_res_ln_kernel,
        out_shape=jax.ShapeDtypeStruct((M, D), x.dtype),
        grid=(M // tm, DFF // tdff),
        in_specs=[
            pl.BlockSpec((tm, D), lambda i, k: (i, 0)),
            pl.BlockSpec((D, tdff), lambda i, k: (0, k)),
            pl.BlockSpec((1, tdff), lambda i, k: (0, k)),
            pl.BlockSpec((tdff, D), lambda i, k: (k, 0)),
            pl.BlockSpec((1, D), lambda i, k: (0, 0)),
            pl.BlockSpec((1, D), lambda i, k: (0, 0)),
            pl.BlockSpec((1, D), lambda i, k: (0, 0)),
        ],
        out_specs=pl.BlockSpec((tm, D), lambda i, k: (i, 0)),
        scratch_shapes=[pltpu.VMEM((tm, D), jnp.float32)],
        compiler_params=pltpu.CompilerParams(
            dimension_semantics=("parallel", "arbitrary"),
            vmem_limit_bytes=_VMEM_LIMIT),
    )(x, w1, b1.reshape(1, DFF), w2, b2.reshape(1, D),
      gamma.reshape(1, D), beta.reshape(1, D))


# --------- fused attention block: QKV proj + attn + out-proj + res + LN ---------

def _self_attn_kernel(x_ref, wqkv_ref, bqkv_ref, wo_ref, bo_ref, g_ref, bb_ref,
                      o_ref, acc_ref, *, sk_valid, scale):
    h = pl.program_id(1)

    @pl.when(h == 0)
    def _():
        acc_ref[...] = jnp.zeros_like(acc_ref)

    x = x_ref[...]                                              # (S, D) bf16
    q = jnp.dot(x, wqkv_ref[0], preferred_element_type=jnp.float32) + bqkv_ref[0]
    k = jnp.dot(x, wqkv_ref[1], preferred_element_type=jnp.float32) + bqkv_ref[1]
    v = jnp.dot(x, wqkv_ref[2], preferred_element_type=jnp.float32) + bqkv_ref[2]
    o_h = _attend_one_head(q, k, v, scale, sk_valid)            # (S, dh) f32
    acc_ref[...] += jnp.dot(o_h.astype(_MXU_DTYPE), wo_ref[...],
                            preferred_element_type=jnp.float32)

    @pl.when(h == pl.num_programs(1) - 1)
    def _():
        y = acc_ref[...] + bo_ref[...] + x.astype(jnp.float32)
        o_ref[...] = _ln_rows(y, g_ref[...], bb_ref[...]).astype(o_ref.dtype)


def self_attn_block(x, ap, gamma, beta, nhead, s_valid):
    """LN(x + MHA_self(x) @ Wo + bo).  Grid (B, nhead), head axis = reduction."""
    B, S, D = x.shape
    dh = D // nhead
    scale = 1.0 / math.sqrt(dh)
    return pl.pallas_call(
        functools.partial(_self_attn_kernel, sk_valid=s_valid, scale=scale),
        out_shape=jax.ShapeDtypeStruct((B, S, D), x.dtype),
        grid=(B, nhead),
        in_specs=[
            pl.BlockSpec((None, S, D), lambda b, h: (b, 0, 0)),
            pl.BlockSpec((None, 3, D, dh), lambda b, h: (h, 0, 0, 0)),
            pl.BlockSpec((None, 3, 1, dh), lambda b, h: (h, 0, 0, 0)),
            pl.BlockSpec((None, dh, D), lambda b, h: (h, 0, 0)),
            pl.BlockSpec((1, D), lambda b, h: (0, 0)),
            pl.BlockSpec((1, D), lambda b, h: (0, 0)),
            pl.BlockSpec((1, D), lambda b, h: (0, 0)),
        ],
        out_specs=pl.BlockSpec((None, S, D), lambda b, h: (b, 0, 0)),
        scratch_shapes=[pltpu.VMEM((S, D), jnp.float32)],
        compiler_params=pltpu.CompilerParams(
            dimension_semantics=("parallel", "arbitrary"),
            vmem_limit_bytes=_VMEM_LIMIT),
    )(x, ap["wqkv"], ap["bqkv"], ap["wo"], ap["bo"],
      gamma.reshape(1, D), beta.reshape(1, D))


def _cross_attn_kernel(xq_ref, xkv_ref, wq_ref, bq_ref, wkv_ref, bkv_ref,
                       wo_ref, bo_ref, g_ref, bb_ref, o_ref, acc_ref, *,
                       sk_valid, scale):
    h = pl.program_id(1)

    @pl.when(h == 0)
    def _():
        acc_ref[...] = jnp.zeros_like(acc_ref)

    xq = xq_ref[...]                                            # (Sq, D) bf16
    xkv = xkv_ref[...]                                          # (Sk, D) bf16
    q = jnp.dot(xq, wq_ref[...], preferred_element_type=jnp.float32) + bq_ref[...]
    k = jnp.dot(xkv, wkv_ref[0], preferred_element_type=jnp.float32) + bkv_ref[0]
    v = jnp.dot(xkv, wkv_ref[1], preferred_element_type=jnp.float32) + bkv_ref[1]
    o_h = _attend_one_head(q, k, v, scale, sk_valid)
    acc_ref[...] += jnp.dot(o_h.astype(_MXU_DTYPE), wo_ref[...],
                            preferred_element_type=jnp.float32)

    @pl.when(h == pl.num_programs(1) - 1)
    def _():
        y = acc_ref[...] + bo_ref[...] + xq.astype(jnp.float32)
        o_ref[...] = _ln_rows(y, g_ref[...], bb_ref[...]).astype(o_ref.dtype)


def cross_attn_block(xq, xkv, ap, gamma, beta, nhead, sk_valid):
    """LN(xq + MHA(xq, xkv, xkv) @ Wo + bo)."""
    B, Sq, D = xq.shape
    Sk = xkv.shape[1]
    dh = D // nhead
    scale = 1.0 / math.sqrt(dh)
    return pl.pallas_call(
        functools.partial(_cross_attn_kernel, sk_valid=sk_valid, scale=scale),
        out_shape=jax.ShapeDtypeStruct((B, Sq, D), xq.dtype),
        grid=(B, nhead),
        in_specs=[
            pl.BlockSpec((None, Sq, D), lambda b, h: (b, 0, 0)),
            pl.BlockSpec((None, Sk, D), lambda b, h: (b, 0, 0)),
            pl.BlockSpec((None, D, dh), lambda b, h: (h, 0, 0)),
            pl.BlockSpec((None, 1, dh), lambda b, h: (h, 0, 0)),
            pl.BlockSpec((None, 2, D, dh), lambda b, h: (h, 0, 0, 0)),
            pl.BlockSpec((None, 2, 1, dh), lambda b, h: (h, 0, 0, 0)),
            pl.BlockSpec((None, dh, D), lambda b, h: (h, 0, 0)),
            pl.BlockSpec((1, D), lambda b, h: (0, 0)),
            pl.BlockSpec((1, D), lambda b, h: (0, 0)),
            pl.BlockSpec((1, D), lambda b, h: (0, 0)),
        ],
        out_specs=pl.BlockSpec((None, Sq, D), lambda b, h: (b, 0, 0)),
        scratch_shapes=[pltpu.VMEM((Sq, D), jnp.float32)],
        compiler_params=pltpu.CompilerParams(
            dimension_semantics=("parallel", "arbitrary"),
            vmem_limit_bytes=_VMEM_LIMIT),
    )(xq, xkv, ap["wq"], ap["bq"], ap["wkv"], ap["bkv"], ap["wo"], ap["bo"],
      gamma.reshape(1, D), beta.reshape(1, D))


# ----------------------------- fused MLP head -----------------------------

def _head_kernel(x_ref, g_ref, b_ref, w_ref, hb_ref, o_ref):
    y = _ln_rows(x_ref[...].astype(jnp.float32), g_ref[...], b_ref[...])
    z = jnp.dot(y.astype(_MXU_DTYPE), w_ref[...],
                preferred_element_type=jnp.float32)
    o_ref[...] = (z + hb_ref[...]).astype(o_ref.dtype)


def mlp_head(x, gamma, beta, w, b):
    """Logits = LN(x) @ w + b  (f32 output)."""
    B, D = x.shape
    C = w.shape[1]
    return pl.pallas_call(
        _head_kernel,
        out_shape=jax.ShapeDtypeStruct((B, C), jnp.float32),
        grid=(1,),
        in_specs=[
            pl.BlockSpec((B, D), lambda i: (0, 0)),
            pl.BlockSpec((1, D), lambda i: (0, 0)),
            pl.BlockSpec((1, D), lambda i: (0, 0)),
            pl.BlockSpec((D, C), lambda i: (0, 0)),
            pl.BlockSpec((1, C), lambda i: (0, 0)),
        ],
        out_specs=pl.BlockSpec((B, C), lambda i: (0, 0)),
        compiler_params=pltpu.CompilerParams(dimension_semantics=("arbitrary",)),
    )(x, gamma.reshape(1, D), beta.reshape(1, D), w, b.reshape(1, C))


# ------------------------- transformer layers -------------------------

def encoder_layer(x, p, nhead, s_valid):
    B, S, D = x.shape
    x = self_attn_block(x, p["attn"], p["ln1_g"], p["ln1_b"], nhead, s_valid)
    x = ffn_residual_ln(x.reshape(B * S, D), p["w1"], p["b1"], p["w2"], p["b2"],
                        p["ln2_g"], p["ln2_b"]).reshape(B, S, D)
    return x


def decoder_layer(y, mem, p, nhead, s_valid):
    B, S, D = y.shape
    y = self_attn_block(y, p["self_attn"], p["ln1_g"], p["ln1_b"], nhead, s_valid)
    y = cross_attn_block(y, mem, p["cross_attn"], p["ln2_g"], p["ln2_b"],
                         nhead, s_valid)
    y = ffn_residual_ln(y.reshape(B * S, D), p["w1"], p["b1"], p["w2"], p["b2"],
                        p["ln3_g"], p["ln3_b"]).reshape(B, S, D)
    return y


# ------------------------------- ViT forward -------------------------------

def vit_forward(img, params, *, patch_size, nhead):
    # img is NCHW (B, C, H, W), matching the PyTorch reference.
    B, C, H, W = img.shape
    ps = patch_size
    h, w = H // ps, W // ps
    # rearrange 'b c (h p1) (w p2) -> b (h w) (p1 p2 c)'
    x = img.reshape(B, C, h, ps, w, ps).transpose(0, 2, 4, 3, 5, 1)
    x = x.reshape(B, h * w, ps * ps * C).astype(_MXU_DTYPE)

    D = params["pe_w"].shape[1]
    n = h * w
    x = linear(x.reshape(B * n, ps * ps * C), params["pe_w"],
               params["pe_b"]).reshape(B, n, D)

    cls = jnp.broadcast_to(params["cls_token"].astype(_MXU_DTYPE), (B, 1, D))
    x = jnp.concatenate([cls, x], axis=1)                       # (B, n+1, D)
    x = x + params["pos_embedding"][:, : n + 1].astype(_MXU_DTYPE)
    # TODO(synk): emb_dropout / transformer dropout layers are identity (eval mode).

    s_valid = n + 1
    s_pad = ((s_valid + 7) // 8) * 8         # sublane-align the sequence length
    if s_pad != s_valid:
        pad = jnp.zeros((B, s_pad - s_valid, D), x.dtype)
        x = jnp.concatenate([x, pad], axis=1)
    S = s_pad

    # TODO(synk): reference calls nn.Transformer(x, mask); with mask=None we use src=tgt=x.
    mem = x
    for lp in params["enc_layers"]:
        mem = encoder_layer(mem, lp, nhead, s_valid)
    mem = layernorm(mem.reshape(B * S, D),
                    params["enc_norm_g"], params["enc_norm_b"]).reshape(B, S, D)

    y = x
    for lp in params["dec_layers"]:
        y = decoder_layer(y, mem, lp, nhead, s_valid)
    y = layernorm(y.reshape(B * S, D),
                  params["dec_norm_g"], params["dec_norm_b"]).reshape(B, S, D)

    cls_out = y[:, 0]                                           # (B, D); to_cls_token = Identity
    logits = mlp_head(cls_out, params["head_ln_g"], params["head_ln_b"],
                      params["head_w"], params["head_b"])       # (B, num_classes) f32
    return logits


# ------------------------------ parameter init ------------------------------

def _dense_init(key, fan_in, fan_out):
    kw, kb = jax.random.split(key)
    lim = 1.0 / math.sqrt(fan_in)
    w = jax.random.uniform(kw, (fan_in, fan_out), jnp.float32, -lim, lim)
    b = jax.random.uniform(kb, (fan_out,), jnp.float32, -lim, lim)
    return w, b


def _split_heads(w, b, nhead):
    """(D, D)/(D,) dense layout -> per-head (nhead, D, dh) / (nhead, 1, dh)."""
    d = w.shape[0]
    dh = w.shape[1] // nhead
    wh = w.reshape(d, nhead, dh).transpose(1, 0, 2)
    bh = b.reshape(nhead, dh)[:, None, :]
    return wh, bh


def _self_attn_init(key, d, nhead):
    ks = jax.random.split(key, 4)
    wq, bq = _dense_init(ks[0], d, d)
    wk, bk = _dense_init(ks[1], d, d)
    wv, bv = _dense_init(ks[2], d, d)
    wo, bo = _dense_init(ks[3], d, d)
    wqh, bqh = _split_heads(wq, bq, nhead)
    wkh, bkh = _split_heads(wk, bk, nhead)
    wvh, bvh = _split_heads(wv, bv, nhead)
    return dict(
        wqkv=jnp.stack([wqh, wkh, wvh], axis=1).astype(_MXU_DTYPE),  # (nh,3,D,dh)
        bqkv=jnp.stack([bqh, bkh, bvh], axis=1),                     # (nh,3,1,dh) f32
        wo=wo.reshape(nhead, d // nhead, d).astype(_MXU_DTYPE),      # (nh,dh,D)
        bo=bo.reshape(1, d))                                         # (1,D) f32


def _cross_attn_init(key, d, nhead):
    ks = jax.random.split(key, 4)
    wq, bq = _dense_init(ks[0], d, d)
    wk, bk = _dense_init(ks[1], d, d)
    wv, bv = _dense_init(ks[2], d, d)
    wo, bo = _dense_init(ks[3], d, d)
    wqh, bqh = _split_heads(wq, bq, nhead)
    wkh, bkh = _split_heads(wk, bk, nhead)
    wvh, bvh = _split_heads(wv, bv, nhead)
    return dict(
        wq=wqh.astype(_MXU_DTYPE), bq=bqh,                           # (nh,D,dh)/(nh,1,dh)
        wkv=jnp.stack([wkh, wvh], axis=1).astype(_MXU_DTYPE),        # (nh,2,D,dh)
        bkv=jnp.stack([bkh, bvh], axis=1),                           # (nh,2,1,dh)
        wo=wo.reshape(nhead, d // nhead, d).astype(_MXU_DTYPE),
        bo=bo.reshape(1, d))


def _enc_layer_init(key, d, dff, nhead):
    k = jax.random.split(key, 3)
    p = {"attn": _self_attn_init(k[0], d, nhead)}
    w1, b1 = _dense_init(k[1], d, dff)
    w2, b2 = _dense_init(k[2], dff, d)
    p["w1"], p["b1"] = w1.astype(_MXU_DTYPE), b1
    p["w2"], p["b2"] = w2.astype(_MXU_DTYPE), b2
    p["ln1_g"], p["ln1_b"] = jnp.ones((d,)), jnp.zeros((d,))
    p["ln2_g"], p["ln2_b"] = jnp.ones((d,)), jnp.zeros((d,))
    return p


def _dec_layer_init(key, d, dff, nhead):
    k = jax.random.split(key, 4)
    p = {"self_attn": _self_attn_init(k[0], d, nhead),
         "cross_attn": _cross_attn_init(k[1], d, nhead)}
    w1, b1 = _dense_init(k[2], d, dff)
    w2, b2 = _dense_init(k[3], dff, d)
    p["w1"], p["b1"] = w1.astype(_MXU_DTYPE), b1
    p["w2"], p["b2"] = w2.astype(_MXU_DTYPE), b2
    p["ln1_g"], p["ln1_b"] = jnp.ones((d,)), jnp.zeros((d,))
    p["ln2_g"], p["ln2_b"] = jnp.ones((d,)), jnp.zeros((d,))
    p["ln3_g"], p["ln3_b"] = jnp.ones((d,)), jnp.zeros((d,))
    return p


def init_vit_params(key, *, image_size, patch_size, num_classes, d_model, nhead,
                    num_encoder_layers, num_decoder_layers, channels, dim_feedforward):
    num_patches = (image_size // patch_size) ** 2
    patch_dim = channels * patch_size ** 2
    keys = jax.random.split(key, 4 + num_encoder_layers + num_decoder_layers)

    params = {}
    params["pos_embedding"] = jax.random.normal(
        keys[0], (1, num_patches + 1, d_model), jnp.float32)
    params["cls_token"] = jax.random.normal(keys[1], (1, 1, d_model), jnp.float32)
    pe_w, pe_b = _dense_init(keys[2], patch_dim, d_model)
    params["pe_w"], params["pe_b"] = pe_w.astype(_MXU_DTYPE), pe_b

    params["enc_layers"] = [
        _enc_layer_init(keys[3 + i], d_model, dim_feedforward, nhead)
        for i in range(num_encoder_layers)
    ]
    params["dec_layers"] = [
        _dec_layer_init(keys[3 + num_encoder_layers + i], d_model, dim_feedforward, nhead)
        for i in range(num_decoder_layers)
    ]
    params["enc_norm_g"], params["enc_norm_b"] = jnp.ones((d_model,)), jnp.zeros((d_model,))
    params["dec_norm_g"], params["dec_norm_b"] = jnp.ones((d_model,)), jnp.zeros((d_model,))

    params["head_ln_g"], params["head_ln_b"] = jnp.ones((d_model,)), jnp.zeros((d_model,))
    hw, hb = _dense_init(
        keys[3 + num_encoder_layers + num_decoder_layers], d_model, num_classes)
    params["head_w"], params["head_b"] = hw.astype(_MXU_DTYPE), hb
    return params


# ---------------------------------- main ----------------------------------

if __name__ == "__main__":
    # Small but hardware-friendly config (D = 128 -> lane-dense activations).
    B, C, IMG, P = 2, 4, 16, 4          # 16 patches of dim 4*4*4 = 64
    D_MODEL, NHEAD = 128, 4             # head dim 32
    NUM_ENC, NUM_DEC, DFF = 2, 2, 256
    NUM_CLASSES = 10

    key = jax.random.PRNGKey(0)
    k_img, k_params = jax.random.split(key)

    img = jax.random.normal(k_img, (B, C, IMG, IMG), jnp.float32)   # NCHW, like PyTorch
    params = init_vit_params(
        k_params,
        image_size=IMG, patch_size=P, num_classes=NUM_CLASSES,
        d_model=D_MODEL, nhead=NHEAD,
        num_encoder_layers=NUM_ENC, num_decoder_layers=NUM_DEC,
        channels=C, dim_feedforward=DFF,
    )

    fwd = jax.jit(functools.partial(vit_forward, patch_size=P, nhead=NHEAD))
    logits = fwd(img, params)
    jax.block_until_ready(logits)

    assert logits.shape == (B, NUM_CLASSES)
    assert bool(jnp.all(jnp.isfinite(logits)))
    print("KERNEL_OK")
</pallas_src>

<mosaic_0001>
module attributes {stable_mosaic.version = 11 : i64} {
  func.func @_linear_kernel_single(%arg0: i32, %arg1: i32, %arg2: memref<32x64xbf16, #tpu.memory_space<vmem>>, %arg3: memref<64x128xbf16, #tpu.memory_space<vmem>>, %arg4: memref<1x128xf32, #tpu.memory_space<vmem>>, %arg5: memref<32x128xbf16, #tpu.memory_space<vmem>>) attributes {dimension_semantics = [#tpu.dimension_semantics<parallel>, #tpu.dimension_semantics<parallel>], iteration_bounds = array<i64: 1, 1>, scalar_prefetch = 0 : i64, scratch_operands = 0 : i64, tpu.core_type = #tpu.core_type<tc>, window_params = [{transform_indices = @transform_0, window_bounds = array<i64: 32, 64>}, {transform_indices = @transform_1, window_bounds = array<i64: 64, 128>}, {transform_indices = @transform_2, window_bounds = array<i64: 1, 128>}, {transform_indices = @transform_3, window_bounds = array<i64: 32, 128>}]} {
    %c0 = arith.constant 0 : index
    %c0_0 = arith.constant 0 : index
    %0 = vector.load %arg2[%c0, %c0_0] : memref<32x64xbf16, #tpu.memory_space<vmem>>, vector<32x64xbf16>
    %c0_1 = arith.constant 0 : index
    %c0_2 = arith.constant 0 : index
    %1 = vector.load %arg3[%c0_1, %c0_2] : memref<64x128xbf16, #tpu.memory_space<vmem>>, vector<64x128xbf16>
    %cst = arith.constant dense<0.000000e+00> : vector<32x128xf32>
    %2 = tpu.matmul %0, %1, %cst {dimension_numbers = #tpu.dot_dimension_numbers<[1], [0], [0], [1], [0, 0, 1, 1], [], []>} : vector<32x64xbf16>, vector<64x128xbf16>, vector<32x128xf32> -> vector<32x128xf32>
    %c0_3 = arith.constant 0 : index
    %c0_4 = arith.constant 0 : index
    %3 = vector.load %arg4[%c0_3, %c0_4] : memref<1x128xf32, #tpu.memory_space<vmem>>, vector<1x128xf32>
    %4 = vector.broadcast %3 : vector<1x128xf32> to vector<32x128xf32>
    %5 = arith.addf %2, %4 : vector<32x128xf32>
    %6 = arith.truncf %5 : vector<32x128xf32> to vector<32x128xbf16>
    %c0_5 = arith.constant 0 : index
    %c0_6 = arith.constant 0 : index
    %7 = vector.load %arg5[%c0_5, %c0_6] : memref<32x128xbf16, #tpu.memory_space<vmem>>, vector<32x128xbf16>
    tpu.vector_store %arg5[%c0_5, %c0_6], %6 {strides = array<i32>} : memref<32x128xbf16, #tpu.memory_space<vmem>>, vector<32x128xbf16>,
    return
  }
  func.func @transform_0(%arg0: i32, %arg1: i32) -> (i32, i32) {
    %c0_i32 = arith.constant 0 : i32
    %c0_i32_0 = arith.constant 0 : i32
    return %arg0, %c0_i32 : i32, i32
  }
  func.func @transform_1(%arg0: i32, %arg1: i32) -> (i32, i32) {
    %c0_i32 = arith.constant 0 : i32
    %c0_i32_0 = arith.constant 0 : i32
    return %c0_i32, %arg1 : i32, i32
  }
  func.func @transform_2(%arg0: i32, %arg1: i32) -> (i32, i32) {
    %c0_i32 = arith.constant 0 : i32
    %c0_i32_0 = arith.constant 0 : i32
    return %c0_i32, %arg1 : i32, i32
  }
  func.func @transform_3(%arg0: i32, %arg1: i32) -> (i32, i32) {
    %c0_i32 = arith.constant 0 : i32
    return %arg0, %arg1 : i32, i32
  }
}

module attributes {stable_mosaic.version = 11 : i64} {
  func.func @_self_attn_kernel(%arg0: i32, %arg1: i32, %arg2: memref<1x24x128xbf16, #tpu.memory_space<vmem>>, %arg3: memref<1x3x128x32xbf16, #tpu.memory_space<vmem>>, %arg4: memref<1x3x1x32xf32, #tpu.memory_space<vmem>>, %arg5: memref<1x32x128xbf16, #tpu.memory_space<vmem>>, %arg6: memref<1x128xf32, #tpu.memory_space<vmem>>, %arg7: memref<1x128xf32, #tpu.memory_space<vmem>>, %arg8: memref<1x128xf32, #tpu.memory_space<vmem>>, %arg9: memref<1x24x128xbf16, #tpu.memory_space<vmem>>, %arg10: memref<24x128xf32, #tpu.memory_space<vmem>>) attributes {dimension_semantics = [#tpu.dimension_semantics<parallel>, #tpu.dimension_semantics<arbitrary>], iteration_bounds = array<i64: 2, 4>, scalar_prefetch = 0 : i64, scratch_operands = 1 : i64, tpu.core_type = #tpu.core_type<tc>, window_params = [{transform_indices = @transform_0, window_bounds = array<i64: 1, 24, 128>}, {transform_indices = @transform_1, window_bounds = array<i64: 1, 3, 128, 32>}, {transform_indices = @transform_2, window_bounds = array<i64: 1, 3, 1, 32>}, {transform_indices = @transform_3, window_bounds = array<i64: 1, 32, 128>}, {pipeline_mode = #tpu.pipeline_mode<synchronous>, transform_indices = @transform_4, window_bounds = array<i64: 1, 128>}, {pipeline_mode = #tpu.pipeline_mode<synchronous>, transform_indices = @transform_5, window_bounds = array<i64: 1, 128>}, {pipeline_mode = #tpu.pipeline_mode<synchronous>, transform_indices = @transform_6, window_bounds = array<i64: 1, 128>}, {transform_indices = @transform_7, window_bounds = array<i64: 1, 24, 128>}]} {
    %c0_i32 = arith.constant 0 : i32
    %0 = arith.cmpi eq, %arg1, %c0_i32 : i32
    %1 = arith.extui %0 : i1 to i32
    %c0_i32_0 = arith.constant 0 : i32
    %2 = arith.cmpi ne, %1, %c0_i32_0 : i32
    scf.if %2 {
      %cst_42 = arith.constant 0.000000e+00 : f32
      %59 = vector.broadcast %cst_42 : f32 to vector<24x128xf32>
      %c0_43 = arith.constant 0 : index
      %c0_44 = arith.constant 0 : index
      %60 = vector.load %arg10[%c0_43, %c0_44] : memref<24x128xf32, #tpu.memory_space<vmem>>, vector<24x128xf32>
      tpu.vector_store %arg10[%c0_43, %c0_44], %59 {strides = array<i32>} : memref<24x128xf32, #tpu.memory_space<vmem>>, vector<24x128xf32>,
    } else {
    }
    %c0 = arith.constant 0 : index
    %c0_1 = arith.constant 0 : index
    %c0_2 = arith.constant 0 : index
    %3 = vector.load %arg2[%c0, %c0_1, %c0_2] : memref<1x24x128xbf16, #tpu.memory_space<vmem>>, vector<1x24x128xbf16>
    %4 = vector.shape_cast %3 : vector<1x24x128xbf16> to vector<24x128xbf16>
    %c0_3 = arith.constant 0 : index
    %c0_4 = arith.constant 0 : index
    %c0_5 = arith.constant 0 : index
    %c0_6 = arith.constant 0 : index
    %5 = vector.load %arg3[%c0_3, %c0_4, %c0_5, %c0_6] : memref<1x3x128x32xbf16, #tpu.memory_space<vmem>>, vector<1x1x128x32xbf16>
    %6 = vector.shape_cast %5 : vector<1x1x128x32xbf16> to vector<128x32xbf16>
    %cst = arith.constant dense<0.000000e+00> : vector<24x32xf32>
    %7 = tpu.matmul %4, %6, %cst {dimension_numbers = #tpu.dot_dimension_numbers<[1], [0], [0], [1], [0, 0, 1, 1], [], []>} : vector<24x128xbf16>, vector<128x32xbf16>, vector<24x32xf32> -> vector<24x32xf32>
    %c0_7 = arith.constant 0 : index
    %c0_8 = arith.constant 0 : index
    %c0_9 = arith.constant 0 : index
    %c0_10 = arith.constant 0 : index
    %8 = vector.load %arg4[%c0_7, %c0_8, %c0_9, %c0_10] : memref<1x3x1x32xf32, #tpu.memory_space<vmem>>, vector<1x1x1x32xf32>
    %9 = vector.shape_cast %8 : vector<1x1x1x32xf32> to vector<1x32xf32>
    %10 = vector.broadcast %9 : vector<1x32xf32> to vector<24x32xf32>
    %11 = arith.addf %7, %10 : vector<24x32xf32>
    %c0_11 = arith.constant 0 : index
    %c1 = arith.constant 1 : index
    %c0_12 = arith.constant 0 : index
    %c0_13 = arith.constant 0 : index
    %12 = vector.load %arg3[%c0_11, %c1, %c0_12, %c0_13] : memref<1x3x128x32xbf16, #tpu.memory_space<vmem>>, vector<1x1x128x32xbf16>
    %13 = vector.shape_cast %12 : vector<1x1x128x32xbf16> to vector<128x32xbf16>
    %cst_14 = arith.constant dense<0.000000e+00> : vector<24x32xf32>
    %14 = tpu.matmul %4, %13, %cst_14 {dimension_numbers = #tpu.dot_dimension_numbers<[1], [0], [0], [1], [0, 0, 1, 1], [], []>} : vector<24x128xbf16>, vector<128x32xbf16>, vector<24x32xf32> -> vector<24x32xf32>
    %c0_15 = arith.constant 0 : index
    %c1_16 = arith.constant 1 : index
    %c0_17 = arith.constant 0 : index
    %c0_18 = arith.constant 0 : index
    %15 = vector.load %arg4[%c0_15, %c1_16, %c0_17, %c0_18] : memref<1x3x1x32xf32, #tpu.memory_space<vmem>>, vector<1x1x1x32xf32>
    %16 = vector.shape_cast %15 : vector<1x1x1x32xf32> to vector<1x32xf32>
    %17 = vector.broadcast %16 : vector<1x32xf32> to vector<24x32xf32>
    %18 = arith.addf %14, %17 : vector<24x32xf32>
    %c0_19 = arith.constant 0 : index
    %c2 = arith.constant 2 : index
    %c0_20 = arith.constant 0 : index
    %c0_21 = arith.constant 0 : index
    %19 = vector.load %arg3[%c0_19, %c2, %c0_20, %c0_21] : memref<1x3x128x32xbf16, #tpu.memory_space<vmem>>, vector<1x1x128x32xbf16>
    %20 = vector.shape_cast %19 : vector<1x1x128x32xbf16> to vector<128x32xbf16>
    %cst_22 = arith.constant dense<0.000000e+00> : vector<24x32xf32>
    %21 = tpu.matmul %4, %20, %cst_22 {dimension_numbers = #tpu.dot_dimension_numbers<[1], [0], [0], [1], [0, 0, 1, 1], [], []>} : vector<24x128xbf16>, vector<128x32xbf16>, vector<24x32xf32> -> vector<24x32xf32>
    %c0_23 = arith.constant 0 : index
    %c2_24 = arith.constant 2 : index
    %c0_25 = arith.constant 0 : index
    %c0_26 = arith.constant 0 : index
    %22 = vector.load %arg4[%c0_23, %c2_24, %c0_25, %c0_26] : memref<1x3x1x32xf32, #tpu.memory_space<vmem>>, vector<1x1x1x32xf32>
    %23 = vector.shape_cast %22 : vector<1x1x1x32xf32> to vector<1x32xf32>
    %24 = vector.broadcast %23 : vector<1x32xf32> to vector<24x32xf32>
    %25 = arith.addf %21, %24 : vector<24x32xf32>
    %26 = arith.truncf %11 : vector<24x32xf32> to vector<24x32xbf16>
    %27 = arith.truncf %18 : vector<24x32xf32> to vector<24x32xbf16>
    %cst_27 = arith.constant dense<0.000000e+00> : vector<24x24xf32>
    %28 = tpu.matmul %26, %27, %cst_27 {dimension_numbers = #tpu.dot_dimension_numbers<[1], [1], [0], [0], [0, 0, 1, 0], [], []>} : vector<24x32xbf16>, vector<24x32xbf16>, vector<24x24xf32> -> vector<24x24xf32>
    %cst_28 = arith.constant 0.176776692 : f32
    %29 = vector.broadcast %cst_28 : f32 to vector<24x24xf32>
    %30 = arith.mulf %28, %29 : vector<24x24xf32>
    %31 = tpu.iota {dimensions = array<i32: 1>} : vector<24x24xi32>
    %c17_i32 = arith.constant 17 : i32
    %32 = vector.broadcast %c17_i32 : i32 to vector<24x24xi32>
    %33 = arith.cmpi slt, %31, %32 : vector<24x24xi32>
    %cst_29 = arith.constant -1.000000e+30 : f32
    %34 = vector.broadcast %cst_29 : f32 to vector<24x24xf32>
    %35 = arith.select %33, %30, %34 : vector<24x24xi1>, vector<24x24xf32>
    %cst_30 = arith.constant dense<0xFF800000> : vector<24xf32>
    %36 = vector.multi_reduction <maximumf>, %35, %cst_30 [1] : vector<24x24xf32> to vector<24xf32>
    %37 = vector.shape_cast %36 : vector<24xf32> to vector<24x1xf32>
    %38 = vector.broadcast %37 : vector<24x1xf32> to vector<24x24xf32>
    %39 = arith.subf %35, %38 : vector<24x24xf32>
    %40 = math.exp %39 : vector<24x24xf32>
    %cst_31 = arith.constant dense<0.000000e+00> : vector<24xf32>
    %41 = vector.multi_reduction <add>, %40, %cst_31 [1] : vector<24x24xf32> to vector<24xf32>
    %42 = vector.shape_cast %41 : vector<24xf32> to vector<24x1xf32>
    %43 = tpu.reciprocal %42 {approx = true} : vector<24x1xf32> -> vector<24x1xf32>
    %44 = vector.broadcast %43 : vector<24x1xf32> to vector<24x24xf32>
    %45 = arith.mulf %40, %44 : vector<24x24xf32>
    %46 = arith.truncf %45 : vector<24x24xf32> to vector<24x24xbf16>
    %47 = arith.truncf %25 : vector<24x32xf32> to vector<24x32xbf16>
    %cst_32 = arith.constant dense<0.000000e+00> : vector<24x32xf32>
    %48 = tpu.matmul %46, %47, %cst_32 {dimension_numbers = #tpu.dot_dimension_numbers<[1], [0], [0], [1], [0, 0, 1, 1], [], []>} : vector<24x24xbf16>, vector<24x32xbf16>, vector<24x32xf32> -> vector<24x32xf32>
    %c0_33 = arith.constant 0 : index
    %c0_34 = arith.constant 0 : index
    %49 = vector.load %arg10[%c0_33, %c0_34] : memref<24x128xf32, #tpu.memory_space<vmem>>, vector<24x128xf32>
    %50 = arith.truncf %48 : vector<24x32xf32> to vector<24x32xbf16>
    %c0_35 = arith.constant 0 : index
    %c0_36 = arith.constant 0 : index
    %c0_37 = arith.constant 0 : index
    %51 = vector.load %arg5[%c0_35, %c0_36, %c0_37] : memref<1x32x128xbf16, #tpu.memory_space<vmem>>, vector<1x32x128xbf16>
    %52 = vector.shape_cast %51 : vector<1x32x128xbf16> to vector<32x128xbf16>
    %cst_38 = arith.constant dense<0.000000e+00> : vector<24x128xf32>
    %53 = tpu.matmul %50, %52, %cst_38 {dimension_numbers = #tpu.dot_dimension_numbers<[1], [0], [0], [1], [0, 0, 1, 1], [], []>} : vector<24x32xbf16>, vector<32x128xbf16>, vector<24x128xf32> -> vector<24x128xf32>
    %54 = arith.addf %49, %53 : vector<24x128xf32>
    %c0_39 = arith.constant 0 : index
    %c0_40 = arith.constant 0 : index
    %55 = vector.load %arg10[%c0_39, %c0_40] : memref<24x128xf32, #tpu.memory_space<vmem>>, vector<24x128xf32>
    tpu.vector_store %arg10[%c0_39, %c0_40], %54 {strides = array<i32>} : memref<24x128xf32, #tpu.memory_space<vmem>>, vector<24x128xf32>,
    %c3_i32 = arith.constant 3 : i32
    %56 = arith.cmpi eq, %arg1, %c3_i32 : i32
    %57 = arith.extui %56 : i1 to i32
    %c0_i32_41 = arith.constant 0 : i32
    %58 = arith.cmpi ne, %57, %c0_i32_41 : i32
    scf.if %58 {
      %c0_42 = arith.constant 0 : index
      %c0_43 = arith.constant 0 : index
      %59 = vector.load %arg10[%c0_42, %c0_43] : memref<24x128xf32, #tpu.memory_space<vmem>>, vector<24x128xf32>
      %c0_44 = arith.constant 0 : index
      %c0_45 = arith.constant 0 : index
      %60 = vector.load %arg6[%c0_44, %c0_45] : memref<1x128xf32, #tpu.memory_space<vmem>>, vector<1x128xf32>
      %61 = vector.broadcast %60 : vector<1x128xf32> to vector<24x128xf32>
      %62 = arith.addf %59, %61 : vector<24x128xf32>
      %63 = arith.extf %4 : vector<24x128xbf16> to vector<24x128xf32>
      %64 = arith.addf %62, %63 : vector<24x128xf32>
      %c0_46 = arith.constant 0 : index
      %c0_47 = arith.constant 0 : index
      %65 = vector.load %arg7[%c0_46, %c0_47] : memref<1x128xf32, #tpu.memory_space<vmem>>, vector<1x128xf32>
      %c0_48 = arith.constant 0 : index
      %c0_49 = arith.constant 0 : index
      %66 = vector.load %arg8[%c0_48, %c0_49] : memref<1x128xf32, #tpu.memory_space<vmem>>, vector<1x128xf32>
      %cst_50 = arith.constant dense<0.000000e+00> : vector<24xf32>
      %67 = vector.multi_reduction <add>, %64, %cst_50 [1] : vector<24x128xf32> to vector<24xf32>
      %68 = vector.shape_cast %67 : vector<24xf32> to vector<24x1xf32>
      %cst_51 = arith.constant 1.280000e+02 : f32
      %69 = vector.broadcast %cst_51 : f32 to vector<24x1xf32>
      %70 = arith.divf %68, %69 : vector<24x1xf32>
      %71 = vector.broadcast %70 : vector<24x1xf32> to vector<24x128xf32>
      %72 = arith.subf %64, %71 : vector<24x128xf32>
      %73 = arith.mulf %72, %72 : vector<24x128xf32>
      %cst_52 = arith.constant dense<0.000000e+00> : vector<24xf32>
      %74 = vector.multi_reduction <add>, %73, %cst_52 [1] : vector<24x128xf32> to vector<24xf32>
      %75 = vector.shape_cast %74 : vector<24xf32> to vector<24x1xf32>
      %cst_53 = arith.constant 1.280000e+02 : f32
      %76 = vector.broadcast %cst_53 : f32 to vector<24x1xf32>
      %77 = arith.divf %75, %76 : vector<24x1xf32>
      %cst_54 = arith.constant 9.99999974E-6 : f32
      %78 = vector.broadcast %cst_54 : f32 to vector<24x1xf32>
      %79 = arith.addf %77, %78 : vector<24x1xf32>
      %80 = math.rsqrt %79 : vector<24x1xf32>
      %81 = vector.broadcast %80 : vector<24x1xf32> to vector<24x128xf32>
      %82 = arith.mulf %72, %81 : vector<24x128xf32>
      %83 = vector.broadcast %65 : vector<1x128xf32> to vector<24x128xf32>
      %84 = arith.mulf %82, %83 : vector<24x128xf32>
      %85 = vector.broadcast %66 : vector<1x128xf32> to vector<24x128xf32>
      %86 = arith.addf %84, %85 : vector<24x128xf32>
      %87 = arith.truncf %86 : vector<24x128xf32> to vector<24x128xbf16>
      %c0_55 = arith.constant 0 : index
      %c0_56 = arith.constant 0 : index
      %c0_57 = arith.constant 0 : index
      %88 = vector.load %arg9[%c0_55, %c0_56, %c0_57] : memref<1x24x128xbf16, #tpu.memory_space<vmem>>, vector<1x24x128xbf16>
      %89 = vector.shape_cast %88 : vector<1x24x128xbf16> to vector<24x128xbf16>
      %90 = vector.shape_cast %87 : vector<24x128xbf16> to vector<1x24x128xbf16>
      tpu.vector_store %arg9[%c0_55, %c0_56, %c0_57], %90 {strides = array<i32>} : memref<1x24x128xbf16, #tpu.memory_space<vmem>>, vector<1x24x128xbf16>,
    } else {
    }
    return
  }
  func.func @transform_0(%arg0: i32, %arg1: i32) -> (i32, i32, i32) {
    %c0_i32 = arith.constant 0 : i32
    %c0_i32_0 = arith.constant 0 : i32
    %c0_i32_1 = arith.constant 0 : i32
    return %arg0, %c0_i32, %c0_i32_0 : i32, i32, i32
  }
  func.func @transform_1(%arg0: i32, %arg1: i32) -> (i32, i32, i32, i32) {
    %c0_i32 = arith.constant 0 : i32
    %c0_i32_0 = arith.constant 0 : i32
    %c0_i32_1 = arith.constant 0 : i32
    %c0_i32_2 = arith.constant 0 : i32
    return %arg1, %c0_i32, %c0_i32_0, %c0_i32_1 : i32, i32, i32, i32
  }
  func.func @transform_2(%arg0: i32, %arg1: i32) -> (i32, i32, i32, i32) {
    %c0_i32 = arith.constant 0 : i32
    %c0_i32_0 = arith.constant 0 : i32
    %c0_i32_1 = arith.constant 0 : i32
    %c0_i32_2 = arith.constant 0 : i32
    return %arg1, %c0_i32, %c0_i32_0, %c0_i32_1 : i32, i32, i32, i32
  }
  func.func @transform_3(%arg0: i32, %arg1: i32) -> (i32, i32, i32) {
    %c0_i32 = arith.constant 0 : i32
    %c0_i32_0 = arith.constant 0 : i32
    %c0_i32_1 = arith.constant 0 : i32
    return %arg1, %c0_i32, %c0_i32_0 : i32, i32, i32
  }
  func.func @transform_4(%arg0: i32, %arg1: i32) -> (i32, i32) {
    %c0_i32 = arith.constant 0 : i32
    %c0_i32_0 = arith.constant 0 : i32
    %c0_i32_1 = arith.constant 0 : i32
    return %c0_i32, %c0_i32_0 : i32, i32
  }
  func.func @transform_5(%arg0: i32, %arg1: i32) -> (i32, i32) {
    %c0_i32 = arith.constant 0 : i32
    %c0_i32_0 = arith.constant 0 : i32
    %c0_i32_1 = arith.constant 0 : i32
    return %c0_i32, %c0_i32_0 : i32, i32
  }
  func.func @transform_6(%arg0: i32, %arg1: i32) -> (i32, i32) {
    %c0_i32 = arith.constant 0 : i32
    %c0_i32_0 = arith.constant 0 : i32
    %c0_i32_1 = arith.constant 0 : i32
    return %c0_i32, %c0_i32_0 : i32, i32
  }
  func.func @transform_7(%arg0: i32, %arg1: i32) -> (i32, i32, i32) {
    %c0_i32 = arith.constant 0 : i32
    %c0_i32_0 = arith.constant 0 : i32
    %c0_i32_1 = arith.constant 0 : i32
    return %arg0, %c0_i32, %c0_i32_0 : i32, i32, i32
  }
}

module attributes {stable_mosaic.version = 11 : i64} {
  func.func @_ffn_res_ln_kernel(%arg0: i32, %arg1: i32, %arg2: memref<48x128xbf16, #tpu.memory_space<vmem>>, %arg3: memref<128x256xbf16, #tpu.memory_space<vmem>>, %arg4: memref<1x256xf32, #tpu.memory_space<vmem>>, %arg5: memref<256x128xbf16, #tpu.memory_space<vmem>>, %arg6: memref<1x128xf32, #tpu.memory_space<vmem>>, %arg7: memref<1x128xf32, #tpu.memory_space<vmem>>, %arg8: memref<1x128xf32, #tpu.memory_space<vmem>>, %arg9: memref<48x128xbf16, #tpu.memory_space<vmem>>, %arg10: memref<48x128xf32, #tpu.memory_space<vmem>>) attributes {dimension_semantics = [#tpu.dimension_semantics<parallel>, #tpu.dimension_semantics<arbitrary>], iteration_bounds = array<i64: 1, 1>, scalar_prefetch = 0 : i64, scratch_operands = 1 : i64, tpu.core_type = #tpu.core_type<tc>, window_params = [{transform_indices = @transform_0, window_bounds = array<i64: 48, 128>}, {transform_indices = @transform_1, window_bounds = array<i64: 128, 256>}, {transform_indices = @transform_2, window_bounds = array<i64: 1, 256>}, {transform_indices = @transform_3, window_bounds = array<i64: 256, 128>}, {pipeline_mode = #tpu.pipeline_mode<synchronous>, transform_indices = @transform_4, window_bounds = array<i64: 1, 128>}, {pipeline_mode = #tpu.pipeline_mode<synchronous>, transform_indices = @transform_5, window_bounds = array<i64: 1, 128>}, {pipeline_mode = #tpu.pipeline_mode<synchronous>, transform_indices = @transform_6, window_bounds = array<i64: 1, 128>}, {transform_indices = @transform_7, window_bounds = array<i64: 48, 128>}]} {
    %c0_i32 = arith.constant 0 : i32
    %0 = arith.cmpi eq, %arg1, %c0_i32 : i32
    %1 = arith.extui %0 : i1 to i32
    %c0_i32_0 = arith.constant 0 : i32
    %2 = arith.cmpi ne, %1, %c0_i32_0 : i32
    scf.if %2 {
      %cst_16 = arith.constant 0.000000e+00 : f32
      %20 = vector.broadcast %cst_16 : f32 to vector<48x128xf32>
      %c0_17 = arith.constant 0 : index
      %c0_18 = arith.constant 0 : index
      %21 = vector.load %arg10[%c0_17, %c0_18] : memref<48x128xf32, #tpu.memory_space<vmem>>, vector<48x128xf32>
      tpu.vector_store %arg10[%c0_17, %c0_18], %20 {strides = array<i32>} : memref<48x128xf32, #tpu.memory_space<vmem>>, vector<48x128xf32>,
    } else {
    }
    %c0 = arith.constant 0 : index
    %c0_1 = arith.constant 0 : index
    %3 = vector.load %arg2[%c0, %c0_1] : memref<48x128xbf16, #tpu.memory_space<vmem>>, vector<48x128xbf16>
    %c0_2 = arith.constant 0 : index
    %c0_3 = arith.constant 0 : index
    %4 = vector.load %arg3[%c0_2, %c0_3] : memref<128x256xbf16, #tpu.memory_space<vmem>>, vector<128x256xbf16>
    %cst = arith.constant dense<0.000000e+00> : vector<48x256xf32>
    %5 = tpu.matmul %3, %4, %cst {dimension_numbers = #tpu.dot_dimension_numbers<[1], [0], [0], [1], [0, 0, 1, 1], [], []>} : vector<48x128xbf16>, vector<128x256xbf16>, vector<48x256xf32> -> vector<48x256xf32>
    %c0_4 = arith.constant 0 : index
    %c0_5 = arith.constant 0 : index
    %6 = vector.load %arg4[%c0_4, %c0_5] : memref<1x256xf32, #tpu.memory_space<vmem>>, vector<1x256xf32>
    %7 = vector.broadcast %6 : vector<1x256xf32> to vector<48x256xf32>
    %8 = arith.addf %5, %7 : vector<48x256xf32>
    %cst_6 = arith.constant 0.000000e+00 : f32
    %9 = vector.broadcast %cst_6 : f32 to vector<48x256xf32>
    %10 = arith.maximumf %8, %9 : vector<48x256xf32>
    %c0_7 = arith.constant 0 : index
    %c0_8 = arith.constant 0 : index
    %11 = vector.load %arg10[%c0_7, %c0_8] : memref<48x128xf32, #tpu.memory_space<vmem>>, vector<48x128xf32>
    %12 = arith.truncf %10 : vector<48x256xf32> to vector<48x256xbf16>
    %c0_9 = arith.constant 0 : index
    %c0_10 = arith.constant 0 : index
    %13 = vector.load %arg5[%c0_9, %c0_10] : memref<256x128xbf16, #tpu.memory_space<vmem>>, vector<256x128xbf16>
    %cst_11 = arith.constant dense<0.000000e+00> : vector<48x128xf32>
    %14 = tpu.matmul %12, %13, %cst_11 {dimension_numbers = #tpu.dot_dimension_numbers<[1], [0], [0], [1], [0, 0, 1, 1], [], []>} : vector<48x256xbf16>, vector<256x128xbf16>, vector<48x128xf32> -> vector<48x128xf32>
    %15 = arith.addf %11, %14 : vector<48x128xf32>
    %c0_12 = arith.constant 0 : index
    %c0_13 = arith.constant 0 : index
    %16 = vector.load %arg10[%c0_12, %c0_13] : memref<48x128xf32, #tpu.memory_space<vmem>>, vector<48x128xf32>
    tpu.vector_store %arg10[%c0_12, %c0_13], %15 {strides = array<i32>} : memref<48x128xf32, #tpu.memory_space<vmem>>, vector<48x128xf32>,
    %c0_i32_14 = arith.constant 0 : i32
    %17 = arith.cmpi eq, %arg1, %c0_i32_14 : i32
    %18 = arith.extui %17 : i1 to i32
    %c0_i32_15 = arith.constant 0 : i32
    %19 = arith.cmpi ne, %18, %c0_i32_15 : i32
    scf.if %19 {
      %c0_16 = arith.constant 0 : index
      %c0_17 = arith.constant 0 : index
      %20 = vector.load %arg10[%c0_16, %c0_17] : memref<48x128xf32, #tpu.memory_space<vmem>>, vector<48x128xf32>
      %c0_18 = arith.constant 0 : index
      %c0_19 = arith.constant 0 : index
      %21 = vector.load %arg6[%c0_18, %c0_19] : memref<1x128xf32, #tpu.memory_space<vmem>>, vector<1x128xf32>
      %22 = vector.broadcast %21 : vector<1x128xf32> to vector<48x128xf32>
      %23 = arith.addf %20, %22 : vector<48x128xf32>
      %c0_20 = arith.constant 0 : index
      %c0_21 = arith.constant 0 : index
      %24 = vector.load %arg2[%c0_20, %c0_21] : memref<48x128xbf16, #tpu.memory_space<vmem>>, vector<48x128xbf16>
      %25 = arith.extf %24 : vector<48x128xbf16> to vector<48x128xf32>
      %26 = arith.addf %23, %25 : vector<48x128xf32>
      %c0_22 = arith.constant 0 : index
      %c0_23 = arith.constant 0 : index
      %27 = vector.load %arg7[%c0_22, %c0_23] : memref<1x128xf32, #tpu.memory_space<vmem>>, vector<1x128xf32>
      %c0_24 = arith.constant 0 : index
      %c0_25 = arith.constant 0 : index
      %28 = vector.load %arg8[%c0_24, %c0_25] : memref<1x128xf32, #tpu.memory_space<vmem>>, vector<1x128xf32>
      %cst_26 = arith.constant dense<0.000000e+00> : vector<48xf32>
      %29 = vector.multi_reduction <add>, %26, %cst_26 [1] : vector<48x128xf32> to vector<48xf32>
      %30 = vector.shape_cast %29 : vector<48xf32> to vector<48x1xf32>
      %cst_27 = arith.constant 1.280000e+02 : f32
      %31 = vector.broadcast %cst_27 : f32 to vector<48x1xf32>
      %32 = arith.divf %30, %31 : vector<48x1xf32>
      %33 = vector.broadcast %32 : vector<48x1xf32> to vector<48x128xf32>
      %34 = arith.subf %26, %33 : vector<48x128xf32>
      %35 = arith.mulf %34, %34 : vector<48x128xf32>
      %cst_28 = arith.constant dense<0.000000e+00> : vector<48xf32>
      %36 = vector.multi_reduction <add>, %35, %cst_28 [1] : vector<48x128xf32> to vector<48xf32>
      %37 = vector.shape_cast %36 : vector<48xf32> to vector<48x1xf32>
      %cst_29 = arith.constant 1.280000e+02 : f32
      %38 = vector.broadcast %cst_29 : f32 to vector<48x1xf32>
      %39 = arith.divf %37, %38 : vector<48x1xf32>
      %cst_30 = arith.constant 9.99999974E-6 : f32
      %40 = vector.broadcast %cst_30 : f32 to vector<48x1xf32>
      %41 = arith.addf %39, %40 : vector<48x1xf32>
      %42 = math.rsqrt %41 : vector<48x1xf32>
      %43 = vector.broadcast %42 : vector<48x1xf32> to vector<48x128xf32>
      %44 = arith.mulf %34, %43 : vector<48x128xf32>
      %45 = vector.broadcast %27 : vector<1x128xf32> to vector<48x128xf32>
      %46 = arith.mulf %44, %45 : vector<48x128xf32>
      %47 = vector.broadcast %28 : vector<1x128xf32> to vector<48x128xf32>
      %48 = arith.addf %46, %47 : vector<48x128xf32>
      %49 = arith.truncf %48 : vector<48x128xf32> to vector<48x128xbf16>
      %c0_31 = arith.constant 0 : index
      %c0_32 = arith.constant 0 : index
      %50 = vector.load %arg9[%c0_31, %c0_32] : memref<48x128xbf16, #tpu.memory_space<vmem>>, vector<48x128xbf16>
      tpu.vector_store %arg9[%c0_31, %c0_32], %49 {strides = array<i32>} : memref<48x128xbf16, #tpu.memory_space<vmem>>, vector<48x128xbf16>,
    } else {
    }
    return
  }
  func.func @transform_0(%arg0: i32, %arg1: i32) -> (i32, i32) {
    %c0_i32 = arith.constant 0 : i32
    %c0_i32_0 = arith.constant 0 : i32
    return %arg0, %c0_i32 : i32, i32
  }
  func.func @transform_1(%arg0: i32, %arg1: i32) -> (i32, i32) {
    %c0_i32 = arith.constant 0 : i32
    %c0_i32_0 = arith.constant 0 : i32
    return %c0_i32, %arg1 : i32, i32
  }
  func.func @transform_2(%arg0: i32, %arg1: i32) -> (i32, i32) {
    %c0_i32 = arith.constant 0 : i32
    %c0_i32_0 = arith.constant 0 : i32
    return %c0_i32, %arg1 : i32, i32
  }
  func.func @transform_3(%arg0: i32, %arg1: i32) -> (i32, i32) {
    %c0_i32 = arith.constant 0 : i32
    %c0_i32_0 = arith.constant 0 : i32
    return %arg1, %c0_i32 : i32, i32
  }
  func.func @transform_4(%arg0: i32, %arg1: i32) -> (i32, i32) {
    %c0_i32 = arith.constant 0 : i32
    %c0_i32_0 = arith.constant 0 : i32
    %c0_i32_1 = arith.constant 0 : i32
    return %c0_i32, %c0_i32_0 : i32, i32
  }
  func.func @transform_5(%arg0: i32, %arg1: i32) -> (i32, i32) {
    %c0_i32 = arith.constant 0 : i32
    %c0_i32_0 = arith.constant 0 : i32
    %c0_i32_1 = arith.constant 0 : i32
    return %c0_i32, %c0_i32_0 : i32, i32
  }
  func.func @transform_6(%arg0: i32, %arg1: i32) -> (i32, i32) {
    %c0_i32 = arith.constant 0 : i32
    %c0_i32_0 = arith.constant 0 : i32
    %c0_i32_1 = arith.constant 0 : i32
    return %c0_i32, %c0_i32_0 : i32, i32
  }
  func.func @transform_7(%arg0: i32, %arg1: i32) -> (i32, i32) {
    %c0_i32 = arith.constant 0 : i32
    %c0_i32_0 = arith.constant 0 : i32
    return %arg0, %c0_i32 : i32, i32
  }
}

module attributes {stable_mosaic.version = 11 : i64} {
  func.func @_layernorm_kernel(%arg0: i32, %arg1: memref<48x128xbf16, #tpu.memory_space<vmem>>, %arg2: memref<1x128xf32, #tpu.memory_space<vmem>>, %arg3: memref<1x128xf32, #tpu.memory_space<vmem>>, %arg4: memref<48x128xbf16, #tpu.memory_space<vmem>>) attributes {dimension_semantics = [#tpu.dimension_semantics<parallel>], iteration_bounds = array<i64: 1>, scalar_prefetch = 0 : i64, scratch_operands = 0 : i64, tpu.core_type = #tpu.core_type<tc>, window_params = [{transform_indices = @transform_0, window_bounds = array<i64: 48, 128>}, {pipeline_mode = #tpu.pipeline_mode<synchronous>, transform_indices = @transform_1, window_bounds = array<i64: 1, 128>}, {pipeline_mode = #tpu.pipeline_mode<synchronous>, transform_indices = @transform_2, window_bounds = array<i64: 1, 128>}, {transform_indices = @transform_3, window_bounds = array<i64: 48, 128>}]} {
    %c0 = arith.constant 0 : index
    %c0_0 = arith.constant 0 : index
    %0 = vector.load %arg1[%c0, %c0_0] : memref<48x128xbf16, #tpu.memory_space<vmem>>, vector<48x128xbf16>
    %1 = arith.extf %0 : vector<48x128xbf16> to vector<48x128xf32>
    %c0_1 = arith.constant 0 : index
    %c0_2 = arith.constant 0 : index
    %2 = vector.load %arg2[%c0_1, %c0_2] : memref<1x128xf32, #tpu.memory_space<vmem>>, vector<1x128xf32>
    %c0_3 = arith.constant 0 : index
    %c0_4 = arith.constant 0 : index
    %3 = vector.load %arg3[%c0_3, %c0_4] : memref<1x128xf32, #tpu.memory_space<vmem>>, vector<1x128xf32>
    %cst = arith.constant dense<0.000000e+00> : vector<48xf32>
    %4 = vector.multi_reduction <add>, %1, %cst [1] : vector<48x128xf32> to vector<48xf32>
    %5 = vector.shape_cast %4 : vector<48xf32> to vector<48x1xf32>
    %cst_5 = arith.constant 1.280000e+02 : f32
    %6 = vector.broadcast %cst_5 : f32 to vector<48x1xf32>
    %7 = arith.divf %5, %6 : vector<48x1xf32>
    %8 = vector.broadcast %7 : vector<48x1xf32> to vector<48x128xf32>
    %9 = arith.subf %1, %8 : vector<48x128xf32>
    %10 = arith.mulf %9, %9 : vector<48x128xf32>
    %cst_6 = arith.constant dense<0.000000e+00> : vector<48xf32>
    %11 = vector.multi_reduction <add>, %10, %cst_6 [1] : vector<48x128xf32> to vector<48xf32>
    %12 = vector.shape_cast %11 : vector<48xf32> to vector<48x1xf32>
    %cst_7 = arith.constant 1.280000e+02 : f32
    %13 = vector.broadcast %cst_7 : f32 to vector<48x1xf32>
    %14 = arith.divf %12, %13 : vector<48x1xf32>
    %cst_8 = arith.constant 9.99999974E-6 : f32
    %15 = vector.broadcast %cst_8 : f32 to vector<48x1xf32>
    %16 = arith.addf %14, %15 : vector<48x1xf32>
    %17 = math.rsqrt %16 : vector<48x1xf32>
    %18 = vector.broadcast %17 : vector<48x1xf32> to vector<48x128xf32>
    %19 = arith.mulf %9, %18 : vector<48x128xf32>
    %20 = vector.broadcast %2 : vector<1x128xf32> to vector<48x128xf32>
    %21 = arith.mulf %19, %20 : vector<48x128xf32>
    %22 = vector.broadcast %3 : vector<1x128xf32> to vector<48x128xf32>
    %23 = arith.addf %21, %22 : vector<48x128xf32>
    %24 = arith.truncf %23 : vector<48x128xf32> to vector<48x128xbf16>
    %c0_9 = arith.constant 0 : index
    %c0_10 = arith.constant 0 : index
    %25 = vector.load %arg4[%c0_9, %c0_10] : memref<48x128xbf16, #tpu.memory_space<vmem>>, vector<48x128xbf16>
    tpu.vector_store %arg4[%c0_9, %c0_10], %24 {strides = array<i32>} : memref<48x128xbf16, #tpu.memory_space<vmem>>, vector<48x128xbf16>,
    return
  }
  func.func @transform_0(%arg0: i32) -> (i32, i32) {
    %c0_i32 = arith.constant 0 : i32
    %c0_i32_0 = arith.constant 0 : i32
    return %arg0, %c0_i32 : i32, i32
  }
  func.func @transform_1(%arg0: i32) -> (i32, i32) {
    %c0_i32 = arith.constant 0 : i32
    %c0_i32_0 = arith.constant 0 : i32
    %c0_i32_1 = arith.constant 0 : i32
    return %c0_i32, %c0_i32_0 : i32, i32
  }
  func.func @transform_2(%arg0: i32) -> (i32, i32) {
    %c0_i32 = arith.constant 0 : i32
    %c0_i32_0 = arith.constant 0 : i32
    %c0_i32_1 = arith.constant 0 : i32
    return %c0_i32, %c0_i32_0 : i32, i32
  }
  func.func @transform_3(%arg0: i32) -> (i32, i32) {
    %c0_i32 = arith.constant 0 : i32
    %c0_i32_0 = arith.constant 0 : i32
    return %arg0, %c0_i32 : i32, i32
  }
}

module attributes {stable_mosaic.version = 11 : i64} {
  func.func @_head_kernel(%arg0: i32, %arg1: memref<2x128xbf16, #tpu.memory_space<vmem>>, %arg2: memref<1x128xf32, #tpu.memory_space<vmem>>, %arg3: memref<1x128xf32, #tpu.memory_space<vmem>>, %arg4: memref<128x10xbf16, #tpu.memory_space<vmem>>, %arg5: memref<1x10xf32, #tpu.memory_space<vmem>>, %arg6: memref<2x10xf32, #tpu.memory_space<vmem>>) attributes {dimension_semantics = [#tpu.dimension_semantics<arbitrary>], iteration_bounds = array<i64: 1>, scalar_prefetch = 0 : i64, scratch_operands = 0 : i64, tpu.core_type = #tpu.core_type<tc>, window_params = [{pipeline_mode = #tpu.pipeline_mode<synchronous>, transform_indices = @transform_0, window_bounds = array<i64: 2, 128>}, {pipeline_mode = #tpu.pipeline_mode<synchronous>, transform_indices = @transform_1, window_bounds = array<i64: 1, 128>}, {pipeline_mode = #tpu.pipeline_mode<synchronous>, transform_indices = @transform_2, window_bounds = array<i64: 1, 128>}, {pipeline_mode = #tpu.pipeline_mode<synchronous>, transform_indices = @transform_3, window_bounds = array<i64: 128, 10>}, {pipeline_mode = #tpu.pipeline_mode<synchronous>, transform_indices = @transform_4, window_bounds = array<i64: 1, 10>}, {pipeline_mode = #tpu.pipeline_mode<synchronous>, transform_indices = @transform_5, window_bounds = array<i64: 2, 10>}]} {
    %c0 = arith.constant 0 : index
    %c0_0 = arith.constant 0 : index
    %0 = vector.load %arg1[%c0, %c0_0] : memref<2x128xbf16, #tpu.memory_space<vmem>>, vector<2x128xbf16>
    %1 = arith.extf %0 : vector<2x128xbf16> to vector<2x128xf32>
    %c0_1 = arith.constant 0 : index
    %c0_2 = arith.constant 0 : index
    %2 = vector.load %arg2[%c0_1, %c0_2] : memref<1x128xf32, #tpu.memory_space<vmem>>, vector<1x128xf32>
    %c0_3 = arith.constant 0 : index
    %c0_4 = arith.constant 0 : index
    %3 = vector.load %arg3[%c0_3, %c0_4] : memref<1x128xf32, #tpu.memory_space<vmem>>, vector<1x128xf32>
    %cst = arith.constant dense<0.000000e+00> : vector<2xf32>
    %4 = vector.multi_reduction <add>, %1, %cst [1] : vector<2x128xf32> to vector<2xf32>
    %5 = vector.shape_cast %4 : vector<2xf32> to vector<2x1xf32>
    %cst_5 = arith.constant 1.280000e+02 : f32
    %6 = vector.broadcast %cst_5 : f32 to vector<2x1xf32>
    %7 = arith.divf %5, %6 : vector<2x1xf32>
    %8 = vector.broadcast %7 : vector<2x1xf32> to vector<2x128xf32>
    %9 = arith.subf %1, %8 : vector<2x128xf32>
    %10 = arith.mulf %9, %9 : vector<2x128xf32>
    %cst_6 = arith.constant dense<0.000000e+00> : vector<2xf32>
    %11 = vector.multi_reduction <add>, %10, %cst_6 [1] : vector<2x128xf32> to vector<2xf32>
    %12 = vector.shape_cast %11 : vector<2xf32> to vector<2x1xf32>
    %cst_7 = arith.constant 1.280000e+02 : f32
    %13 = vector.broadcast %cst_7 : f32 to vector<2x1xf32>
    %14 = arith.divf %12, %13 : vector<2x1xf32>
    %cst_8 = arith.constant 9.99999974E-6 : f32
    %15 = vector.broadcast %cst_8 : f32 to vector<2x1xf32>
    %16 = arith.addf %14, %15 : vector<2x1xf32>
    %17 = math.rsqrt %16 : vector<2x1xf32>
    %18 = vector.broadcast %17 : vector<2x1xf32> to vector<2x128xf32>
    %19 = arith.mulf %9, %18 : vector<2x128xf32>
    %20 = vector.broadcast %2 : vector<1x128xf32> to vector<2x128xf32>
    %21 = arith.mulf %19, %20 : vector<2x128xf32>
    %22 = vector.broadcast %3 : vector<1x128xf32> to vector<2x128xf32>
    %23 = arith.addf %21, %22 : vector<2x128xf32>
    %24 = arith.truncf %23 : vector<2x128xf32> to vector<2x128xbf16>
    %c0_9 = arith.constant 0 : index
    %c0_10 = arith.constant 0 : index
    %25 = vector.load %arg4[%c0_9, %c0_10] : memref<128x10xbf16, #tpu.memory_space<vmem>>, vector<128x10xbf16>
    %cst_11 = arith.constant dense<0.000000e+00> : vector<2x10xf32>
    %26 = tpu.matmul %24, %25, %cst_11 {dimension_numbers = #tpu.dot_dimension_numbers<[1], [0], [0], [1], [0, 0, 1, 1], [], []>} : vector<2x128xbf16>, vector<128x10xbf16>, vector<2x10xf32> -> vector<2x10xf32>
    %c0_12 = arith.constant 0 : index
    %c0_13 = arith.constant 0 : index
    %27 = vector.load %arg5[%c0_12, %c0_13] : memref<1x10xf32, #tpu.memory_space<vmem>>, vector<1x10xf32>
    %28 = vector.broadcast %27 : vector<1x10xf32> to vector<2x10xf32>
    %29 = arith.addf %26, %28 : vector<2x10xf32>
    %c0_14 = arith.constant 0 : index
    %c0_15 = arith.constant 0 : index
    %30 = vector.load %arg6[%c0_14, %c0_15] : memref<2x10xf32, #tpu.memory_space<vmem>>, vector<2x10xf32>
    tpu.vector_store %arg6[%c0_14, %c0_15], %29 {strides = array<i32>} : memref<2x10xf32, #tpu.memory_space<vmem>>, vector<2x10xf32>,
    return
  }
  func.func @transform_0(%arg0: i32) -> (i32, i32) {
    %c0_i32 = arith.constant 0 : i32
    %c0_i32_0 = arith.constant 0 : i32
    %c0_i32_1 = arith.constant 0 : i32
    return %c0_i32, %c0_i32_0 : i32, i32
  }
  func.func @transform_1(%arg0: i32) -> (i32, i32) {
    %c0_i32 = arith.constant 0 : i32
    %c0_i32_0 = arith.constant 0 : i32
    %c0_i32_1 = arith.constant 0 : i32
    return %c0_i32, %c0_i32_0 : i32, i32
  }
  func.func @transform_2(%arg0: i32) -> (i32, i32) {
    %c0_i32 = arith.constant 0 : i32
    %c0_i32_0 = arith.constant 0 : i32
    %c0_i32_1 = arith.constant 0 : i32
    return %c0_i32, %c0_i32_0 : i32, i32
  }
  func.func @transform_3(%arg0: i32) -> (i32, i32) {
    %c0_i32 = arith.constant 0 : i32
    %c0_i32_0 = arith.constant 0 : i32
    %c0_i32_1 = arith.constant 0 : i32
    return %c0_i32, %c0_i32_0 : i32, i32
  }
  func.func @transform_4(%arg0: i32) -> (i32, i32) {
    %c0_i32 = arith.constant 0 : i32
    %c0_i32_0 = arith.constant 0 : i32
    %c0_i32_1 = arith.constant 0 : i32
    return %c0_i32, %c0_i32_0 : i32, i32
  }
  func.func @transform_5(%arg0: i32) -> (i32, i32) {
    %c0_i32 = arith.constant 0 : i32
    %c0_i32_0 = arith.constant 0 : i32
    %c0_i32_1 = arith.constant 0 : i32
    return %c0_i32, %c0_i32_0 : i32, i32
  }
}

module attributes {stable_mosaic.version = 11 : i64} {
  func.func @_cross_attn_kernel(%arg0: i32, %arg1: i32, %arg2: memref<1x24x128xbf16, #tpu.memory_space<vmem>>, %arg3: memref<1x24x128xbf16, #tpu.memory_space<vmem>>, %arg4: memref<1x128x32xbf16, #tpu.memory_space<vmem>>, %arg5: memref<1x1x32xf32, #tpu.memory_space<vmem>>, %arg6: memref<1x2x128x32xbf16, #tpu.memory_space<vmem>>, %arg7: memref<1x2x1x32xf32, #tpu.memory_space<vmem>>, %arg8: memref<1x32x128xbf16, #tpu.memory_space<vmem>>, %arg9: memref<1x128xf32, #tpu.memory_space<vmem>>, %arg10: memref<1x128xf32, #tpu.memory_space<vmem>>, %arg11: memref<1x128xf32, #tpu.memory_space<vmem>>, %arg12: memref<1x24x128xbf16, #tpu.memory_space<vmem>>, %arg13: memref<24x128xf32, #tpu.memory_space<vmem>>) attributes {dimension_semantics = [#tpu.dimension_semantics<parallel>, #tpu.dimension_semantics<arbitrary>], iteration_bounds = array<i64: 2, 4>, scalar_prefetch = 0 : i64, scratch_operands = 1 : i64, tpu.core_type = #tpu.core_type<tc>, window_params = [{transform_indices = @transform_0, window_bounds = array<i64: 1, 24, 128>}, {transform_indices = @transform_1, window_bounds = array<i64: 1, 24, 128>}, {transform_indices = @transform_2, window_bounds = array<i64: 1, 128, 32>}, {transform_indices = @transform_3, window_bounds = array<i64: 1, 1, 32>}, {transform_indices = @transform_4, window_bounds = array<i64: 1, 2, 128, 32>}, {transform_indices = @transform_5, window_bounds = array<i64: 1, 2, 1, 32>}, {transform_indices = @transform_6, window_bounds = array<i64: 1, 32, 128>}, {pipeline_mode = #tpu.pipeline_mode<synchronous>, transform_indices = @transform_7, window_bounds = array<i64: 1, 128>}, {pipeline_mode = #tpu.pipeline_mode<synchronous>, transform_indices = @transform_8, window_bounds = array<i64: 1, 128>}, {pipeline_mode = #tpu.pipeline_mode<synchronous>, transform_indices = @transform_9, window_bounds = array<i64: 1, 128>}, {transform_indices = @transform_10, window_bounds = array<i64: 1, 24, 128>}]} {
    %c0_i32 = arith.constant 0 : i32
    %0 = arith.cmpi eq, %arg1, %c0_i32 : i32
    %1 = arith.extui %0 : i1 to i32
    %c0_i32_0 = arith.constant 0 : i32
    %2 = arith.cmpi ne, %1, %c0_i32_0 : i32
    scf.if %2 {
      %cst_44 = arith.constant 0.000000e+00 : f32
      %61 = vector.broadcast %cst_44 : f32 to vector<24x128xf32>
      %c0_45 = arith.constant 0 : index
      %c0_46 = arith.constant 0 : index
      %62 = vector.load %arg13[%c0_45, %c0_46] : memref<24x128xf32, #tpu.memory_space<vmem>>, vector<24x128xf32>
      tpu.vector_store %arg13[%c0_45, %c0_46], %61 {strides = array<i32>} : memref<24x128xf32, #tpu.memory_space<vmem>>, vector<24x128xf32>,
    } else {
    }
    %c0 = arith.constant 0 : index
    %c0_1 = arith.constant 0 : index
    %c0_2 = arith.constant 0 : index
    %3 = vector.load %arg2[%c0, %c0_1, %c0_2] : memref<1x24x128xbf16, #tpu.memory_space<vmem>>, vector<1x24x128xbf16>
    %4 = vector.shape_cast %3 : vector<1x24x128xbf16> to vector<24x128xbf16>
    %c0_3 = arith.constant 0 : index
    %c0_4 = arith.constant 0 : index
    %c0_5 = arith.constant 0 : index
    %5 = vector.load %arg3[%c0_3, %c0_4, %c0_5] : memref<1x24x128xbf16, #tpu.memory_space<vmem>>, vector<1x24x128xbf16>
    %6 = vector.shape_cast %5 : vector<1x24x128xbf16> to vector<24x128xbf16>
    %c0_6 = arith.constant 0 : index
    %c0_7 = arith.constant 0 : index
    %c0_8 = arith.constant 0 : index
    %7 = vector.load %arg4[%c0_6, %c0_7, %c0_8] : memref<1x128x32xbf16, #tpu.memory_space<vmem>>, vector<1x128x32xbf16>
    %8 = vector.shape_cast %7 : vector<1x128x32xbf16> to vector<128x32xbf16>
    %cst = arith.constant dense<0.000000e+00> : vector<24x32xf32>
    %9 = tpu.matmul %4, %8, %cst {dimension_numbers = #tpu.dot_dimension_numbers<[1], [0], [0], [1], [0, 0, 1, 1], [], []>} : vector<24x128xbf16>, vector<128x32xbf16>, vector<24x32xf32> -> vector<24x32xf32>
    %c0_9 = arith.constant 0 : index
    %c0_10 = arith.constant 0 : index
    %c0_11 = arith.constant 0 : index
    %10 = vector.load %arg5[%c0_9, %c0_10, %c0_11] : memref<1x1x32xf32, #tpu.memory_space<vmem>>, vector<1x1x32xf32>
    %11 = vector.shape_cast %10 : vector<1x1x32xf32> to vector<1x32xf32>
    %12 = vector.broadcast %11 : vector<1x32xf32> to vector<24x32xf32>
    %13 = arith.addf %9, %12 : vector<24x32xf32>
    %c0_12 = arith.constant 0 : index
    %c0_13 = arith.constant 0 : index
    %c0_14 = arith.constant 0 : index
    %c0_15 = arith.constant 0 : index
    %14 = vector.load %arg6[%c0_12, %c0_13, %c0_14, %c0_15] : memref<1x2x128x32xbf16, #tpu.memory_space<vmem>>, vector<1x1x128x32xbf16>
    %15 = vector.shape_cast %14 : vector<1x1x128x32xbf16> to vector<128x32xbf16>
    %cst_16 = arith.constant dense<0.000000e+00> : vector<24x32xf32>
    %16 = tpu.matmul %6, %15, %cst_16 {dimension_numbers = #tpu.dot_dimension_numbers<[1], [0], [0], [1], [0, 0, 1, 1], [], []>} : vector<24x128xbf16>, vector<128x32xbf16>, vector<24x32xf32> -> vector<24x32xf32>
    %c0_17 = arith.constant 0 : index
    %c0_18 = arith.constant 0 : index
    %c0_19 = arith.constant 0 : index
    %c0_20 = arith.constant 0 : index
    %17 = vector.load %arg7[%c0_17, %c0_18, %c0_19, %c0_20] : memref<1x2x1x32xf32, #tpu.memory_space<vmem>>, vector<1x1x1x32xf32>
    %18 = vector.shape_cast %17 : vector<1x1x1x32xf32> to vector<1x32xf32>
    %19 = vector.broadcast %18 : vector<1x32xf32> to vector<24x32xf32>
    %20 = arith.addf %16, %19 : vector<24x32xf32>
    %c0_21 = arith.constant 0 : index
    %c1 = arith.constant 1 : index
    %c0_22 = arith.constant 0 : index
    %c0_23 = arith.constant 0 : index
    %21 = vector.load %arg6[%c0_21, %c1, %c0_22, %c0_23] : memref<1x2x128x32xbf16, #tpu.memory_space<vmem>>, vector<1x1x128x32xbf16>
    %22 = vector.shape_cast %21 : vector<1x1x128x32xbf16> to vector<128x32xbf16>
    %cst_24 = arith.constant dense<0.000000e+00> : vector<24x32xf32>
    %23 = tpu.matmul %6, %22, %cst_24 {dimension_numbers = #tpu.dot_dimension_numbers<[1], [0], [0], [1], [0, 0, 1, 1], [], []>} : vector<24x128xbf16>, vector<128x32xbf16>, vector<24x32xf32> -> vector<24x32xf32>
    %c0_25 = arith.constant 0 : index
    %c1_26 = arith.constant 1 : index
    %c0_27 = arith.constant 0 : index
    %c0_28 = arith.constant 0 : index
    %24 = vector.load %arg7[%c0_25, %c1_26, %c0_27, %c0_28] : memref<1x2x1x32xf32, #tpu.memory_space<vmem>>, vector<1x1x1x32xf32>
    %25 = vector.shape_cast %24 : vector<1x1x1x32xf32> to vector<1x32xf32>
    %26 = vector.broadcast %25 : vector<1x32xf32> to vector<24x32xf32>
    %27 = arith.addf %23, %26 : vector<24x32xf32>
    %28 = arith.truncf %13 : vector<24x32xf32> to vector<24x32xbf16>
    %29 = arith.truncf %20 : vector<24x32xf32> to vector<24x32xbf16>
    %cst_29 = arith.constant dense<0.000000e+00> : vector<24x24xf32>
    %30 = tpu.matmul %28, %29, %cst_29 {dimension_numbers = #tpu.dot_dimension_numbers<[1], [1], [0], [0], [0, 0, 1, 0], [], []>} : vector<24x32xbf16>, vector<24x32xbf16>, vector<24x24xf32> -> vector<24x24xf32>
    %cst_30 = arith.constant 0.176776692 : f32
    %31 = vector.broadcast %cst_30 : f32 to vector<24x24xf32>
    %32 = arith.mulf %30, %31 : vector<24x24xf32>
    %33 = tpu.iota {dimensions = array<i32: 1>} : vector<24x24xi32>
    %c17_i32 = arith.constant 17 : i32
    %34 = vector.broadcast %c17_i32 : i32 to vector<24x24xi32>
    %35 = arith.cmpi slt, %33, %34 : vector<24x24xi32>
    %cst_31 = arith.constant -1.000000e+30 : f32
    %36 = vector.broadcast %cst_31 : f32 to vector<24x24xf32>
    %37 = arith.select %35, %32, %36 : vector<24x24xi1>, vector<24x24xf32>
    %cst_32 = arith.constant dense<0xFF800000> : vector<24xf32>
    %38 = vector.multi_reduction <maximumf>, %37, %cst_32 [1] : vector<24x24xf32> to vector<24xf32>
    %39 = vector.shape_cast %38 : vector<24xf32> to vector<24x1xf32>
    %40 = vector.broadcast %39 : vector<24x1xf32> to vector<24x24xf32>
    %41 = arith.subf %37, %40 : vector<24x24xf32>
    %42 = math.exp %41 : vector<24x24xf32>
    %cst_33 = arith.constant dense<0.000000e+00> : vector<24xf32>
    %43 = vector.multi_reduction <add>, %42, %cst_33 [1] : vector<24x24xf32> to vector<24xf32>
    %44 = vector.shape_cast %43 : vector<24xf32> to vector<24x1xf32>
    %45 = tpu.reciprocal %44 {approx = true} : vector<24x1xf32> -> vector<24x1xf32>
    %46 = vector.broadcast %45 : vector<24x1xf32> to vector<24x24xf32>
    %47 = arith.mulf %42, %46 : vector<24x24xf32>
    %48 = arith.truncf %47 : vector<24x24xf32> to vector<24x24xbf16>
    %49 = arith.truncf %27 : vector<24x32xf32> to vector<24x32xbf16>
    %cst_34 = arith.constant dense<0.000000e+00> : vector<24x32xf32>
    %50 = tpu.matmul %48, %49, %cst_34 {dimension_numbers = #tpu.dot_dimension_numbers<[1], [0], [0], [1], [0, 0, 1, 1], [], []>} : vector<24x24xbf16>, vector<24x32xbf16>, vector<24x32xf32> -> vector<24x32xf32>
    %c0_35 = arith.constant 0 : index
    %c0_36 = arith.constant 0 : index
    %51 = vector.load %arg13[%c0_35, %c0_36] : memref<24x128xf32, #tpu.memory_space<vmem>>, vector<24x128xf32>
    %52 = arith.truncf %50 : vector<24x32xf32> to vector<24x32xbf16>
    %c0_37 = arith.constant 0 : index
    %c0_38 = arith.constant 0 : index
    %c0_39 = arith.constant 0 : index
    %53 = vector.load %arg8[%c0_37, %c0_38, %c0_39] : memref<1x32x128xbf16, #tpu.memory_space<vmem>>, vector<1x32x128xbf16>
    %54 = vector.shape_cast %53 : vector<1x32x128xbf16> to vector<32x128xbf16>
    %cst_40 = arith.constant dense<0.000000e+00> : vector<24x128xf32>
    %55 = tpu.matmul %52, %54, %cst_40 {dimension_numbers = #tpu.dot_dimension_numbers<[1], [0], [0], [1], [0, 0, 1, 1], [], []>} : vector<24x32xbf16>, vector<32x128xbf16>, vector<24x128xf32> -> vector<24x128xf32>
    %56 = arith.addf %51, %55 : vector<24x128xf32>
    %c0_41 = arith.constant 0 : index
    %c0_42 = arith.constant 0 : index
    %57 = vector.load %arg13[%c0_41, %c0_42] : memref<24x128xf32, #tpu.memory_space<vmem>>, vector<24x128xf32>
    tpu.vector_store %arg13[%c0_41, %c0_42], %56 {strides = array<i32>} : memref<24x128xf32, #tpu.memory_space<vmem>>, vector<24x128xf32>,
    %c3_i32 = arith.constant 3 : i32
    %58 = arith.cmpi eq, %arg1, %c3_i32 : i32
    %59 = arith.extui %58 : i1 to i32
    %c0_i32_43 = arith.constant 0 : i32
    %60 = arith.cmpi ne, %59, %c0_i32_43 : i32
    scf.if %60 {
      %c0_44 = arith.constant 0 : index
      %c0_45 = arith.constant 0 : index
      %61 = vector.load %arg13[%c0_44, %c0_45] : memref<24x128xf32, #tpu.memory_space<vmem>>, vector<24x128xf32>
      %c0_46 = arith.constant 0 : index
      %c0_47 = arith.constant 0 : index
      %62 = vector.load %arg9[%c0_46, %c0_47] : memref<1x128xf32, #tpu.memory_space<vmem>>, vector<1x128xf32>
      %63 = vector.broadcast %62 : vector<1x128xf32> to vector<24x128xf32>
      %64 = arith.addf %61, %63 : vector<24x128xf32>
      %65 = arith.extf %4 : vector<24x128xbf16> to vector<24x128xf32>
      %66 = arith.addf %64, %65 : vector<24x128xf32>
      %c0_48 = arith.constant 0 : index
      %c0_49 = arith.constant 0 : index
      %67 = vector.load %arg10[%c0_48, %c0_49] : memref<1x128xf32, #tpu.memory_space<vmem>>, vector<1x128xf32>
      %c0_50 = arith.constant 0 : index
      %c0_51 = arith.constant 0 : index
      %68 = vector.load %arg11[%c0_50, %c0_51] : memref<1x128xf32, #tpu.memory_space<vmem>>, vector<1x128xf32>
      %cst_52 = arith.constant dense<0.000000e+00> : vector<24xf32>
      %69 = vector.multi_reduction <add>, %66, %cst_52 [1] : vector<24x128xf32> to vector<24xf32>
      %70 = vector.shape_cast %69 : vector<24xf32> to vector<24x1xf32>
      %cst_53 = arith.constant 1.280000e+02 : f32
      %71 = vector.broadcast %cst_53 : f32 to vector<24x1xf32>
      %72 = arith.divf %70, %71 : vector<24x1xf32>
      %73 = vector.broadcast %72 : vector<24x1xf32> to vector<24x128xf32>
      %74 = arith.subf %66, %73 : vector<24x128xf32>
      %75 = arith.mulf %74, %74 : vector<24x128xf32>
      %cst_54 = arith.constant dense<0.000000e+00> : vector<24xf32>
      %76 = vector.multi_reduction <add>, %75, %cst_54 [1] : vector<24x128xf32> to vector<24xf32>
      %77 = vector.shape_cast %76 : vector<24xf32> to vector<24x1xf32>
      %cst_55 = arith.constant 1.280000e+02 : f32
      %78 = vector.broadcast %cst_55 : f32 to vector<24x1xf32>
      %79 = arith.divf %77, %78 : vector<24x1xf32>
      %cst_56 = arith.constant 9.99999974E-6 : f32
      %80 = vector.broadcast %cst_56 : f32 to vector<24x1xf32>
      %81 = arith.addf %79, %80 : vector<24x1xf32>
      %82 = math.rsqrt %81 : vector<24x1xf32>
      %83 = vector.broadcast %82 : vector<24x1xf32> to vector<24x128xf32>
      %84 = arith.mulf %74, %83 : vector<24x128xf32>
      %85 = vector.broadcast %67 : vector<1x128xf32> to vector<24x128xf32>
      %86 = arith.mulf %84, %85 : vector<24x128xf32>
      %87 = vector.broadcast %68 : vector<1x128xf32> to vector<24x128xf32>
      %88 = arith.addf %86, %87 : vector<24x128xf32>
      %89 = arith.truncf %88 : vector<24x128xf32> to vector<24x128xbf16>
      %c0_57 = arith.constant 0 : index
      %c0_58 = arith.constant 0 : index
      %c0_59 = arith.constant 0 : index
      %90 = vector.load %arg12[%c0_57, %c0_58, %c0_59] : memref<1x24x128xbf16, #tpu.memory_space<vmem>>, vector<1x24x128xbf16>
      %91 = vector.shape_cast %90 : vector<1x24x128xbf16> to vector<24x128xbf16>
      %92 = vector.shape_cast %89 : vector<24x128xbf16> to vector<1x24x128xbf16>
      tpu.vector_store %arg12[%c0_57, %c0_58, %c0_59], %92 {strides = array<i32>} : memref<1x24x128xbf16, #tpu.memory_space<vmem>>, vector<1x24x128xbf16>,
    } else {
    }
    return
  }
  func.func @transform_0(%arg0: i32, %arg1: i32) -> (i32, i32, i32) {
    %c0_i32 = arith.constant 0 : i32
    %c0_i32_0 = arith.constant 0 : i32
    %c0_i32_1 = arith.constant 0 : i32
    return %arg0, %c0_i32, %c0_i32_0 : i32, i32, i32
  }
  func.func @transform_1(%arg0: i32, %arg1: i32) -> (i32, i32, i32) {
    %c0_i32 = arith.constant 0 : i32
    %c0_i32_0 = arith.constant 0 : i32
    %c0_i32_1 = arith.constant 0 : i32
    return %arg0, %c0_i32, %c0_i32_0 : i32, i32, i32
  }
  func.func @transform_2(%arg0: i32, %arg1: i32) -> (i32, i32, i32) {
    %c0_i32 = arith.constant 0 : i32
    %c0_i32_0 = arith.constant 0 : i32
    %c0_i32_1 = arith.constant 0 : i32
    return %arg1, %c0_i32, %c0_i32_0 : i32, i32, i32
  }
  func.func @transform_3(%arg0: i32, %arg1: i32) -> (i32, i32, i32) {
    %c0_i32 = arith.constant 0 : i32
    %c0_i32_0 = arith.constant 0 : i32
    %c0_i32_1 = arith.constant 0 : i32
    return %arg1, %c0_i32, %c0_i32_0 : i32, i32, i32
  }
  func.func @transform_4(%arg0: i32, %arg1: i32) -> (i32, i32, i32, i32) {
    %c0_i32 = arith.constant 0 : i32
    %c0_i32_0 = arith.constant 0 : i32
    %c0_i32_1 = arith.constant 0 : i32
    %c0_i32_2 = arith.constant 0 : i32
    return %arg1, %c0_i32, %c0_i32_0, %c0_i32_1 : i32, i32, i32, i32
  }
  func.func @transform_5(%arg0: i32, %arg1: i32) -> (i32, i32, i32, i32) {
    %c0_i32 = arith.constant 0 : i32
    %c0_i32_0 = arith.constant 0 : i32
    %c0_i32_1 = arith.constant 0 : i32
    %c0_i32_2 = arith.constant 0 : i32
    return %arg1, %c0_i32, %c0_i32_0, %c0_i32_1 : i32, i32, i32, i32
  }
  func.func @transform_6(%arg0: i32, %arg1: i32) -> (i32, i32, i32) {
    %c0_i32 = arith.constant 0 : i32
    %c0_i32_0 = arith.constant 0 : i32
    %c0_i32_1 = arith.constant 0 : i32
    return %arg1, %c0_i32, %c0_i32_0 : i32, i32, i32
  }
  func.func @transform_7(%arg0: i32, %arg1: i32) -> (i32, i32) {
    %c0_i32 = arith.constant 0 : i32
    %c0_i32_0 = arith.constant 0 : i32
    %c0_i32_1 = arith.constant 0 : i32
    return %c0_i32, %c0_i32_0 : i32, i32
  }
  func.func @transform_8(%arg0: i32, %arg1: i32) -> (i32, i32) {
    %c0_i32 = arith.constant 0 : i32
    %c0_i32_0 = arith.constant 0 : i32
    %c0_i32_1 = arith.constant 0 : i32
    return %c0_i32, %c0_i32_0 : i32, i32
  }
  func.func @transform_9(%arg0: i32, %arg1: i32) -> (i32, i32) {
    %c0_i32 = arith.constant 0 : i32
    %c0_i32_0 = arith.constant 0 : i32
    %c0_i32_1 = arith.constant 0 : i32
    return %c0_i32, %c0_i32_0 : i32, i32
  }
  func.func @transform_10(%arg0: i32, %arg1: i32) -> (i32, i32, i32) {
    %c0_i32 = arith.constant 0 : i32
    %c0_i32_0 = arith.constant 0 : i32
    %c0_i32_1 = arith.constant 0 : i32
    return %arg0, %c0_i32, %c0_i32_0 : i32, i32, i32
  }
}

</mosaic_0001>

<bundles_post_ra>
// kernel: vit_forward.14
= control target key start
LH: loop header
LB: loop body
LE: loop exit
PB: predicated region body
PF: predicated region fallthrough
CT: control target
= control target key end

     0   :  { %vm65_vm0 = vcmask 523264   ;;  %s198_s1 = inlined_call_operand.vmem [shape: bf16[64,128], index: 1, kind: input, shape index: {}]   ;;  %s199_s2 = inlined_call_operand.vmem [shape: f32[1,128], index: 2, kind: input, shape index: {}]   ;;  %s200_s0 = inlined_call_operand.vmem [shape: bf16[32,64], index: 0, kind: input, shape index: {}]   ;;  %s201_s3 = inlined_call_operand.vmem [shape: bf16[32,128], index: 3, kind: output, shape index: {}]  }
   0x1   :  { %v134_v0 = vld [vmem:[%s198_s1 + $0x18] sm:$0xff]  ;;  %v133_v1 = vld [vmem:[%s198_s1 + $0x10] sm:$0xff]  ;;  %v132_v2 = vld [vmem:[%s198_s1 + $0x8] sm:$0xff] }
   0x2   :  { %76 = vmatpush.bf16.msra.mxu0 %v134_v0  ;;  %146 = vmatpush.bf16.msra.mxu1 %v134_v0  ;;  %v131_v3 = vld [vmem:[%s198_s1] sm:$0xff]  ;;  %v130_v5 = vld [vmem:[%s200_s0 + $0x8] sm:$0xff] }
   0x3   :  { %v129_v4 = vld [vmem:[%s200_s0] sm:$0xff] }
   0x4   :  { %v150_v8 = vld [vmem:[%s199_s2] ss:$0 sm:$0xff] }
   0x6   :  { %77 = vmatpush.bf16.msra.mxu0 %v133_v1  ;;  %147 = vmatpush.bf16.msra.mxu1 %v133_v1 }
   0xa   :  { %78 = vmatpush.bf16.msra.mxu0 %v132_v2  ;;  %148 = vmatpush.bf16.msra.mxu1 %v132_v2 }
   0xe   :  { %79 = vmatpush.bf16.msra.mxu0 %v131_v3  ;;  %149 = vmatpush.bf16.msra.mxu1 %v131_v3 }
  0x11   :  { %127 = vmatmul.msk.bf16.vlgmr.msra.gmra.mxu0 %vm65_vm0, %v129_v4  ;;  %128 = vmatmul.msk.bf16.vlgmr.msra.gmra.mxu1 %vm65_vm0, %v130_v5 }
  0x8e   :  { %v81_v6 = vpop.f32.mrf.mxu0  ;;  %v86_v7 = vpop.f32.mrf.mxu1 }
  0x8f   :  { %v82_v11 = vadd.f32 %v150_v8, %v81_v6  ;;  %v87_v12 = vadd.f32 %v150_v8, %v86_v7 }
  0x96   :  { %v83_v9 = vpop.f32.mrf.mxu0  ;;  %v88_v10 = vpop.f32.mrf.mxu1 }
  0x97   :  { %v84_v13 = vadd.f32 %v150_v8, %v83_v9  ;;  %v89_v14 = vadd.f32 %v150_v8, %v88_v10 }
  0x99   :  { %v138_v15 = vpack.c.bf16 %v84_v13, %v82_v11  ;;  %v143_v16 = vpack.c.bf16 %v89_v14, %v87_v12 }
  0x9b   :  { %139 = vst [vmem:[%s201_s3] sm:$0xff] %v138_v15  }
  0x9c   :  { %145 = vst [vmem:[%s201_s3 + $0x8] sm:$0xff] %v143_v16  }

// kernel: vit_forward.19
= control target key start
LH: loop header
LB: loop body
LE: loop exit
PB: predicated region body
PF: predicated region fallthrough
CT: control target
= control target key end

     0   :  { %v237_v9 = vmov 128.0   ;;  %s331_s0 = inlined_call_operand.vmem [shape: bf16[48,128], index: 0, kind: input, shape index: {}]   ;;  %s332_s1 = inlined_call_operand.vmem [shape: f32[1,128], index: 1, kind: input, shape index: {}]   ;;  %s333_s2 = inlined_call_operand.vmem [shape: f32[1,128], index: 2, kind: input, shape index: {}]   ;;  %s334_s3 = inlined_call_operand.vmem [shape: bf16[48,128], index: 3, kind: output, shape index: {}]  }
   0x1   :  { %v217_v0 = vld [vmem:[%s331_s0 + $0x10] sm:$0xff]   ;;  %v216_v1 = vld [vmem:[%s331_s0 + $0x8] sm:$0xff]   ;;  %v190_v2 = vld [vmem:[%s331_s0] sm:$0xff]   ;;  %223 = vrcp.f32 %v237_v9 }
   0x2   :  { %v199_v3 = vunpack.c.l.bf16 %v217_v0  ;;  %v195_v4 = vunpack.c.l.bf16 %v216_v1  ;;  %v191_v5 = vunpack.c.l.bf16 %v190_v2  ;;  %v200_v6 = vunpack.c.h.bf16 %v217_v0 }
   0x3   :  { %v196_v7 = vunpack.c.h.bf16 %v216_v1  ;;  %v192_v8 = vunpack.c.h.bf16 %v190_v2 }
   0x4   :  { %36 = vadd.xlane.f32.xlu2 %v199_v3  ;;  %32 = vadd.xlane.f32.xlu1 %v195_v4 }
   0x5   :  { %28 = vadd.xlane.f32.xlu0 %v191_v5 }
   0x7   :  { %v224_v10 = vpop.eup %223 }
   0x8   :  { %v41_v11 = vmul.f32 128.0, %v224_v10  ;;  %vm45_vm0 = vweird.f32 %v224_v10 }
   0xa   :  { %v42_v12 = vsub.f32 1.0, %v41_v11 }
   0xc   :  { %38 = vadd.xlane.f32.xlu2 %v200_v6  ;;  %34 = vadd.xlane.f32.xlu1 %v196_v7  ;;  %v43_v13 = vmul.f32 %v224_v10, %v42_v12 }
   0xd   :  { %30 = vadd.xlane.f32.xlu0 %v192_v8 }
   0xe   :  { %v44_v14 = vadd.f32 %v224_v10, %v43_v13 }
  0x10   :  { %v46_v15 = vsel %vm45_vm0, %v224_v10, %v44_v14 }
  0x77   :  { %v37_v16 = vpop.xlane.xlu2 %36  ;;  %v33_v17 = vpop.xlane.xlu1 %32 }
  0x78   :  { %v49_v18 = vmul.f32 %v46_v15, %v33_v17  ;;  %v29_v19 = vpop.xlane.xlu0 %28  ;;  %v51_v36 = vmul.f32 %v46_v15, %v37_v16 }
  0x79   :  { %v47_v20 = vmul.f32 %v46_v15, %v29_v19 }
  0x7a   :  { %v267_v21 = vsub.f32 %v195_v4, %v49_v18  ;;  %v287_v38 = vsub.f32 %v199_v3, %v51_v36 }
  0x7b   :  { %v269_v22 = vsub.f32 %v191_v5, %v47_v20 }
  0x7c   :  { %v61_v23 = vmul.f32 %v267_v21, %v267_v21  ;;  %v63_v39 = vmul.f32 %v287_v38, %v287_v38 }
  0x7d   :  { %v59_v24 = vmul.f32 %v269_v22, %v269_v22 }
  0x7e   :  { %69 = vadd.xlane.f32.xlu2 %v61_v23 }
  0x7f   :  { %65 = vadd.xlane.f32.xlu0 %v59_v24  ;;  %v39_v25 = vpop.xlane.xlu2 %38  ;;  %v35_v26 = vpop.xlane.xlu1 %34  ;;  %v221_v24 = vld [vmem:[%s332_s1] ss:$0 sm:$0xff] }
  0x80   :  { %v52_v27 = vmul.f32 %v46_v15, %v39_v25  ;;  %v50_v28 = vmul.f32 %v46_v15, %v35_v26  ;;  %v31_v29 = vpop.xlane.xlu0 %30 }
  0x81   :  { %v48_v30 = vmul.f32 %v46_v15, %v31_v29 }
  0x82   :  { %v275_v31 = vsub.f32 %v200_v6, %v52_v27  ;;  %v277_v32 = vsub.f32 %v196_v7, %v50_v28 }
  0x83   :  { %v279_v33 = vsub.f32 %v192_v8, %v48_v30 }
  0x84   :  { %v64_v34 = vmul.f32 %v275_v31, %v275_v31  ;;  %v62_v35 = vmul.f32 %v277_v32, %v277_v32 }
  0x85   :  { %v60_v37 = vmul.f32 %v279_v33, %v279_v33 }
  0x86   :  { %75 = vadd.xlane.f32.xlu2 %v64_v34 }
  0x87   :  { %71 = vadd.xlane.f32.xlu0 %v62_v35  ;;  %67 = vadd.xlane.f32.xlu1 %v60_v37 }
  0x8f   :  { %73 = vadd.xlane.f32.xlu1 %v63_v39 }
  0xf1   :  { %v70_v40 = vpop.xlane.xlu2 %69 }
  0xf2   :  { %v79_v41 = vmul.f32 %v70_v40, %v46_v15  ;;  %v66_v42 = vpop.xlane.xlu0 %65 }
  0xf3   :  { %v77_v43 = vmul.f32 %v66_v42, %v46_v15 }
  0xf4   :  { %v85_v44 = vadd.f32 1e-05, %v79_v41 }
  0xf5   :  { %v83_v45 = vadd.f32 1e-05, %v77_v43 }
  0xf6   :  { %225 = vrsqrt.f32 %v85_v44  ;;  %vm115_vm1 = vweird.f32 %v85_v44 }
  0xf7   :  { %227 = vrsqrt.f32 %v83_v45  ;;  %vm95_vm4 = vweird.f32 %v83_v45 }
  0xf9   :  { %v76_v46 = vpop.xlane.xlu2 %75 }
  0xfa   :  { %v82_v47 = vmul.f32 %v76_v46, %v46_v15  ;;  %v68_v48 = vpop.xlane.xlu1 %67  ;;  %v72_v49 = vpop.xlane.xlu0 %71 }
  0xfb   :  { %v78_v50 = vmul.f32 %v68_v48, %v46_v15  ;;  %v80_v51 = vmul.f32 %v72_v49, %v46_v15 }
  0xfc   :  { %v226_v52 = vpop.eup %225  ;;  %v291_v53 = vadd.f32 1e-05, %v82_v47 }
  0xfd   :  { %v228_v54 = vpop.eup %227  ;;  %v110_v55 = vmul.f32 %v226_v52, %v85_v44  ;;  %v84_v56 = vadd.f32 1e-05, %v78_v50  ;;  %v86_v57 = vadd.f32 1e-05, %v80_v51  ;;  %vm116_vm3 = vweird.f32 %v226_v52 }
  0xfe   :  { %v90_v58 = vmul.f32 %v228_v54, %v83_v45  ;;  %229 = vrsqrt.f32 %v291_v53  ;;  %vm96_vm2 = vweird.f32 %v228_v54  ;;  %vm117_vm6 = vmor %vm115_vm1, %vm116_vm3  ;;  %vm145_vm10 = vweird.f32 %v291_v53 }
  0xff   :  { %v111_v59 = vmul.f32 %v226_v52, %v110_v55  ;;  %231 = vrsqrt.f32 %v84_v56  ;;  %vm97_vm5 = vmor %vm95_vm4, %vm96_vm2  ;;  %vm125_vm8 = vweird.f32 %v86_v57  ;;  %vm105_vm11 = vweird.f32 %v84_v56 }
 0x100   :  { %v91_v60 = vmul.f32 %v228_v54, %v90_v58  ;;  %233 = vrsqrt.f32 %v86_v57 }
 0x101   :  { %v112_v61 = vmul.f32 0.5, %v111_v59 }
 0x102   :  { %v92_v62 = vmul.f32 0.5, %v91_v60  ;;  %v74_v63 = vpop.xlane.xlu1 %73 }
 0x103   :  { %v113_v0 = vsub.f32 1.5, %v112_v61  ;;  %v81_v1 = vmul.f32 %v74_v63, %v46_v15 }
 0x104   :  { %v294_v2 = vpop.eup %229  ;;  %v93_v3 = vsub.f32 1.5, %v92_v62 }
 0x105   :  { %v232_v4 = vpop.eup %231  ;;  %v140_v5 = vmul.f32 %v294_v2, %v291_v53  ;;  %v298_v6 = vadd.f32 1e-05, %v81_v1  ;;  %v114_v10 = vmul.f32 %v226_v52, %v113_v0  ;;  %vm146_vm12 = vweird.f32 %v294_v2 }
 0x106   :  { %v234_v7 = vpop.eup %233  ;;  %v94_v8 = vmul.f32 %v228_v54, %v93_v3  ;;  %v100_v9 = vmul.f32 %v232_v4, %v84_v56  ;;  %vm106_vm7 = vweird.f32 %v232_v4  ;;  %vm147_vm15 = vmor %vm145_vm10, %vm146_vm12 }
 0x107   :  { %v141_v11 = vmul.f32 %v294_v2, %v140_v5  ;;  %v120_v12 = vmul.f32 %v234_v7, %v86_v57  ;;  %235 = vrsqrt.f32 %v298_v6  ;;  %v118_v18 = vsel %vm117_vm6, %v226_v52, %v114_v10  ;;  %vm107_vm13 = vmor %vm105_vm11, %vm106_vm7 }
 0x108   :  { %v101_v13 = vmul.f32 %v232_v4, %v100_v9  ;;  %v98_v16 = vsel %vm97_vm5, %v228_v54, %v94_v8  ;;  %vm126_vm9 = vweird.f32 %v234_v7  ;;  %v151_v28 = vmul.f32 %v118_v18, %v267_v21 }
 0x109   :  { %v142_v14 = vmul.f32 0.5, %v141_v11  ;;  %v121_v15 = vmul.f32 %v234_v7, %v120_v12  ;;  %v149_v25 = vmul.f32 %v98_v16, %v269_v22  ;;  %vm127_vm14 = vmor %vm125_vm8, %vm126_vm9  ;;  %v222_v22 = vld [vmem:[%s333_s2] ss:$0 sm:$0xff]  ;;  %vm135_vm1 = vweird.f32 %v298_v6 }
 0x10a   :  { %v102_v17 = vmul.f32 0.5, %v101_v13  ;;  %v160_v41 = vmul.f32 %v221_v24, %v151_v28 }
 0x10b   :  { %v143_v19 = vsub.f32 1.5, %v142_v14  ;;  %v122_v20 = vmul.f32 0.5, %v121_v15  ;;  %v158_v37 = vmul.f32 %v221_v24, %v149_v25 }
 0x10c   :  { %v103_v23 = vsub.f32 1.5, %v102_v17  ;;  %v169_v50 = vadd.f32 %v222_v22, %v160_v41 }
 0x10d   :  { %v123_v26 = vsub.f32 1.5, %v122_v20  ;;  %v236_v27 = vpop.eup %235  ;;  %v144_v30 = vmul.f32 %v294_v2, %v143_v19  ;;  %v167_v47 = vadd.f32 %v222_v22, %v158_v37 }
 0x10e   :  { %v104_v29 = vmul.f32 %v232_v4, %v103_v23  ;;  %v130_v35 = vmul.f32 %v236_v27, %v298_v6  ;;  %vm136_vm0 = vweird.f32 %v236_v27 }
 0x10f   :  { %v124_v34 = vmul.f32 %v234_v7, %v123_v26  ;;  %v148_v43 = vsel %vm147_vm15, %v294_v2, %v144_v30  ;;  %vm137_vm2 = vmor %vm135_vm1, %vm136_vm0 }
 0x110   :  { %v108_v36 = vsel %vm107_vm13, %v232_v4, %v104_v29  ;;  %v131_v40 = vmul.f32 %v236_v27, %v130_v35 }
 0x111   :  { %v150_v21 = vmul.f32 %v108_v36, %v279_v33  ;;  %v128_v39 = vsel %vm127_vm14, %v234_v7, %v124_v34  ;;  %v154_v33 = vmul.f32 %v148_v43, %v275_v31 }
 0x112   :  { %v152_v42 = vmul.f32 %v128_v39, %v277_v32  ;;  %v132_v45 = vmul.f32 0.5, %v131_v40 }
 0x113   :  { %v159_v44 = vmul.f32 %v221_v24, %v150_v21  ;;  %v163_v55 = vmul.f32 %v221_v24, %v154_v33 }
 0x114   :  { %v161_v46 = vmul.f32 %v221_v24, %v152_v42  ;;  %v133_v49 = vsub.f32 1.5, %v132_v45 }
 0x115   :  { %v168_v48 = vadd.f32 %v222_v22, %v159_v44  ;;  %v172_v57 = vadd.f32 %v222_v22, %v163_v55 }
 0x116   :  { %v170_v51 = vadd.f32 %v222_v22, %v161_v46  ;;  %v134_v54 = vmul.f32 %v236_v27, %v133_v49 }
 0x117   :  { %v204_v52 = vpack.c.bf16 %v168_v48, %v167_v47 }
 0x118   :  { %v209_v53 = vpack.c.bf16 %v170_v51, %v169_v50  ;;  %v138_v32 = vsel %vm137_vm2, %v236_v27, %v134_v54 }
 0x119   :  { %205 = vst [vmem:[%s334_s3] sm:$0xff] %v204_v52   ;;  %v153_v56 = vmul.f32 %v138_v32, %v287_v38 }
 0x11a   :  { %218 = vst [vmem:[%s334_s3 + $0x8] sm:$0xff] %v209_v53  }
 0x11b   :  { %v162_v31 = vmul.f32 %v221_v24, %v153_v56 }
 0x11d   :  { %v171_v58 = vadd.f32 %v222_v22, %v162_v31 }
 0x11f   :  { %v214_v59 = vpack.c.bf16 %v172_v57, %v171_v58 }
 0x121   :  { %219 = vst [vmem:[%s334_s3 + $0x10] sm:$0xff] %v214_v59  }

// kernel: vit_forward.15
= control target key start
LH: loop header
LB: loop body
LE: loop exit
PB: predicated region body
PF: predicated region fallthrough
CT: control target
= control target key end

     0   :  { %s1351_s24 = smov 0   ;;  %s1353_s25 = smov 0   ;;  %s1505_s0 = inlined_call_operand.vmem [shape: bf16[2,24,128], index: 0, kind: input, shape index: {}]   ;;  %s1506_s1 = inlined_call_operand.vmem [shape: bf16[4,3,128,32], index: 1, kind: input, shape index: {}]   ;;  %s1507_s2 = inlined_call_operand.vmem [shape: f32[4,3,1,32], index: 2, kind: input, shape index: {}]   ;;  %s1508_s3 = inlined_call_operand.vmem [shape: bf16[4,32,128], index: 3, kind: input, shape index: {}]   ;;  %s1509_s4 = inlined_call_operand.vmem [shape: f32[1,128], index: 4, kind: input, shape index: {}]   ;;  %s1510_s5 = inlined_call_operand.vmem [shape: f32[1,128], index: 5, kind: input, shape index: {}]   ;;  %s1511_s6 = inlined_call_operand.vmem [shape: f32[1,128], index: 6, kind: input, shape index: {}]   ;;  %s1512_s7 = inlined_call_operand.vmem [shape: bf16[2,24,128], index: 7, kind: output, shape index: {}]  }
   0x1   :  { %s1355_s26 = smov 0   ;;  %s1357_s27 = smov 0  }
   0x2   :  { %s1359_s28 = smov 0  }
   0x3 LB: > { %s26_s29 = sadd.s32 1, %s1299_s26  ;;  %s29_s30 = sadd.s32 1, %s1303_s27  ;;  %s1307_s28 = sphi %s1359_s28, %s17_s28   ;;  %s1303_s27 = sphi %s1357_s27, %s1518_s27   ;;  %s1299_s26 = sphi %s1355_s26, %s1517_s26   ;;  %s1295_s25 = sphi %s1353_s25, %s1516_s25   ;;  %s1291_s24 = sphi %s1351_s24, %s1515_s24  }
   0x4   : > { %p27_p0 = scmp.ge.s32.totalorder %s26_s29, 4  ;;  %p1005_p1 = scmp.ge.s32.totalorder %s1307_s28, 1 }
   0x5   : > { %p278_p2 = scmp.lt.s32.totalorder %s1307_s28, 9 }
   0x6   : > { %s1520_s29 = smov (%p27_p0, %s26_s29), 0  ;;  %s1522_s30 = smov (!%p27_p0, %s29_s30), %s1303_s27 }
   0x7   : > { %p279_p3 = pnand %p1005_p1, %p278_p2  ;;  %p31_p4 = scmp.ge.s32.totalorder %s1522_s30, 2 }
   0x8   : > { %p324_p5 = scmp.lt.s32.totalorder (!%p279_p3), %s1295_s25, 1  ;;  %p329_p6 = scmp.lt.s32.totalorder (!%p279_p3), %s1291_s24, 3 }
   0x9   : > { %s1524_s30 = smov (%p31_p4, %s1522_s30), 0  ;;  %282 = sbr.rel (%p279_p3) target bundleno = 1197 (0x4ad), region = 48 }
   0xa   : > { %1513 = sst [smem:[#allocation3_spill]] %s1524_s30  ;;  %p1011_p7 = scmp.ne.s32.totalorder (!%p279_p3), %s1291_s24, 0 }
   0xe   : > { %s1526_s25 = smov (!%p324_p5, %s1295_s25), 1 }
   0xf   : > { %s330_s8 = scalar_select %p329_p6, %s1291_s24, 3 }
  0x10   : > { %s1198_s9 = smul.u32 12, %s1526_s25 }
  0x11   : > { %s1199_s10 = smul.u32 192, %s330_s8  ;;  %s1163_s11 = sshll.u32 %s330_s8, 4 }
  0x12   : > { %s1388_s14 = scalar_lea.vmem %s1505_s0, %s1198_s9  ;;  %s1200_s15 = smul.u32 3, %s330_s8 }
  0x13   : > { %s1393_s18 = scalar_lea.vmem %s1506_s1, %s1199_s10  ;;  %s1398_s21 = scalar_lea.vmem %s1508_s3, %s1163_s11 }
  0x14   : > { %s1403_s25 = scalar_lea.vmem %s1507_s2, %s1200_s15  ;;  %s1408_s13 = scalar_lea.vmem %s1512_s7, %s1198_s9 }
  0x15   : > { %352 = sbr.rel (%p1011_p7) target bundleno = 30 (0x1e), region = 52 }
  0x1a   : > { %v1309_v0 = vmov 0.0  }
  0x1b   : > { %353 = vst [vmem:[#allocation2 + $0x10] sm:$0xff] %v1309_v0 }
  0x1c   : > { %354 = vst [vmem:[#allocation2] sm:$0xff] %v1309_v0 }
  0x1d   : > { %355 = vst [vmem:[#allocation2 + $0x8] sm:$0xff] %v1309_v0 }
  0x1e PF: > { %v1180_v1 = vld [vmem:[%s1393_s18 + $0x78] sm:$0xff]  ;;  %v1413_v2 = vld [vmem:[%s1388_s14] sm:$0xff]   ;;  %v1179_v4 = vld [vmem:[%s1393_s18 + $0x70] sm:$0xff]  ;;  %vm635_vm0 = vcmask 261120   ;;  %v669_v44 = vlaneseq  ;;  %vm675_vm2 = vcmask 195584   ;;  %vm719_vm3 = vcmask 1043456  }
  0x1f   : > { %v1172_v3 = vld [vmem:[%s1393_s18 + $0x38] sm:$0xff]  ;;  %525 = vmatpush.bf16.msra.mxu1 %v1180_v1  ;;  %v1171_v5 = vld [vmem:[%s1393_s18 + $0x30] sm:$0xff]  ;;  %v1178_v6 = vld [vmem:[%s1393_s18 + $0x68] sm:$0xff]  ;;  %p1160_p8 = scmp.ne.s32.totalorder %s1291_s24, 3 }
  0x20   : > { %437 = vmatpush.bf16.msra.mxu0 %v1172_v3  ;;  %v1170_v7 = vld [vmem:[%s1393_s18 + $0x28] sm:$0xff]  ;;  %v1177_v8 = vld [vmem:[%s1393_s18 + $0x60] sm:$0xff]  ;;  %v1176_v10 = vld [vmem:[%s1393_s18 + $0x58] sm:$0xff]  ;;  %v670_v47 = vand.u32 127, %v669_v44 }
  0x21   : > { %v1169_v9 = vld [vmem:[%s1393_s18 + $0x20] sm:$0xff]  ;;  %v1168_v11 = vld [vmem:[%s1393_s18 + $0x18] sm:$0xff]  ;;  %v1175_v12 = vld [vmem:[%s1393_s18 + $0x50] sm:$0xff] }
  0x22   : > { %v1167_v13 = vld [vmem:[%s1393_s18 + $0x10] sm:$0xff]  ;;  %v1174_v14 = vld [vmem:[%s1393_s18 + $0x48] sm:$0xff]  ;;  %v1173_v16 = vld [vmem:[%s1393_s18 + $0x40] sm:$0xff]  ;;  %vm671_vm1 = vcmp.lt.s32.totalorder %v670_v47, 17 }
  0x23   : > { %526 = vmatpush.bf16.msra.mxu1 %v1179_v4  ;;  %v1166_v15 = vld [vmem:[%s1393_s18 + $0x8] sm:$0xff]  ;;  %v1165_v17 = vld [vmem:[%s1393_s18] sm:$0xff]  ;;  %v1188_v45 = vld [vmem:[%s1393_s18 + $0xb8] sm:$0xff] }
  0x24   : > { %438 = vmatpush.bf16.msra.mxu0 %v1171_v5  ;;  %v1431_v18 = vld [vmem:[%s1388_s14] sm:$0xff]  ;;  %v1436_v19 = vld [vmem:[%s1388_s14 + $0x8] sm:$0xf]  ;;  %613 = vmatpush.bf16.msra.mxu2 %v1188_v45  ;;  %v1187_v46 = vld [vmem:[%s1393_s18 + $0xb0] sm:$0xff] }
  0x25   : > { %v384_v20 = vunpack.c.l.b16 %v1436_v19  ;;  %v1243_v26 = vld [vmem:[%s1403_s25 + $0x1] ss:$0 sm:$0xff]  ;;  %v1244_v37 = vld [vmem:[%s1403_s25] ss:$0 sm:$0xff]  ;;  %v1186_v48 = vld [vmem:[%s1393_s18 + $0xa8] sm:$0xff] }
  0x26   : > { %v1185_v51 = vld [vmem:[%s1393_s18 + $0xa0] sm:$0xff]  ;;  %v1184_v54 = vld [vmem:[%s1393_s18 + $0x98] sm:$0xff]  ;;  %v1183_v57 = vld [vmem:[%s1393_s18 + $0x90] sm:$0xff] }
  0x27   : > { %527 = vmatpush.bf16.msra.mxu1 %v1178_v6  ;;  %v1439_v21 = vpack.c.b16 %v384_v20, %v384_v20  ;;  %v1182_v60 = vld [vmem:[%s1393_s18 + $0x88] sm:$0xff]  ;;  %v1181_v63 = vld [vmem:[%s1393_s18 + $0x80] sm:$0xff] }
  0x28   : > { %439 = vmatpush.bf16.msra.mxu0 %v1170_v7  ;;  %614 = vmatpush.bf16.msra.mxu2 %v1187_v46 }
  0x2b   : > { %528 = vmatpush.bf16.msra.mxu1 %v1177_v8 }
  0x2c   : > { %440 = vmatpush.bf16.msra.mxu0 %v1169_v9  ;;  %615 = vmatpush.bf16.msra.mxu2 %v1186_v48 }
  0x2f   : > { %529 = vmatpush.bf16.msra.mxu1 %v1176_v10 }
  0x30   : > { %441 = vmatpush.bf16.msra.mxu0 %v1168_v11  ;;  %616 = vmatpush.bf16.msra.mxu2 %v1185_v51 }
  0x33   : > { %530 = vmatpush.bf16.msra.mxu1 %v1175_v12 }
  0x34   : > { %442 = vmatpush.bf16.msra.mxu0 %v1167_v13  ;;  %617 = vmatpush.bf16.msra.mxu2 %v1184_v54  ;;  %v743_v54 = vld [vmem:[#allocation2 + $0x8] sm:$0xff] }
  0x37   : > { %531 = vmatpush.bf16.msra.mxu1 %v1174_v14 }
  0x38   : > { %443 = vmatpush.bf16.msra.mxu0 %v1166_v15  ;;  %618 = vmatpush.bf16.msra.mxu2 %v1183_v57 }
  0x3b   : > { %532 = vmatpush.bf16.msra.mxu1 %v1173_v16 }
  0x3c   : > { %444 = vmatpush.bf16.msra.mxu0 %v1165_v17  ;;  %619 = vmatpush.bf16.msra.mxu2 %v1182_v60 }
  0x3e   : > { %533 = vmatmul.bf16.vlgmr.msra.gmra.mxu1 %v1431_v18 }
  0x3f   : > { %445 = vmatmul.bf16.vlgmr.msra.gmra.mxu0 %v1431_v18 }
  0x40   : > { %620 = vmatpush.bf16.msra.mxu2 %v1181_v63 }
  0x43   : > { %621 = vmatmul.bf16.vlgmr.msra.gmra.mxu2 %v1431_v18 }
  0x4e   : > { %538 = vmatmul.bf16.gmra.mxu1 %v1439_v21 }
  0x4f   : > { %450 = vmatmul.bf16.gmra.mxu0 %v1439_v21 }
  0x53   : > { %626 = vmatmul.bf16.gmra.mxu2 %v1439_v21 }
  0xbb   : > { %v534_v22 = vpop.f32.mrf.mxu1 }
  0xbc   : > { %v446_v23 = vpop.f32.mrf.mxu0  ;;  %v535_v33 = vadd.f32 %v1243_v26, %v534_v22  ;;  %v1245_v22 = vld [vmem:[%s1403_s25 + $0x2] ss:$0 sm:$0xff] }
  0xbd   : > { %v447_v39 = vadd.f32 %v1244_v37, %v446_v23 }
  0xc3   : > { %v536_v24 = vpop.f32.mrf.mxu1 }
  0xc4   : > { %v448_v25 = vpop.f32.mrf.mxu0  ;;  %v537_v31 = vadd.f32 %v1243_v26, %v536_v24 }
  0xc5   : > { %v449_v40 = vadd.f32 %v1244_v37, %v448_v25 }
  0xc6   : > { %v633_v35 = vpack.c.bf16 %v537_v31, %v535_v33  ;;  %v622_v20 = vpop.f32.mrf.mxu2 }
  0xc7   : > { %v631_v41 = vpack.c.bf16 %v449_v40, %v447_v39  ;;  %v623_v25 = vadd.f32 %v1245_v22, %v622_v20 }
  0xc8   : > { %v643_v38 = vsel %vm635_vm0, %v633_v35, 0 }
  0xcb   : > { %v539_v27 = vpop.f32.mrf.mxu1 }
  0xcc   : > { %v540_v28 = vadd.f32 %v1243_v26, %v539_v27  ;;  %v451_v29 = vpop.f32.mrf.mxu0 }
  0xcd   : > { %v452_v42 = vadd.f32 %v1244_v37, %v451_v29 }
  0xce   : > { %v634_v30 = vpack.c.bf16 %v540_v28, %v540_v28  ;;  %v624_v21 = vpop.f32.mrf.mxu2 }
  0xcf   : > { %v632_v43 = vpack.c.bf16 %v452_v42, %v452_v42  ;;  %v625_v26 = vadd.f32 %v1245_v22, %v624_v21 }
  0xd0   : > { %v646_v32 = vsel %vm635_vm0, %v634_v30, 0 }
  0xd1   : > { %654 = vmatpush.bf16.xpose.msra.mxu3 %v646_v32  ;;  %v711_v29 = vpack.c.bf16 %v625_v26, %v623_v25  ;;  %v1190_v32 = vld [vmem:[%s1398_s21 + $0x8] sm:$0xff] }
  0xd2   : > { %774 = vmatpush.bf16.msrb.mxu0 %v1190_v32  ;;  %1196 = vmatpush.bf16.msrb.mxu1 %v1190_v32 }
  0xd3   : > { %v541_v34 = vpop.f32.mrf.mxu1 }
  0xd4   : > { %v453_v36 = vpop.f32.mrf.mxu0 }
  0xd6   : > { %v627_v23 = vpop.f32.mrf.mxu2 }
  0xd7   : > { %v628_v24 = vadd.f32 %v1245_v22, %v627_v23 }
  0xd9   : > { %655 = vmatpush.bf16.xpose.msra.mxu3 %v643_v38  ;;  %v712_v27 = vpack.c.bf16 %v628_v24, %v628_v24 }
  0xdb   : > { %v721_v28 = vsel %vm719_vm3, %v712_v27, 0 }
  0xde   : > { %v629_v30 = vpop.f32.mrf.mxu2 }
  0xe0   : > { %1146 = vmatmul.msk.bf16.vlgmr.msra.gmra.mxu3 %vm635_vm0, %v631_v41 }
  0xe1   : > { %729 = vmatpush.bf16.msrb.mxu3 %v721_v28 }
  0xe5   : > { %730 = vmatpush.bf16.msrb.mxu3 %v711_v29 }
  0xf0   : > { %1147 = vmatmul.msk.bf16.gmra.mxu3 %vm635_vm0, %v632_v43  ;;  %v1189_v43 = vld [vmem:[%s1398_s21] sm:$0xff] }
  0xf1   : > { %775 = vmatpush.bf16.msrb.mxu0 %v1189_v43  ;;  %1197 = vmatpush.bf16.msrb.mxu1 %v1189_v43 }
 0x163   : > { %v657_v49 = vpop.f32.mrf.mxu3 }
 0x164   : > { %v666_v50 = vmul.f32 0.17677669, %v657_v49 }
 0x166   : > { %v672_v52 = vsel %vm671_vm1, %v666_v50, -1e+30  ;;  %v741_v50 = vld [vmem:[#allocation2 + $0x10] sm:$0xff] }
 0x167   : > { %v676_v53 = vsel %vm675_vm2, %v672_v52, -inf }
 0x168   : > { %677 = vmax.xlane.f32.xlu0 %v676_v53  ;;  %v742_v53 = vld [vmem:[#allocation2] sm:$0xff] }
 0x16b   : > { %v659_v55 = vpop.f32.mrf.mxu3 }
 0x16c   : > { %v667_v56 = vmul.f32 0.17677669, %v659_v55 }
 0x16e   : > { %v673_v58 = vsel %vm671_vm1, %v667_v56, -1e+30 }
 0x16f   : > { %v679_v59 = vsel %vm675_vm2, %v673_v58, -inf }
 0x170   : > { %680 = vmax.xlane.f32.xlu0 %v679_v59 }
 0x173   : > { %v662_v61 = vpop.f32.mrf.mxu3 }
 0x174   : > { %v668_v62 = vmul.f32 0.17677669, %v662_v61 }
 0x176   : > { %v674_v0 = vsel %vm671_vm1, %v668_v62, -1e+30 }
 0x177   : > { %v682_v1 = vsel %vm675_vm2, %v674_v0, -inf }
 0x178   : > { %683 = vmax.xlane.f32.xlu1 %v682_v1 }
 0x17b   : > { %v664_v3 = vpop.f32.mrf.mxu3 }
 0x1db   : > { %v678_v4 = vpop.xlane.xlu0 %677 }
 0x1dc   : > { %v685_v5 = vsub.f32 %v672_v52, %v678_v4 }
 0x1de   : > { %v688_v6 = vmul.f32 1.442695, %v685_v5 }
 0x1e0   : > { %1246 = vpow2.f32 %v688_v6 }
 0x1e3   : > { %v681_v7 = vpop.xlane.xlu0 %680 }
 0x1e4   : > { %v686_v8 = vsub.f32 %v673_v58, %v681_v7 }
 0x1e6   : > { %v1247_v9 = vpop.eup %1246  ;;  %v690_v10 = vmul.f32 1.442695, %v686_v8 }
 0x1e7   : > { %v694_v11 = vsel %vm675_vm2, %v1247_v9, 0.0 }
 0x1e8   : > { %1248 = vpow2.f32 %v690_v10  ;;  %695 = vadd.xlane.f32.xlu1 %v694_v11 }
 0x1eb   : > { %v684_v12 = vpop.xlane.xlu1 %683 }
 0x1ec   : > { %v687_v13 = vsub.f32 %v674_v0, %v684_v12 }
 0x1ee   : > { %v1249_v14 = vpop.eup %1248  ;;  %v692_v15 = vmul.f32 1.442695, %v687_v13 }
 0x1ef   : > { %v697_v16 = vsel %vm675_vm2, %v1249_v14, 0.0 }
 0x1f0   : > { %1250 = vpow2.f32 %v692_v15  ;;  %698 = vadd.xlane.f32.xlu2 %v697_v16 }
 0x1f6   : > { %v1251_v17 = vpop.eup %1250 }
 0x1f7   : > { %v700_v18 = vsel %vm675_vm2, %v1251_v17, 0.0 }
 0x1f8   : > { %701 = vadd.xlane.f32.xlu2 %v700_v18 }
 0x25b   : > { %v696_v31 = vpop.xlane.xlu1 %695 }
 0x25c   : > { %1252 = vrcp.f32 %v696_v31 }
 0x262   : > { %v1253_v34 = vpop.eup %1252 }
 0x263   : > { %v699_v33 = vpop.xlane.xlu2 %698  ;;  %v706_v36 = vmul.f32 %v1253_v34, %v1247_v9 }
 0x264   : > { %1254 = vrcp.f32 %v699_v33 }
 0x26a   : > { %v1255_v35 = vpop.eup %1254 }
 0x26b   : > { %v707_v37 = vmul.f32 %v1255_v35, %v1249_v14  ;;  %v702_v38 = vpop.xlane.xlu2 %701 }
 0x26c   : > { %1256 = vrcp.f32 %v702_v38 }
 0x26d   : > { %v709_v39 = vpack.c.bf16 %v707_v37, %v706_v36 }
 0x26f   : > { %1148 = vmatmul.msk.bf16.vlgmr.msrb.gmra.mxu3 %vm675_vm2, %v709_v39 }
 0x272   : > { %v1257_v40 = vpop.eup %1256 }
 0x273   : > { %v708_v41 = vmul.f32 %v1257_v40, %v1251_v17 }
 0x275   : > { %v710_v42 = vpack.c.bf16 %v708_v41, %v708_v41 }
 0x27f   : > { %1149 = vmatmul.msk.bf16.gmra.mxu3 %vm675_vm2, %v710_v42 }
 0x2f2   : > { %v732_v44 = vpop.f32.mrf.mxu3 }
 0x2fa   : > { %v734_v45 = vpop.f32.mrf.mxu3 }
 0x2fb   : > { %v744_v46 = vpack.c.bf16 %v734_v45, %v732_v44 }
 0x2fd   : > { %1158 = vmatmul.msk.bf16.vlgmr.msrb.gmra.mxu0 %vm635_vm0, %v744_v46 }
 0x302   : > { %v737_v47 = vpop.f32.mrf.mxu3 }
 0x303   : > { %v745_v48 = vpack.c.bf16 %v737_v47, %v737_v47 }
 0x305   : > { %1159 = vmatmul.msk.bf16.vlgmr.msrb.gmra.mxu1 %vm635_vm0, %v745_v48 }
 0x30a   : > { %v739_v49 = vpop.f32.mrf.mxu3 }
 0x37a   : > { %v777_v51 = vpop.f32.mrf.mxu0 }
 0x37b   : > { %v786_v52 = vadd.f32 %v777_v51, %v741_v50 }
 0x37d   : > { %789 = vst [vmem:[#allocation2 + $0x10] sm:$0xff] %v786_v52 }
 0x382   : > { %v779_v55 = vpop.f32.mrf.mxu0  ;;  %v782_v56 = vpop.f32.mrf.mxu1 }
 0x383   : > { %v787_v57 = vadd.f32 %v779_v55, %v742_v53  ;;  %v788_v58 = vadd.f32 %v782_v56, %v743_v54 }
 0x385   : > { %790 = vst [vmem:[#allocation2] sm:$0xff] %v787_v57 }
 0x386   : > { %791 = vst [vmem:[#allocation2 + $0x8] sm:$0xff] %v788_v58  ;;  %795 = sbr.rel (%p1160_p8) target bundleno = 1197 (0x4ad), region = 56 }
 0x38a   : > { %v784_v59 = vpop.f32.mrf.mxu1 }
 0x38b   : > { %v796_v60 = vld [vmem:[#allocation2 + $0x10] sm:$0xff]  ;;  %v1258_v61 = vld [vmem:[%s1509_s4] ss:$0 sm:$0xff]  ;;  %v806_v62 = vunpack.c.l.bf16 %v1413_v2  ;;  %v808_v63 = vunpack.c.l.bf16 %v1436_v19  ;;  %v807_v8 = vunpack.c.h.bf16 %v1413_v2  ;;  %v1310_v10 = vmov 128.0  }
 0x38c   : > { %v803_v1 = vadd.f32 %v1258_v61, %v796_v60  ;;  %v797_v4 = vld [vmem:[#allocation2] sm:$0xff]  ;;  %1261 = vrcp.f32 %v1310_v10 }
 0x38d   : > { %v798_v0 = vld [vmem:[#allocation2 + $0x8] sm:$0xff]  ;;  %v804_v7 = vadd.f32 %v1258_v61, %v797_v4  ;;  %v1259_v50 = vld [vmem:[%s1510_s5] ss:$0 sm:$0xff] }
 0x38e   : > { %v805_v3 = vadd.f32 %v1258_v61, %v798_v0  ;;  %v809_v5 = vadd.f32 %v806_v62, %v803_v1  ;;  %v1260_v56 = vld [vmem:[%s1511_s6] ss:$0 sm:$0xff] }
 0x38f   : > { %v810_v9 = vadd.f32 %v807_v8, %v804_v7 }
 0x390   : > { %v811_v6 = vadd.f32 %v808_v63, %v805_v3  ;;  %814 = vadd.xlane.f32.xlu0 %v809_v5 }
 0x392   : > { %818 = vadd.xlane.f32.xlu1 %v811_v6  ;;  %v1262_v11 = vpop.eup %1261 }
 0x393   : > { %v821_v12 = vmul.f32 128.0, %v1262_v11  ;;  %vm825_vm4 = vweird.f32 %v1262_v11 }
 0x395   : > { %v822_v13 = vsub.f32 1.0, %v821_v12 }
 0x397   : > { %v823_v14 = vmul.f32 %v1262_v11, %v822_v13 }
 0x398   : > { %816 = vadd.xlane.f32.xlu0 %v810_v9 }
 0x399   : > { %v824_v19 = vadd.f32 %v1262_v11, %v823_v14 }
 0x39b   : > { %v826_v15 = vsel %vm825_vm4, %v1262_v11, %v824_v19 }
 0x403   : > { %v815_v16 = vpop.xlane.xlu0 %814 }
 0x404   : > { %v827_v17 = vmul.f32 %v826_v15, %v815_v16 }
 0x405   : > { %v819_v22 = vpop.xlane.xlu1 %818 }
 0x406   : > { %v830_v18 = vsub.f32 %v809_v5, %v827_v17  ;;  %v829_v24 = vmul.f32 %v826_v15, %v819_v22 }
 0x408   : > { %v833_v20 = vmul.f32 %v830_v18, %v830_v18  ;;  %v832_v26 = vsub.f32 %v811_v6, %v829_v24 }
 0x40a   : > { %836 = vadd.xlane.f32.xlu1 %v833_v20  ;;  %v835_v27 = vmul.f32 %v832_v26, %v832_v26 }
 0x40b   : > { %v817_v21 = vpop.xlane.xlu0 %816 }
 0x40c   : > { %v828_v2 = vmul.f32 %v826_v15, %v817_v21 }
 0x40e   : > { %v831_v23 = vsub.f32 %v810_v9, %v828_v2 }
 0x410   : > { %v834_v25 = vmul.f32 %v831_v23, %v831_v23 }
 0x412   : > { %838 = vadd.xlane.f32.xlu2 %v834_v25 }
 0x41a   : > { %840 = vadd.xlane.f32.xlu2 %v835_v27 }
 0x47d   : > { %v837_v28 = vpop.xlane.xlu1 %836 }
 0x47e   : > { %v842_v29 = vmul.f32 %v837_v28, %v826_v15 }
 0x480   : > { %v845_v30 = vadd.f32 1e-05, %v842_v29 }
 0x482   : > { %1263 = vrsqrt.f32 %v845_v30  ;;  %vm854_vm6 = vweird.f32 %v845_v30 }
 0x485   : > { %v839_v31 = vpop.xlane.xlu2 %838 }
 0x486   : > { %v843_v32 = vmul.f32 %v839_v31, %v826_v15 }
 0x488   : > { %v1264_v33 = vpop.eup %1263  ;;  %v846_v34 = vadd.f32 1e-05, %v843_v32 }
 0x489   : > { %v849_v35 = vmul.f32 %v1264_v33, %v845_v30  ;;  %vm855_vm5 = vweird.f32 %v1264_v33 }
 0x48a   : > { %1265 = vrsqrt.f32 %v846_v34  ;;  %vm856_vm7 = vmor %vm854_vm6, %vm855_vm5  ;;  %vm864_vm9 = vweird.f32 %v846_v34 }
 0x48b   : > { %v850_v36 = vmul.f32 %v1264_v33, %v849_v35 }
 0x48d   : > { %v851_v37 = vmul.f32 0.5, %v850_v36  ;;  %v841_v38 = vpop.xlane.xlu2 %840 }
 0x48e   : > { %v844_v39 = vmul.f32 %v841_v38, %v826_v15 }
 0x48f   : > { %v852_v40 = vsub.f32 1.5, %v851_v37 }
 0x490   : > { %v1266_v41 = vpop.eup %1265  ;;  %v847_v42 = vadd.f32 1e-05, %v844_v39 }
 0x491   : > { %v853_v43 = vmul.f32 %v1264_v33, %v852_v40  ;;  %v859_v44 = vmul.f32 %v1266_v41, %v846_v34  ;;  %vm865_vm8 = vweird.f32 %v1266_v41 }
 0x492   : > { %1267 = vrsqrt.f32 %v847_v42  ;;  %vm866_vm10 = vmor %vm864_vm9, %vm865_vm8  ;;  %vm874_vm12 = vweird.f32 %v847_v42 }
 0x493   : > { %v860_v45 = vmul.f32 %v1266_v41, %v859_v44  ;;  %v857_v46 = vsel %vm856_vm7, %v1264_v33, %v853_v43 }
 0x494   : > { %v878_v51 = vmul.f32 %v857_v46, %v830_v18 }
 0x495   : > { %v861_v47 = vmul.f32 0.5, %v860_v45 }
 0x496   : > { %v884_v57 = vmul.f32 %v1259_v50, %v878_v51 }
 0x497   : > { %v862_v48 = vsub.f32 1.5, %v861_v47 }
 0x498   : > { %v1268_v49 = vpop.eup %1267  ;;  %v890_v62 = vadd.f32 %v1260_v56, %v884_v57 }
 0x499   : > { %v863_v52 = vmul.f32 %v1266_v41, %v862_v48  ;;  %v869_v53 = vmul.f32 %v1268_v49, %v847_v42  ;;  %vm875_vm11 = vweird.f32 %v1268_v49 }
 0x49a   : > { %vm876_vm13 = vmor %vm874_vm12, %vm875_vm11 }
 0x49b   : > { %v867_v54 = vsel %vm866_vm10, %v1266_v41, %v863_v52  ;;  %v870_v55 = vmul.f32 %v1268_v49, %v869_v53 }
 0x49c   : > { %v879_v58 = vmul.f32 %v867_v54, %v831_v23 }
 0x49d   : > { %v871_v59 = vmul.f32 0.5, %v870_v55 }
 0x49e   : > { %v885_v60 = vmul.f32 %v1259_v50, %v879_v58 }
 0x49f   : > { %v872_v61 = vsub.f32 1.5, %v871_v59 }
 0x4a0   : > { %v891_v63 = vadd.f32 %v1260_v56, %v885_v60 }
 0x4a1   : > { %v873_v0 = vmul.f32 %v1268_v49, %v872_v61 }
 0x4a2   : > { %v1194_v1 = vpack.c.bf16 %v891_v63, %v890_v62 }
 0x4a3   : > { %v877_v3 = vsel %vm876_vm13, %v1268_v49, %v873_v0 }
 0x4a4   : > { %1195 = vst [vmem:[%s1408_s13] sm:$0xff] %v1194_v1   ;;  %v880_v4 = vmul.f32 %v877_v3, %v832_v26 }
 0x4a6   : > { %v886_v5 = vmul.f32 %v1259_v50, %v880_v4 }
 0x4a8   : > { %v892_v6 = vadd.f32 %v1260_v56, %v886_v5 }
 0x4aa   : > { %v895_v7 = vpack.c.bf16 %v892_v6, %v892_v6 }
 0x4ac   : > { %898 = vst [vmem:[%s1408_s13 + $0x8] sm:$0xf] %v895_v7 }
 0x4ad PF: > { %s17_s28 = sadd.s32 1, %s1307_s28   ;;  %s1514_s14 = sld [smem:[#allocation3_spill]] }
 0x4ae   : > { %p14_p9 = scmp.ge.s32.totalorder %s17_s28, 10   ;;  %s1515_s24 = smov %s1299_s26 }
 0x4af   : > { %s1516_s25 = smov %s1303_s27  ;;  %s1517_s26 = smov %s1520_s29 }
 0x4b0   :  { %16 = sbr.rel (!%p14_p9) target bundleno = 3 (0x3), region = 99 }
 0x4b3   : > { %s1518_s27 = smov %s1514_s14 }

// kernel: vit_forward.16
= control target key start
LH: loop header
LB: loop body
LE: loop exit
PB: predicated region body
PF: predicated region fallthrough
CT: control target
= control target key end

     0   :  { %s1125_s1 = inlined_call_operand.vmem [shape: bf16[128,256], index: 1, kind: input, shape index: {}]   ;;  %s1126_s0 = inlined_call_operand.vmem [shape: bf16[48,128], index: 0, kind: input, shape index: {}]   ;;  %s1127_s3 = inlined_call_operand.vmem [shape: bf16[256,128], index: 3, kind: input, shape index: {}]   ;;  %s1128_s2 = inlined_call_operand.vmem [shape: f32[1,256], index: 2, kind: input, shape index: {}]   ;;  %s1129_s4 = inlined_call_operand.vmem [shape: f32[1,128], index: 4, kind: input, shape index: {}]   ;;  %s1130_s5 = inlined_call_operand.vmem [shape: f32[1,128], index: 5, kind: input, shape index: {}]   ;;  %s1131_s6 = inlined_call_operand.vmem [shape: f32[1,128], index: 6, kind: input, shape index: {}]   ;;  %s1132_s7 = inlined_call_operand.vmem [shape: bf16[48,128], index: 7, kind: output, shape index: {}]  }
   0x1   :  { %v692_v0 = vld [vmem:[%s1125_s1 + $0x70] sm:$0xf]  ;;  %v780_v1 = vld [vmem:[%s1125_s1 + $0x74] sm:$0xf0]  ;;  %v779_v2 = vld [vmem:[%s1125_s1 + $0x74] sm:$0xf] }
   0x2   :  { %v693_v3 = vor.u32 %v780_v1, %v692_v0  ;;  %v694_v4 = vld [vmem:[%s1125_s1 + $0x78] sm:$0xf0]  ;;  %v684_v5 = vld [vmem:[%s1125_s1 + $0x60] sm:$0xf]  ;;  %v778_v6 = vld [vmem:[%s1125_s1 + $0x64] sm:$0xf0] }
   0x3   :  { %v697_v7 = vor.u32 %v779_v2, %v694_v4  ;;  %v777_v8 = vld [vmem:[%s1125_s1 + $0x64] sm:$0xf]  ;;  %v686_v9 = vld [vmem:[%s1125_s1 + $0x68] sm:$0xf0]  ;;  %v685_v10 = vor.u32 %v778_v6, %v684_v5  ;;  %v676_v12 = vld [vmem:[%s1125_s1 + $0x50] sm:$0xf] }
   0x4   :  { %162 = vmatpush.bf16.msra.mxu0 %v693_v3  ;;  %v689_v11 = vor.u32 %v777_v8, %v686_v9  ;;  %v776_v13 = vld [vmem:[%s1125_s1 + $0x54] sm:$0xf0]  ;;  %v775_v14 = vld [vmem:[%s1125_s1 + $0x54] sm:$0xf]  ;;  %v678_v15 = vld [vmem:[%s1125_s1 + $0x58] sm:$0xf0] }
   0x5   :  { %186 = vmatpush.bf16.msra.mxu1 %v697_v7  ;;  %v677_v16 = vor.u32 %v776_v13, %v676_v12  ;;  %v681_v17 = vor.u32 %v775_v14, %v678_v15  ;;  %v668_v18 = vld [vmem:[%s1125_s1 + $0x40] sm:$0xf]  ;;  %v774_v19 = vld [vmem:[%s1125_s1 + $0x44] sm:$0xf0]  ;;  %v773_v20 = vld [vmem:[%s1125_s1 + $0x44] sm:$0xf] }
   0x6   :  { %v670_v21 = vld [vmem:[%s1125_s1 + $0x48] sm:$0xf0]  ;;  %v669_v22 = vor.u32 %v774_v19, %v668_v18  ;;  %v660_v24 = vld [vmem:[%s1125_s1 + $0x30] sm:$0xf]  ;;  %v772_v25 = vld [vmem:[%s1125_s1 + $0x34] sm:$0xf0] }
   0x7   :  { %v673_v23 = vor.u32 %v773_v20, %v670_v21  ;;  %v771_v26 = vld [vmem:[%s1125_s1 + $0x34] sm:$0xf]  ;;  %v662_v27 = vld [vmem:[%s1125_s1 + $0x38] sm:$0xf0]  ;;  %v661_v28 = vor.u32 %v772_v25, %v660_v24  ;;  %v652_v30 = vld [vmem:[%s1125_s1 + $0x20] sm:$0xf] }
   0x8   :  { %163 = vmatpush.bf16.msra.mxu0 %v685_v10  ;;  %v665_v29 = vor.u32 %v771_v26, %v662_v27  ;;  %v770_v31 = vld [vmem:[%s1125_s1 + $0x24] sm:$0xf0]  ;;  %v769_v32 = vld [vmem:[%s1125_s1 + $0x24] sm:$0xf]  ;;  %v654_v33 = vld [vmem:[%s1125_s1 + $0x28] sm:$0xf0] }
   0x9   :  { %187 = vmatpush.bf16.msra.mxu1 %v689_v11  ;;  %v653_v34 = vor.u32 %v770_v31, %v652_v30  ;;  %v657_v35 = vor.u32 %v769_v32, %v654_v33  ;;  %v644_v36 = vld [vmem:[%s1125_s1 + $0x10] sm:$0xf]  ;;  %v768_v37 = vld [vmem:[%s1125_s1 + $0x14] sm:$0xf0]  ;;  %v767_v38 = vld [vmem:[%s1125_s1 + $0x14] sm:$0xf] }
   0xa   :  { %v646_v39 = vld [vmem:[%s1125_s1 + $0x18] sm:$0xf0]  ;;  %v645_v40 = vor.u32 %v768_v37, %v644_v36  ;;  %v636_v42 = vld [vmem:[%s1125_s1] sm:$0xf]  ;;  %v766_v43 = vld [vmem:[%s1125_s1 + $0x4] sm:$0xf0] }
   0xb   :  { %v649_v41 = vor.u32 %v767_v38, %v646_v39  ;;  %v765_v44 = vld [vmem:[%s1125_s1 + $0x4] sm:$0xf]  ;;  %v638_v45 = vld [vmem:[%s1125_s1 + $0x8] sm:$0xf0]  ;;  %v637_v46 = vor.u32 %v766_v43, %v636_v42  ;;  %v788_v49 = vld [vmem:[%s1127_s3 + $0x38] sm:$0xff] }
   0xc   :  { %164 = vmatpush.bf16.msra.mxu0 %v677_v16  ;;  %v641_v47 = vor.u32 %v765_v44, %v638_v45  ;;  %v762_v48 = vld [vmem:[%s1126_s0] sm:$0xff]  ;;  %v796_v50 = vld [vmem:[%s1127_s3 + $0x78] sm:$0xff]  ;;  %362 = vmatpush.bf16.msra.mxu2 %v788_v49  ;;  %v787_v51 = vld [vmem:[%s1127_s3 + $0x30] sm:$0xff] }
   0xd   :  { %188 = vmatpush.bf16.msra.mxu1 %v681_v17  ;;  %386 = vmatpush.bf16.msra.mxu3 %v796_v50  ;;  %v795_v52 = vld [vmem:[%s1127_s3 + $0x70] sm:$0xff]  ;;  %v786_v53 = vld [vmem:[%s1127_s3 + $0x28] sm:$0xff]  ;;  %v785_v55 = vld [vmem:[%s1127_s3 + $0x20] sm:$0xff] }
   0xe   :  { %v794_v54 = vld [vmem:[%s1127_s3 + $0x68] sm:$0xff]  ;;  %v793_v56 = vld [vmem:[%s1127_s3 + $0x60] sm:$0xff]  ;;  %v764_v58 = vld [vmem:[%s1126_s0 + $0x10] sm:$0xff] }
   0xf   :  { %v763_v57 = vld [vmem:[%s1126_s0 + $0x8] sm:$0xff]  ;;  %v784_v59 = vld [vmem:[%s1127_s3 + $0x18] sm:$0xff]  ;;  %v783_v61 = vld [vmem:[%s1127_s3 + $0x10] sm:$0xff] }
  0x10   :  { %165 = vmatpush.bf16.msra.mxu0 %v669_v22  ;;  %363 = vmatpush.bf16.msra.mxu2 %v787_v51  ;;  %v792_v60 = vld [vmem:[%s1127_s3 + $0x58] sm:$0xff]  ;;  %v791_v62 = vld [vmem:[%s1127_s3 + $0x50] sm:$0xff]  ;;  %v782_v63 = vld [vmem:[%s1127_s3 + $0x8] sm:$0xff] }
  0x11   :  { %189 = vmatpush.bf16.msra.mxu1 %v673_v23  ;;  %387 = vmatpush.bf16.msra.mxu3 %v795_v52  ;;  %v790_v0 = vld [vmem:[%s1127_s3 + $0x48] sm:$0xff]  ;;  %v781_v1 = vld [vmem:[%s1127_s3] sm:$0xff] }
  0x12   :  { %v789_v2 = vld [vmem:[%s1127_s3 + $0x40] sm:$0xff] }
  0x13   :  { %v58_v3 = vld [vmem:[%s1128_s2] sm:$0x3] }
  0x14   :  { %166 = vmatpush.bf16.msra.mxu0 %v661_v28  ;;  %364 = vmatpush.bf16.msra.mxu2 %v786_v53  ;;  %v60_v6 = vperm.slane %v58_v3, 0  ;;  %v61_v7 = vperm.slane %v58_v3, 1  ;;  %v829_v50 = vld [vmem:[%s1129_s4] ss:$0 sm:$0xff] }
  0x15   :  { %190 = vmatpush.bf16.msra.mxu1 %v665_v29  ;;  %388 = vmatpush.bf16.msra.mxu3 %v794_v54 }
  0x18   :  { %167 = vmatpush.bf16.msra.mxu0 %v653_v34  ;;  %365 = vmatpush.bf16.msra.mxu2 %v785_v55 }
  0x19   :  { %191 = vmatpush.bf16.msra.mxu1 %v657_v35  ;;  %389 = vmatpush.bf16.msra.mxu3 %v793_v56 }
  0x1c   :  { %168 = vmatpush.bf16.msra.mxu0 %v645_v40  ;;  %366 = vmatpush.bf16.msra.mxu2 %v784_v59 }
  0x1d   :  { %192 = vmatpush.bf16.msra.mxu1 %v649_v41  ;;  %390 = vmatpush.bf16.msra.mxu3 %v792_v60 }
  0x20   :  { %169 = vmatpush.bf16.msra.mxu0 %v637_v46  ;;  %367 = vmatpush.bf16.msra.mxu2 %v783_v61 }
  0x21   :  { %193 = vmatpush.bf16.msra.mxu1 %v641_v47  ;;  %391 = vmatpush.bf16.msra.mxu3 %v791_v62  ;;  %v824_v62 = vld [vmem:[%s1126_s0 + $0x8] sm:$0xff]  }
  0x23   :  { %170 = vmatmul.bf16.vlgmr.msra.gmra.mxu0 %v762_v48 }
  0x24   :  { %194 = vmatmul.bf16.vlgmr.msra.gmra.mxu1 %v762_v48  ;;  %368 = vmatpush.bf16.msra.mxu2 %v782_v63  ;;  %v798_v48 = vld [vmem:[%s1126_s0] sm:$0xff]  }
  0x25   :  { %392 = vmatpush.bf16.msra.mxu3 %v790_v0  ;;  %v799_v53 = vunpack.c.l.bf16 %v798_v48  ;;  %v800_v59 = vunpack.c.h.bf16 %v798_v48 }
  0x28   :  { %369 = vmatpush.bf16.msra.mxu2 %v781_v1 }
  0x29   :  { %393 = vmatpush.bf16.msra.mxu3 %v789_v2  ;;  %v803_v2 = vunpack.c.l.bf16 %v824_v62 }
  0x33   :  { %175 = vmatmul.bf16.gmra.mxu0 %v763_v57 }
  0x34   :  { %199 = vmatmul.bf16.gmra.mxu1 %v763_v57 }
  0x43   :  { %180 = vmatmul.bf16.gmra.mxu0 %v764_v58 }
  0x44   :  { %204 = vmatmul.bf16.gmra.mxu1 %v764_v58 }
  0xa0   :  { %v171_v4 = vpop.f32.mrf.mxu0 }
  0xa1   :  { %v195_v5 = vpop.f32.mrf.mxu1  ;;  %v172_v8 = vadd.f32 %v171_v4, %v60_v6 }
  0xa2   :  { %v196_v9 = vadd.f32 %v195_v5, %v61_v7 }
  0xa3   :  { %v210_v14 = vmax.f32 %v172_v8, 0.0  ;;  %v804_v8 = vunpack.c.h.bf16 %v824_v62 }
  0xa4   :  { %v211_v16 = vmax.f32 %v196_v9, 0.0 }
  0xa8   :  { %v173_v10 = vpop.f32.mrf.mxu0 }
  0xa9   :  { %v174_v11 = vadd.f32 %v173_v10, %v60_v6  ;;  %v197_v12 = vpop.f32.mrf.mxu1 }
  0xaa   :  { %v198_v13 = vadd.f32 %v197_v12, %v61_v7 }
  0xab   :  { %v212_v15 = vmax.f32 %v174_v11, 0.0  ;;  %v825_v11 = vld [vmem:[%s1126_s0 + $0x10] sm:$0xff]  }
  0xac   :  { %v213_v17 = vmax.f32 %v198_v13, 0.0 }
  0xad   :  { %v228_v18 = vpack.c.bf16 %v212_v15, %v210_v14  ;;  %v807_v15 = vunpack.c.l.bf16 %v825_v11 }
  0xae   :  { %v229_v19 = vpack.c.bf16 %v213_v17, %v211_v16 }
  0xaf   :  { %370 = vmatmul.bf16.vlgmr.msra.gmra.mxu2 %v228_v18 }
  0xb0   :  { %394 = vmatmul.bf16.vlgmr.msra.gmra.mxu3 %v229_v19  ;;  %v176_v20 = vpop.f32.mrf.mxu0 }
  0xb1   :  { %v200_v21 = vpop.f32.mrf.mxu1  ;;  %v177_v22 = vadd.f32 %v176_v20, %v60_v6 }
  0xb2   :  { %v201_v23 = vadd.f32 %v200_v21, %v61_v7  ;;  %v808_v21 = vunpack.c.h.bf16 %v825_v11 }
  0xb3   :  { %v214_v28 = vmax.f32 %v177_v22, 0.0 }
  0xb4   :  { %v215_v30 = vmax.f32 %v201_v23, 0.0 }
  0xb8   :  { %v178_v24 = vpop.f32.mrf.mxu0 }
  0xb9   :  { %v179_v25 = vadd.f32 %v178_v24, %v60_v6  ;;  %v202_v26 = vpop.f32.mrf.mxu1  ;;  %v846_v24 = vmov 128.0  }
  0xba   :  { %v203_v27 = vadd.f32 %v202_v26, %v61_v7  ;;  %832 = vrcp.f32 %v846_v24 }
  0xbb   :  { %v216_v29 = vmax.f32 %v179_v25, 0.0 }
  0xbc   :  { %v217_v31 = vmax.f32 %v203_v27, 0.0 }
  0xbd   :  { %v230_v32 = vpack.c.bf16 %v216_v29, %v214_v28 }
  0xbe   :  { %v231_v33 = vpack.c.bf16 %v217_v31, %v215_v30 }
  0xbf   :  { %375 = vmatmul.bf16.gmra.mxu2 %v230_v32 }
  0xc0   :  { %399 = vmatmul.bf16.gmra.mxu3 %v231_v33  ;;  %v181_v34 = vpop.f32.mrf.mxu0  ;;  %v833_v25 = vpop.eup %832 }
  0xc1   :  { %v205_v35 = vpop.f32.mrf.mxu1  ;;  %v182_v36 = vadd.f32 %v181_v34, %v60_v6  ;;  %v474_v26 = vmul.f32 128.0, %v833_v25  ;;  %vm478_vm0 = vweird.f32 %v833_v25 }
  0xc2   :  { %v206_v37 = vadd.f32 %v205_v35, %v61_v7 }
  0xc3   :  { %v218_v42 = vmax.f32 %v182_v36, 0.0  ;;  %v475_v27 = vsub.f32 1.0, %v474_v26 }
  0xc4   :  { %v219_v44 = vmax.f32 %v206_v37, 0.0 }
  0xc5   :  { %v476_v28 = vmul.f32 %v833_v25, %v475_v27 }
  0xc7   :  { %v477_v29 = vadd.f32 %v833_v25, %v476_v28 }
  0xc8   :  { %v183_v38 = vpop.f32.mrf.mxu0 }
  0xc9   :  { %v184_v39 = vadd.f32 %v183_v38, %v60_v6  ;;  %v207_v40 = vpop.f32.mrf.mxu1  ;;  %v1055_v30 = vsel %vm478_vm0, %v833_v25, %v477_v29 }
  0xca   :  { %v208_v41 = vadd.f32 %v207_v40, %v61_v7 }
  0xcb   :  { %v220_v43 = vmax.f32 %v184_v39, 0.0 }
  0xcc   :  { %v221_v45 = vmax.f32 %v208_v41, 0.0 }
  0xcd   :  { %v232_v46 = vpack.c.bf16 %v220_v43, %v218_v42 }
  0xce   :  { %v233_v47 = vpack.c.bf16 %v221_v45, %v219_v44 }
  0xcf   :  { %380 = vmatmul.bf16.gmra.mxu2 %v232_v46 }
  0xd0   :  { %404 = vmatmul.bf16.gmra.mxu3 %v233_v47 }
 0x132   :  { %v371_v49 = vpop.f32.mrf.mxu2 }
 0x133   :  { %v395_v51 = vpop.f32.mrf.mxu3 }
 0x134   :  { %v396_v52 = vadd.f32 %v395_v51, %v371_v49 }
 0x136   :  { %v435_v54 = vadd.f32 %v829_v50, %v396_v52 }
 0x138   :  { %v453_v55 = vadd.f32 %v799_v53, %v435_v54 }
 0x13a   :  { %461 = vadd.xlane.f32.xlu0 %v453_v55  ;;  %v373_v56 = vpop.f32.mrf.mxu2 }
 0x13b   :  { %v397_v57 = vpop.f32.mrf.mxu3 }
 0x13c   :  { %v398_v58 = vadd.f32 %v397_v57, %v373_v56 }
 0x13e   :  { %v436_v60 = vadd.f32 %v829_v50, %v398_v58 }
 0x140   :  { %v454_v61 = vadd.f32 %v800_v59, %v436_v60 }
 0x142   :  { %463 = vadd.xlane.f32.xlu0 %v454_v61  ;;  %v376_v63 = vpop.f32.mrf.mxu2 }
 0x143   :  { %v400_v0 = vpop.f32.mrf.mxu3 }
 0x144   :  { %v401_v1 = vadd.f32 %v400_v0, %v376_v63 }
 0x146   :  { %v437_v3 = vadd.f32 %v829_v50, %v401_v1 }
 0x148   :  { %v455_v4 = vadd.f32 %v803_v2, %v437_v3 }
 0x14a   :  { %465 = vadd.xlane.f32.xlu1 %v455_v4  ;;  %v378_v5 = vpop.f32.mrf.mxu2 }
 0x14b   :  { %v402_v6 = vpop.f32.mrf.mxu3 }
 0x14c   :  { %v403_v7 = vadd.f32 %v402_v6, %v378_v5 }
 0x14e   :  { %v438_v9 = vadd.f32 %v829_v50, %v403_v7 }
 0x150   :  { %v456_v10 = vadd.f32 %v804_v8, %v438_v9 }
 0x152   :  { %467 = vadd.xlane.f32.xlu1 %v456_v10  ;;  %v381_v12 = vpop.f32.mrf.mxu2 }
 0x153   :  { %v405_v13 = vpop.f32.mrf.mxu3 }
 0x154   :  { %v406_v14 = vadd.f32 %v405_v13, %v381_v12 }
 0x156   :  { %v439_v16 = vadd.f32 %v829_v50, %v406_v14 }
 0x158   :  { %v457_v17 = vadd.f32 %v807_v15, %v439_v16  ;;  %v1090_v15 = vld [vmem:[%s1130_s5] ss:$0 sm:$0xff] }
 0x15a   :  { %469 = vadd.xlane.f32.xlu2 %v457_v17  ;;  %v383_v18 = vpop.f32.mrf.mxu2 }
 0x15b   :  { %v407_v19 = vpop.f32.mrf.mxu3 }
 0x15c   :  { %v408_v20 = vadd.f32 %v407_v19, %v383_v18 }
 0x15e   :  { %v440_v22 = vadd.f32 %v829_v50, %v408_v20 }
 0x160   :  { %v458_v23 = vadd.f32 %v808_v21, %v440_v22  ;;  %v1095_v22 = vld [vmem:[%s1131_s6] ss:$0 sm:$0xff] }
 0x162   :  { %471 = vadd.xlane.f32.xlu2 %v458_v23 }
 0x1ad   :  { %v462_v31 = vpop.xlane.xlu0 %461 }
 0x1ae   :  { %v480_v32 = vmul.f32 %v1055_v30, %v462_v31 }
 0x1b0   :  { %v486_v33 = vsub.f32 %v453_v55, %v480_v32 }
 0x1b2   :  { %v492_v34 = vmul.f32 %v486_v33, %v486_v33 }
 0x1b4   :  { %498 = vadd.xlane.f32.xlu0 %v492_v34 }
 0x1b5   :  { %v464_v35 = vpop.xlane.xlu0 %463 }
 0x1b6   :  { %v481_v36 = vmul.f32 %v1055_v30, %v464_v35 }
 0x1b8   :  { %v1059_v37 = vsub.f32 %v454_v61, %v481_v36 }
 0x1ba   :  { %v493_v38 = vmul.f32 %v1059_v37, %v1059_v37 }
 0x1bc   :  { %500 = vadd.xlane.f32.xlu1 %v493_v38 }
 0x1bd   :  { %v466_v39 = vpop.xlane.xlu1 %465 }
 0x1be   :  { %v482_v40 = vmul.f32 %v1055_v30, %v466_v39 }
 0x1c0   :  { %v1064_v41 = vsub.f32 %v455_v4, %v482_v40 }
 0x1c2   :  { %v494_v42 = vmul.f32 %v1064_v41, %v1064_v41 }
 0x1c4   :  { %502 = vadd.xlane.f32.xlu2 %v494_v42 }
 0x1c5   :  { %v468_v43 = vpop.xlane.xlu1 %467 }
 0x1c6   :  { %v483_v44 = vmul.f32 %v1055_v30, %v468_v43 }
 0x1c8   :  { %v1069_v45 = vsub.f32 %v456_v10, %v483_v44 }
 0x1ca   :  { %v495_v46 = vmul.f32 %v1069_v45, %v1069_v45 }
 0x1cc   :  { %504 = vadd.xlane.f32.xlu0 %v495_v46 }
 0x1cd   :  { %v470_v47 = vpop.xlane.xlu2 %469 }
 0x1ce   :  { %v484_v48 = vmul.f32 %v1055_v30, %v470_v47 }
 0x1d0   :  { %v1074_v49 = vsub.f32 %v457_v17, %v484_v48 }
 0x1d2   :  { %v496_v50 = vmul.f32 %v1074_v49, %v1074_v49 }
 0x1d4   :  { %506 = vadd.xlane.f32.xlu1 %v496_v50 }
 0x1d5   :  { %v472_v51 = vpop.xlane.xlu2 %471 }
 0x1d6   :  { %v485_v52 = vmul.f32 %v1055_v30, %v472_v51 }
 0x1d8   :  { %v1079_v53 = vsub.f32 %v458_v23, %v485_v52 }
 0x1da   :  { %v497_v54 = vmul.f32 %v1079_v53, %v1079_v53 }
 0x1dc   :  { %508 = vadd.xlane.f32.xlu2 %v497_v54 }
 0x227   :  { %v499_v55 = vpop.xlane.xlu0 %498 }
 0x228   :  { %v510_v56 = vmul.f32 %v499_v55, %v1055_v30 }
 0x22a   :  { %v516_v57 = vadd.f32 1e-05, %v510_v56 }
 0x22c   :  { %834 = vrsqrt.f32 %v516_v57  ;;  %vm528_vm2 = vweird.f32 %v516_v57 }
 0x22f   :  { %v501_v58 = vpop.xlane.xlu1 %500 }
 0x230   :  { %v511_v59 = vmul.f32 %v501_v58, %v1055_v30 }
 0x232   :  { %v835_v60 = vpop.eup %834  ;;  %v517_v61 = vadd.f32 1e-05, %v511_v59 }
 0x233   :  { %v523_v62 = vmul.f32 %v835_v60, %v516_v57  ;;  %vm529_vm1 = vweird.f32 %v835_v60 }
 0x234   :  { %836 = vrsqrt.f32 %v517_v61  ;;  %vm530_vm3 = vmor %vm528_vm2, %vm529_vm1  ;;  %vm538_vm5 = vweird.f32 %v517_v61 }
 0x235   :  { %v524_v63 = vmul.f32 %v835_v60, %v523_v62 }
 0x237   :  { %v525_v0 = vmul.f32 0.5, %v524_v63  ;;  %v503_v1 = vpop.xlane.xlu2 %502 }
 0x238   :  { %v512_v2 = vmul.f32 %v503_v1, %v1055_v30 }
 0x239   :  { %v526_v3 = vsub.f32 1.5, %v525_v0 }
 0x23a   :  { %v837_v4 = vpop.eup %836  ;;  %v518_v5 = vadd.f32 1e-05, %v512_v2 }
 0x23b   :  { %v527_v6 = vmul.f32 %v835_v60, %v526_v3  ;;  %v533_v7 = vmul.f32 %v837_v4, %v517_v61  ;;  %vm539_vm4 = vweird.f32 %v837_v4 }
 0x23c   :  { %838 = vrsqrt.f32 %v518_v5  ;;  %vm540_vm6 = vmor %vm538_vm5, %vm539_vm4  ;;  %vm548_vm8 = vweird.f32 %v518_v5 }
 0x23d   :  { %v534_v8 = vmul.f32 %v837_v4, %v533_v7  ;;  %v531_v9 = vsel %vm530_vm3, %v835_v60, %v527_v6 }
 0x23e   :  { %v582_v16 = vmul.f32 %v531_v9, %v486_v33 }
 0x23f   :  { %v535_v10 = vmul.f32 0.5, %v534_v8  ;;  %v505_v11 = vpop.xlane.xlu0 %504 }
 0x240   :  { %v513_v12 = vmul.f32 %v505_v11, %v1055_v30  ;;  %v591_v23 = vmul.f32 %v1090_v15, %v582_v16 }
 0x241   :  { %v536_v13 = vsub.f32 1.5, %v535_v10 }
 0x242   :  { %v839_v14 = vpop.eup %838  ;;  %v519_v17 = vadd.f32 1e-05, %v513_v12  ;;  %v600_v32 = vadd.f32 %v1095_v22, %v591_v23 }
 0x243   :  { %v537_v18 = vmul.f32 %v837_v4, %v536_v13  ;;  %v543_v19 = vmul.f32 %v839_v14, %v518_v5  ;;  %vm549_vm7 = vweird.f32 %v839_v14 }
 0x244   :  { %840 = vrsqrt.f32 %v519_v17  ;;  %vm550_vm9 = vmor %vm548_vm8, %vm549_vm7  ;;  %vm558_vm11 = vweird.f32 %v519_v17 }
 0x245   :  { %v541_v20 = vsel %vm540_vm6, %v837_v4, %v537_v18  ;;  %v544_v21 = vmul.f32 %v839_v14, %v543_v19 }
 0x246   :  { %v583_v24 = vmul.f32 %v541_v20, %v1059_v37 }
 0x247   :  { %v545_v25 = vmul.f32 0.5, %v544_v21  ;;  %v507_v26 = vpop.xlane.xlu1 %506 }
 0x248   :  { %v592_v27 = vmul.f32 %v1090_v15, %v583_v24  ;;  %v514_v28 = vmul.f32 %v507_v26, %v1055_v30 }
 0x249   :  { %v546_v29 = vsub.f32 1.5, %v545_v25 }
 0x24a   :  { %v841_v31 = vpop.eup %840  ;;  %v601_v33 = vadd.f32 %v1095_v22, %v592_v27  ;;  %v520_v34 = vadd.f32 1e-05, %v514_v28 }
 0x24b   :  { %v547_v35 = vmul.f32 %v839_v14, %v546_v29  ;;  %v553_v36 = vmul.f32 %v841_v31, %v519_v17  ;;  %vm559_vm10 = vweird.f32 %v841_v31 }
 0x24c   :  { %v812_v38 = vpack.c.bf16 %v601_v33, %v600_v32  ;;  %842 = vrsqrt.f32 %v520_v34  ;;  %vm560_vm12 = vmor %vm558_vm11, %vm559_vm10  ;;  %vm568_vm14 = vweird.f32 %v520_v34 }
 0x24d   :  { %v554_v37 = vmul.f32 %v841_v31, %v553_v36  ;;  %v551_v39 = vsel %vm550_vm9, %v839_v14, %v547_v35 }
 0x24e   :  { %813 = vst [vmem:[%s1132_s7] sm:$0xff] %v812_v38   ;;  %v584_v47 = vmul.f32 %v551_v39, %v1064_v41 }
 0x24f   :  { %v555_v40 = vmul.f32 0.5, %v554_v37  ;;  %v509_v42 = vpop.xlane.xlu2 %508 }
 0x250   :  { %v515_v43 = vmul.f32 %v509_v42, %v1055_v30  ;;  %v593_v55 = vmul.f32 %v1090_v15, %v584_v47 }
 0x251   :  { %v556_v44 = vsub.f32 1.5, %v555_v40 }
 0x252   :  { %v843_v46 = vpop.eup %842  ;;  %v521_v48 = vadd.f32 1e-05, %v515_v43  ;;  %v602_v60 = vadd.f32 %v1095_v22, %v593_v55 }
 0x253   :  { %v557_v50 = vmul.f32 %v841_v31, %v556_v44  ;;  %v563_v51 = vmul.f32 %v843_v46, %v520_v34  ;;  %vm569_vm13 = vweird.f32 %v843_v46 }
 0x254   :  { %844 = vrsqrt.f32 %v521_v48  ;;  %vm570_vm15 = vmor %vm568_vm14, %vm569_vm13  ;;  %vm578_vm1 = vweird.f32 %v521_v48 }
 0x255   :  { %v561_v52 = vsel %vm560_vm12, %v841_v31, %v557_v50  ;;  %v564_v54 = vmul.f32 %v843_v46, %v563_v51 }
 0x256   :  { %v585_v56 = vmul.f32 %v561_v52, %v1069_v45 }
 0x257   :  { %v565_v57 = vmul.f32 0.5, %v564_v54 }
 0x258   :  { %v594_v30 = vmul.f32 %v1090_v15, %v585_v56 }
 0x259   :  { %v566_v58 = vsub.f32 1.5, %v565_v57 }
 0x25a   :  { %v845_v59 = vpop.eup %844  ;;  %v603_v41 = vadd.f32 %v1095_v22, %v594_v30 }
 0x25b   :  { %v567_v61 = vmul.f32 %v843_v46, %v566_v58  ;;  %v573_v62 = vmul.f32 %v845_v59, %v521_v48  ;;  %vm579_vm0 = vweird.f32 %v845_v59 }
 0x25c   :  { %v817_v63 = vpack.c.bf16 %v603_v41, %v602_v60  ;;  %vm580_vm2 = vmor %vm578_vm1, %vm579_vm0 }
 0x25d   :  { %v574_v0 = vmul.f32 %v845_v59, %v573_v62  ;;  %v571_v45 = vsel %vm570_vm15, %v843_v46, %v567_v61 }
 0x25e   :  { %826 = vst [vmem:[%s1132_s7 + $0x8] sm:$0xff] %v817_v63   ;;  %v586_v3 = vmul.f32 %v571_v45, %v1074_v49 }
 0x25f   :  { %v575_v1 = vmul.f32 0.5, %v574_v0 }
 0x260   :  { %v595_v6 = vmul.f32 %v1090_v15, %v586_v3 }
 0x261   :  { %v576_v2 = vsub.f32 1.5, %v575_v1 }
 0x262   :  { %v604_v9 = vadd.f32 %v1095_v22, %v595_v6 }
 0x263   :  { %v577_v4 = vmul.f32 %v845_v59, %v576_v2 }
 0x265   :  { %v581_v5 = vsel %vm580_vm2, %v845_v59, %v577_v4 }
 0x266   :  { %v587_v7 = vmul.f32 %v581_v5, %v1079_v53 }
 0x268   :  { %v596_v8 = vmul.f32 %v1090_v15, %v587_v7 }
 0x26a   :  { %v605_v10 = vadd.f32 %v1095_v22, %v596_v8 }
 0x26c   :  { %v822_v11 = vpack.c.bf16 %v605_v10, %v604_v9 }
 0x26e   :  { %827 = vst [vmem:[%s1132_s7 + $0x10] sm:$0xff] %v822_v11  }

// kernel: vit_forward.27
= control target key start
LH: loop header
LB: loop body
LE: loop exit
PB: predicated region body
PF: predicated region fallthrough
CT: control target
= control target key end

     0   :  { %vm25_vm0 = vcmask 1041408   ;;  %s311_s0 = inlined_call_operand.vmem [shape: bf16[2,128], index: 0, kind: input, shape index: {}]   ;;  %s312_s1 = inlined_call_operand.vmem [shape: f32[1,128], index: 1, kind: input, shape index: {}]   ;;  %s313_s2 = inlined_call_operand.vmem [shape: f32[1,128], index: 2, kind: input, shape index: {}]   ;;  %s314_s3 = inlined_call_operand.vmem [shape: bf16[128,10], index: 3, kind: input, shape index: {}]   ;;  %s315_s4 = inlined_call_operand.vmem [shape: f32[1,10], index: 4, kind: input, shape index: {}]   ;;  %s316_s5 = inlined_call_operand.hbm [shape: f32[2,10], index: 5, kind: output, shape index: {}]  }
   0x1   :  { %v21_v0 = vld [vmem:[%s311_s0] sm:$0x1] }
   0x2   :  { %v22_v1 = vunpack.c.l.bf16 %v21_v0 }
   0x3   :  { %10 = vsyncpa [#allocation3], 0  ;;  %v238_v3 = vmov 128.0   ;;  %v202_v4 = vld [vmem:[%s314_s3 + $0x38] sm:$0xff]  ;;  %v201_v16 = vld [vmem:[%s314_s3 + $0x30] sm:$0xff]  ;;  %s239_s15 = smov [#allocation2]  }
   0x4   :  { %v26_v2 = vsel %vm25_vm0, %v22_v1, 0.0  ;;  %208 = vrcp.f32 %v238_v3  ;;  %132 = vmatpush.bf16.msra.mxu0 %v202_v4  ;;  %v200_v17 = vld [vmem:[%s314_s3 + $0x28] sm:$0xff]  ;;  %v199_v18 = vld [vmem:[%s314_s3 + $0x20] sm:$0xff]  ;;  %v198_v19 = vld [vmem:[%s314_s3 + $0x18] sm:$0xff]  ;;  %s152_s16 = sshll.u32 %s239_s15, 4  ;;  %vm145_vm5 = vcmask 74752   ;;  %s153_s16 = int_to_ptr.vmem [resolvable:$true] %s152_s16 }
   0x5   :  { %27 = vadd.xlane.f32.xlu0 %v26_v2  ;;  %v197_v20 = vld [vmem:[%s314_s3 + $0x10] sm:$0xff]  ;;  %v196_v21 = vld [vmem:[%s314_s3 + $0x8] sm:$0xff]  ;;  %v195_v22 = vld [vmem:[%s314_s3] sm:$0xff] }
   0x6   :  { %v205_v32 = vld [vmem:[%s312_s1] ss:$0 sm:$0xff]  ;;  %s154_s1 = sshll.u32 %s316_s5, 4  ;;  %s155_s1 = int_to_ptr.hbm [resolvable:$true] %s154_s1 }
   0x7   :  { %v206_v35 = vld [vmem:[%s313_s2] ss:$0 sm:$0xff] }
   0x8   :  { %133 = vmatpush.bf16.msra.mxu0 %v201_v16  ;;  %v207_v39 = vld [vmem:[%s315_s4] ss:$0 sm:$0xff] }
   0xa   :  { %v209_v5 = vpop.eup %208 }
   0xb   :  { %v30_v6 = vmul.f32 128.0, %v209_v5  ;;  %vm34_vm1 = vweird.f32 %v209_v5 }
   0xc   :  { %134 = vmatpush.bf16.msra.mxu0 %v200_v17 }
   0xd   :  { %v31_v7 = vsub.f32 1.0, %v30_v6 }
   0xf   :  { %v32_v8 = vmul.f32 %v209_v5, %v31_v7 }
  0x10   :  { %135 = vmatpush.bf16.msra.mxu0 %v199_v18 }
  0x11   :  { %v33_v9 = vadd.f32 %v209_v5, %v32_v8 }
  0x13   :  { %v35_v10 = vsel %vm34_vm1, %v209_v5, %v33_v9 }
  0x14   :  { %136 = vmatpush.bf16.msra.mxu0 %v198_v19 }
  0x18   :  { %137 = vmatpush.bf16.msra.mxu0 %v197_v20 }
  0x1c   :  { %138 = vmatpush.bf16.msra.mxu0 %v196_v21 }
  0x20   :  { %139 = vmatpush.bf16.msra.mxu0 %v195_v22 }
  0x78   :  { %v28_v11 = vpop.xlane.xlu0 %27 }
  0x79   :  { %v36_v12 = vmul.f32 %v35_v10, %v28_v11 }
  0x7b   :  { %v37_v13 = vsub.f32 %v22_v1, %v36_v12 }
  0x7d   :  { %v38_v14 = vmul.f32 %v37_v13, %v37_v13 }
  0x7f   :  { %v39_v15 = vsel %vm25_vm0, %v38_v14, 0.0 }
  0x80   :  { %40 = vadd.xlane.f32.xlu0 %v39_v15 }
  0xf3   :  { %v41_v23 = vpop.xlane.xlu0 %40 }
  0xf4   :  { %v42_v24 = vmul.f32 %v41_v23, %v35_v10 }
  0xf6   :  { %v43_v25 = vadd.f32 1e-05, %v42_v24 }
  0xf8   :  { %210 = vrsqrt.f32 %v43_v25  ;;  %vm50_vm3 = vweird.f32 %v43_v25 }
  0xfe   :  { %v211_v26 = vpop.eup %210 }
  0xff   :  { %v45_v27 = vmul.f32 %v211_v26, %v43_v25  ;;  %vm51_vm2 = vweird.f32 %v211_v26 }
 0x100   :  { %vm52_vm4 = vmor %vm50_vm3, %vm51_vm2 }
 0x101   :  { %v46_v28 = vmul.f32 %v211_v26, %v45_v27 }
 0x103   :  { %v47_v29 = vmul.f32 0.5, %v46_v28 }
 0x105   :  { %v48_v30 = vsub.f32 1.5, %v47_v29 }
 0x107   :  { %v49_v31 = vmul.f32 %v211_v26, %v48_v30 }
 0x109   :  { %v53_v33 = vsel %vm52_vm4, %v211_v26, %v49_v31 }
 0x10a   :  { %v54_v34 = vmul.f32 %v53_v33, %v37_v13 }
 0x10c   :  { %v58_v36 = vmul.f32 %v205_v32, %v54_v34 }
 0x10e   :  { %v62_v37 = vadd.f32 %v206_v35, %v58_v36 }
 0x110   :  { %v63_v38 = vpack.c.bf16 %v62_v37, %v62_v37 }
 0x112   :  { %140 = vmatmul.bf16.vlgmr.msra.gmra.mxu0 %v63_v38 }
 0x18f   :  { %v141_v40 = vpop.f32.mrf.mxu0 }
 0x190   :  { %v142_v41 = vadd.f32 %v207_v39, %v141_v40 }
 0x192   :  { %146 = vst.msk [vmem:[#allocation2] sm:$0x3] %vm145_vm5, %v142_v41 }
 0x193   :  { %157 = dma.vmem_to_hbm [thread:$0]  %s153_s16, 32, %s155_s1, [#allocation3]  }
 0x197   :  { %v143_v42 = vpop.f32.mrf.mxu0 }
 0x198   :  { %236 = dma.done.wait [#allocation3], 32  }
 0x199   :  { %237 = vsyncadd [#allocation3], 4294967264 }
 0x19a   :  { %162 = vsyncpa [#allocation3], 1 }

// kernel: vit_forward.21
= control target key start
LH: loop header
LB: loop body
LE: loop exit
PB: predicated region body
PF: predicated region fallthrough
CT: control target
= control target key end

     0   :  { %s1538_s13 = smov 0   ;;  %s1540_s14 = smov 0   ;;  %s1716_s0 = inlined_call_operand.vmem [shape: bf16[2,24,128], index: 0, kind: input, shape index: {}]   ;;  %s1717_s1 = inlined_call_operand.vmem [shape: bf16[2,24,128], index: 1, kind: input, shape index: {}]   ;;  %s1718_s2 = inlined_call_operand.vmem [shape: bf16[4,128,32], index: 2, kind: input, shape index: {}]   ;;  %s1719_s3 = inlined_call_operand.vmem [shape: f32[4,1,32], index: 3, kind: input, shape index: {}]   ;;  %s1720_s4 = inlined_call_operand.vmem [shape: bf16[4,2,128,32], index: 4, kind: input, shape index: {}]   ;;  %s1721_s5 = inlined_call_operand.vmem [shape: f32[4,2,1,32], index: 5, kind: input, shape index: {}]   ;;  %s1722_s6 = inlined_call_operand.vmem [shape: bf16[4,32,128], index: 6, kind: input, shape index: {}]   ;;  %s1723_s7 = inlined_call_operand.vmem [shape: f32[1,128], index: 7, kind: input, shape index: {}]   ;;  %s1724_s8 = inlined_call_operand.vmem [shape: f32[1,128], index: 8, kind: input, shape index: {}]   ;;  %s1725_s9 = inlined_call_operand.vmem [shape: f32[1,128], index: 9, kind: input, shape index: {}]   ;;  %s1726_s10 = inlined_call_operand.vmem [shape: bf16[2,24,128], index: 10, kind: output, shape index: {}]  }
   0x1   :  { %1729 = sst [smem:[#allocation7_spill]] %s1716_s0  ;;  %s1542_s15 = smov 0  }
   0x2   :  { %1730 = sst [smem:[#allocation8_spill]] %s1717_s1  ;;  %s1544_s16 = smov 0  }
   0x3   :  { %s1546_s17 = smov 0  }
   0x4 LB: > { %1731 = sst [smem:[#allocation3_spill]] %s1471_s15  ;;  %s29_s18 = sadd.s32 1, %s1471_s15  ;;  %s1479_s17 = sphi %s1546_s17, %s20_s17   ;;  %s1475_s16 = sphi %s1544_s16, %s1741_s16   ;;  %s1471_s15 = sphi %s1542_s15, %s1740_s15   ;;  %s1467_s14 = sphi %s1540_s14, %s1739_s14   ;;  %s1463_s13 = sphi %s1538_s13, %s1738_s13  }
   0x5   : > { %1732 = sst [smem:[#allocation4_spill]] %s1475_s16  ;;  %s32_s19 = sadd.s32 1, %s1475_s16 }
   0x6   : > { %p30_p0 = scmp.ge.s32.totalorder %s29_s18, 4  ;;  %p1184_p1 = scmp.ge.s32.totalorder %s1479_s17, 1 }
   0x7   : > { %p381_p2 = scmp.lt.s32.totalorder %s1479_s17, 9 }
   0x8   : > { %s1743_s18 = smov (%p30_p0, %s29_s18), 0  ;;  %s1745_s19 = smov (!%p30_p0, %s32_s19), %s1475_s16 }
   0x9   : > { %1733 = sst [smem:[#allocation5_spill]] %s1743_s18  ;;  %p382_p3 = pnand %p1184_p1, %p381_p2 }
   0xa   : > { %p34_p4 = scmp.ge.s32.totalorder %s1745_s19, 2  ;;  %p446_p5 = scmp.lt.s32.totalorder (!%p382_p3), %s1467_s14, 1 }
   0xb   : > { %385 = sbr.rel (%p382_p3) target bundleno = 1200 (0x4b0), region = 60  ;;  %p456_p6 = scmp.lt.s32.totalorder (!%p382_p3), %s1463_s13, 3 }
   0xc   : > { %s1747_s19 = smov (%p34_p4, %s1745_s19), 0  ;;  %s1735_s0 = sld [smem:[#allocation7_spill]] (!%p382_p3) }
   0xd   : > { %1734 = sst [smem:[#allocation6_spill]] %s1747_s19  ;;  %p1195_p7 = scmp.ne.s32.totalorder (!%p382_p3), %s1463_s13, 0 }
   0xe   : > { %s1736_s1 = sld [smem:[#allocation8_spill]] (!%p382_p3) }
  0x10   : > { %s1749_s14 = smov (!%p446_p5, %s1467_s14), 1 }
  0x11   : > { %s1572_s20 = scalar_select %p456_p6, %s1463_s13, 3 }
  0x12   : > { %s1372_s21 = smul.u32 12, %s1749_s14 }
  0x13   : > { %s1334_s22 = sshll.u32 %s1572_s20, 6  ;;  %s1335_s14 = sshll.u32 %s1572_s20, 7 }
  0x14   : > { %s1582_s28 = scalar_lea.vmem %s1735_s0, %s1372_s21  ;;  %s1587_s11 = scalar_lea.vmem %s1736_s1, %s1372_s21 }
  0x15   : > { %s1592_s18 = scalar_lea.vmem %s1718_s2, %s1334_s22  ;;  %s1598_s23 = scalar_lea.vmem %s1720_s4, %s1335_s14 }
  0x16   : > { %s1191_s24 = sshll.u32 %s1572_s20, 1  ;;  %s1336_s29 = sshll.u32 %s1572_s20, 4 }
  0x17   : > { %s1604_s25 = scalar_lea.vmem %s1721_s5, %s1191_s24  ;;  %s1610_s1 = scalar_lea.vmem %s1722_s6, %s1336_s29 }
  0x18   : > { %s1615_s12 = scalar_lea.vmem %s1726_s10, %s1372_s21  ;;  %487 = sbr.rel (%p1195_p7) target bundleno = 33 (0x21), region = 64 }
  0x1d   : > { %v1481_v0 = vmov 0.0  }
  0x1e   : > { %488 = vst [vmem:[#allocation2 + $0x10] sm:$0xff] %v1481_v0 }
  0x1f   : > { %489 = vst [vmem:[#allocation2] sm:$0xff] %v1481_v0 }
  0x20   : > { %490 = vst [vmem:[#allocation2 + $0x8] sm:$0xff] %v1481_v0 }
  0x21 PF: > { %v1354_v1 = vld [vmem:[%s1598_s23 + $0x38] sm:$0xff]  ;;  %v1620_v2 = vld [vmem:[%s1582_s28] sm:$0xff]   ;;  %v1353_v4 = vld [vmem:[%s1598_s23 + $0x30] sm:$0xff]  ;;  %vm781_vm0 = vcmask 261120   ;;  %s1737_s16 = scalar_lea.vmem %s1719_s3, %s1572_s20  ;;  %v815_v48 = vlaneseq  ;;  %vm821_vm2 = vcmask 195584   ;;  %vm865_vm3 = vcmask 1043456  }
  0x22   : > { %v1346_v3 = vld [vmem:[%s1592_s18 + $0x38] sm:$0xff]  ;;  %671 = vmatpush.bf16.msra.mxu1 %v1354_v1  ;;  %v1345_v5 = vld [vmem:[%s1592_s18 + $0x30] sm:$0xff]  ;;  %v1352_v6 = vld [vmem:[%s1598_s23 + $0x28] sm:$0xff]  ;;  %p1331_p8 = scmp.ne.s32.totalorder %s1463_s13, 3 }
  0x23   : > { %575 = vmatpush.bf16.msra.mxu0 %v1346_v3  ;;  %v1344_v7 = vld [vmem:[%s1592_s18 + $0x28] sm:$0xff]  ;;  %v1351_v8 = vld [vmem:[%s1598_s23 + $0x20] sm:$0xff]  ;;  %v1350_v10 = vld [vmem:[%s1598_s23 + $0x18] sm:$0xff]  ;;  %v816_v51 = vand.u32 127, %v815_v48 }
  0x24   : > { %v1343_v9 = vld [vmem:[%s1592_s18 + $0x20] sm:$0xff]  ;;  %v1342_v11 = vld [vmem:[%s1592_s18 + $0x18] sm:$0xff]  ;;  %v1349_v12 = vld [vmem:[%s1598_s23 + $0x10] sm:$0xff] }
  0x25   : > { %v1341_v13 = vld [vmem:[%s1592_s18 + $0x10] sm:$0xff]  ;;  %v1348_v14 = vld [vmem:[%s1598_s23 + $0x8] sm:$0xff]  ;;  %v1347_v16 = vld [vmem:[%s1598_s23] sm:$0xff]  ;;  %vm817_vm1 = vcmp.lt.s32.totalorder %v816_v51, 17 }
  0x26   : > { %672 = vmatpush.bf16.msra.mxu1 %v1353_v4  ;;  %v1340_v15 = vld [vmem:[%s1592_s18 + $0x8] sm:$0xff]  ;;  %v1339_v17 = vld [vmem:[%s1592_s18] sm:$0xff]  ;;  %v1362_v49 = vld [vmem:[%s1598_s23 + $0x78] sm:$0xff] }
  0x27   : > { %576 = vmatpush.bf16.msra.mxu0 %v1345_v5  ;;  %v1638_v18 = vld [vmem:[%s1587_s11] sm:$0xff]  ;;  %v496_v20 = vld [vmem:[%s1587_s11 + $0x8] sm:$0xf]  ;;  %759 = vmatpush.bf16.msra.mxu2 %v1362_v49  ;;  %v1361_v50 = vld [vmem:[%s1598_s23 + $0x70] sm:$0xff] }
  0x28   : > { %v1337_v19 = vld [vmem:[%s1582_s28] sm:$0xff]  ;;  %v1644_v21 = vld [vmem:[%s1582_s28 + $0x8] sm:$0xf]  ;;  %v618_v22 = vunpack.c.l.b16 %v496_v20  ;;  %v1358_v58 = vld [vmem:[%s1598_s23 + $0x58] sm:$0xff] }
  0x29   : > { %v522_v23 = vunpack.c.l.b16 %v1644_v21  ;;  %v1415_v30 = vld [vmem:[%s1604_s25] ss:$0 sm:$0xff]  ;;  %v1360_v52 = vld [vmem:[%s1598_s23 + $0x68] sm:$0xff]  ;;  %v1357_v61 = vld [vmem:[%s1598_s23 + $0x50] sm:$0xff] }
  0x2a   : > { %673 = vmatpush.bf16.msra.mxu1 %v1352_v6  ;;  %v1647_v24 = vpack.c.b16 %v618_v22, %v618_v22  ;;  %v1416_v41 = vld [vmem:[%s1737_s16] ss:$0 sm:$0xff]  ;;  %v1356_v0 = vld [vmem:[%s1598_s23 + $0x48] sm:$0xff] }
  0x2b   : > { %577 = vmatpush.bf16.msra.mxu0 %v1344_v7  ;;  %v524_v25 = vpack.c.b16 %v522_v23, %v522_v23  ;;  %760 = vmatpush.bf16.msra.mxu2 %v1361_v50  ;;  %v1359_v55 = vld [vmem:[%s1598_s23 + $0x60] sm:$0xff] }
  0x2c   : > { %v1355_v4 = vld [vmem:[%s1598_s23 + $0x40] sm:$0xff] }
  0x2e   : > { %674 = vmatpush.bf16.msra.mxu1 %v1351_v8 }
  0x2f   : > { %578 = vmatpush.bf16.msra.mxu0 %v1343_v9  ;;  %761 = vmatpush.bf16.msra.mxu2 %v1360_v52 }
  0x32   : > { %675 = vmatpush.bf16.msra.mxu1 %v1350_v10 }
  0x33   : > { %579 = vmatpush.bf16.msra.mxu0 %v1342_v11  ;;  %762 = vmatpush.bf16.msra.mxu2 %v1359_v55 }
  0x36   : > { %676 = vmatpush.bf16.msra.mxu1 %v1349_v12 }
  0x37   : > { %580 = vmatpush.bf16.msra.mxu0 %v1341_v13  ;;  %763 = vmatpush.bf16.msra.mxu2 %v1358_v58  ;;  %v889_v58 = vld [vmem:[#allocation2 + $0x8] sm:$0xff] }
  0x3a   : > { %677 = vmatpush.bf16.msra.mxu1 %v1348_v14 }
  0x3b   : > { %581 = vmatpush.bf16.msra.mxu0 %v1340_v15  ;;  %764 = vmatpush.bf16.msra.mxu2 %v1357_v61 }
  0x3e   : > { %678 = vmatpush.bf16.msra.mxu1 %v1347_v16 }
  0x3f   : > { %582 = vmatpush.bf16.msra.mxu0 %v1339_v17  ;;  %765 = vmatpush.bf16.msra.mxu2 %v1356_v0 }
  0x41   : > { %679 = vmatmul.bf16.vlgmr.msra.gmra.mxu1 %v1638_v18 }
  0x42   : > { %583 = vmatmul.bf16.vlgmr.msra.gmra.mxu0 %v1337_v19 }
  0x43   : > { %766 = vmatpush.bf16.msra.mxu2 %v1355_v4 }
  0x46   : > { %767 = vmatmul.bf16.vlgmr.msra.gmra.mxu2 %v1638_v18 }
  0x51   : > { %684 = vmatmul.bf16.gmra.mxu1 %v1647_v24 }
  0x52   : > { %588 = vmatmul.bf16.gmra.mxu0 %v524_v25 }
  0x56   : > { %772 = vmatmul.bf16.gmra.mxu2 %v1647_v24 }
  0xbe   : > { %v680_v26 = vpop.f32.mrf.mxu1 }
  0xbf   : > { %v584_v27 = vpop.f32.mrf.mxu0  ;;  %v681_v37 = vadd.f32 %v1415_v30, %v680_v26  ;;  %v1417_v26 = vld [vmem:[%s1604_s25 + $0x1] ss:$0 sm:$0xff] }
  0xc0   : > { %v585_v43 = vadd.f32 %v1416_v41, %v584_v27 }
  0xc6   : > { %v682_v28 = vpop.f32.mrf.mxu1 }
  0xc7   : > { %v586_v29 = vpop.f32.mrf.mxu0  ;;  %v683_v35 = vadd.f32 %v1415_v30, %v682_v28 }
  0xc8   : > { %v587_v44 = vadd.f32 %v1416_v41, %v586_v29 }
  0xc9   : > { %v779_v39 = vpack.c.bf16 %v683_v35, %v681_v37  ;;  %v768_v24 = vpop.f32.mrf.mxu2 }
  0xca   : > { %v777_v45 = vpack.c.bf16 %v587_v44, %v585_v43  ;;  %v769_v29 = vadd.f32 %v1417_v26, %v768_v24 }
  0xcb   : > { %v789_v42 = vsel %vm781_vm0, %v779_v39, 0 }
  0xce   : > { %v685_v31 = vpop.f32.mrf.mxu1 }
  0xcf   : > { %v686_v32 = vadd.f32 %v1415_v30, %v685_v31  ;;  %v589_v33 = vpop.f32.mrf.mxu0 }
  0xd0   : > { %v590_v46 = vadd.f32 %v1416_v41, %v589_v33 }
  0xd1   : > { %v780_v34 = vpack.c.bf16 %v686_v32, %v686_v32  ;;  %v770_v25 = vpop.f32.mrf.mxu2 }
  0xd2   : > { %v778_v47 = vpack.c.bf16 %v590_v46, %v590_v46  ;;  %v771_v30 = vadd.f32 %v1417_v26, %v770_v25 }
  0xd3   : > { %v792_v36 = vsel %vm781_vm0, %v780_v34, 0 }
  0xd4   : > { %800 = vmatpush.bf16.xpose.msra.mxu3 %v792_v36  ;;  %v857_v33 = vpack.c.bf16 %v771_v30, %v769_v29  ;;  %v1364_v36 = vld [vmem:[%s1610_s1 + $0x8] sm:$0xff] }
  0xd5   : > { %920 = vmatpush.bf16.msrb.mxu0 %v1364_v36  ;;  %1370 = vmatpush.bf16.msrb.mxu1 %v1364_v36 }
  0xd6   : > { %v687_v38 = vpop.f32.mrf.mxu1 }
  0xd7   : > { %v591_v40 = vpop.f32.mrf.mxu0 }
  0xd9   : > { %v773_v27 = vpop.f32.mrf.mxu2 }
  0xda   : > { %v774_v28 = vadd.f32 %v1417_v26, %v773_v27 }
  0xdc   : > { %801 = vmatpush.bf16.xpose.msra.mxu3 %v789_v42  ;;  %v858_v31 = vpack.c.bf16 %v774_v28, %v774_v28 }
  0xde   : > { %v867_v32 = vsel %vm865_vm3, %v858_v31, 0 }
  0xe1   : > { %v775_v34 = vpop.f32.mrf.mxu2 }
  0xe3   : > { %1317 = vmatmul.msk.bf16.vlgmr.msra.gmra.mxu3 %vm781_vm0, %v777_v45 }
  0xe4   : > { %875 = vmatpush.bf16.msrb.mxu3 %v867_v32 }
  0xe8   : > { %876 = vmatpush.bf16.msrb.mxu3 %v857_v33 }
  0xf3   : > { %1318 = vmatmul.msk.bf16.gmra.mxu3 %vm781_vm0, %v778_v47  ;;  %v1363_v47 = vld [vmem:[%s1610_s1] sm:$0xff] }
  0xf4   : > { %921 = vmatpush.bf16.msrb.mxu0 %v1363_v47  ;;  %1371 = vmatpush.bf16.msrb.mxu1 %v1363_v47 }
 0x166   : > { %v803_v53 = vpop.f32.mrf.mxu3 }
 0x167   : > { %v812_v54 = vmul.f32 0.17677669, %v803_v53 }
 0x169   : > { %v818_v56 = vsel %vm817_vm1, %v812_v54, -1e+30  ;;  %v887_v54 = vld [vmem:[#allocation2 + $0x10] sm:$0xff] }
 0x16a   : > { %v822_v57 = vsel %vm821_vm2, %v818_v56, -inf }
 0x16b   : > { %823 = vmax.xlane.f32.xlu0 %v822_v57  ;;  %v888_v57 = vld [vmem:[#allocation2] sm:$0xff] }
 0x16e   : > { %v805_v59 = vpop.f32.mrf.mxu3 }
 0x16f   : > { %v813_v60 = vmul.f32 0.17677669, %v805_v59 }
 0x171   : > { %v819_v62 = vsel %vm817_vm1, %v813_v60, -1e+30 }
 0x172   : > { %v825_v63 = vsel %vm821_vm2, %v819_v62, -inf }
 0x173   : > { %826 = vmax.xlane.f32.xlu0 %v825_v63 }
 0x176   : > { %v808_v1 = vpop.f32.mrf.mxu3 }
 0x177   : > { %v814_v3 = vmul.f32 0.17677669, %v808_v1 }
 0x179   : > { %v820_v5 = vsel %vm817_vm1, %v814_v3, -1e+30 }
 0x17a   : > { %v828_v6 = vsel %vm821_vm2, %v820_v5, -inf }
 0x17b   : > { %829 = vmax.xlane.f32.xlu1 %v828_v6 }
 0x17e   : > { %v810_v7 = vpop.f32.mrf.mxu3 }
 0x1de   : > { %v824_v8 = vpop.xlane.xlu0 %823 }
 0x1df   : > { %v831_v9 = vsub.f32 %v818_v56, %v824_v8 }
 0x1e1   : > { %v834_v10 = vmul.f32 1.442695, %v831_v9 }
 0x1e3   : > { %1418 = vpow2.f32 %v834_v10 }
 0x1e6   : > { %v827_v11 = vpop.xlane.xlu0 %826 }
 0x1e7   : > { %v832_v12 = vsub.f32 %v819_v62, %v827_v11 }
 0x1e9   : > { %v1419_v13 = vpop.eup %1418  ;;  %v836_v14 = vmul.f32 1.442695, %v832_v12 }
 0x1ea   : > { %v840_v15 = vsel %vm821_vm2, %v1419_v13, 0.0 }
 0x1eb   : > { %1420 = vpow2.f32 %v836_v14  ;;  %841 = vadd.xlane.f32.xlu1 %v840_v15 }
 0x1ee   : > { %v830_v16 = vpop.xlane.xlu1 %829 }
 0x1ef   : > { %v833_v17 = vsub.f32 %v820_v5, %v830_v16 }
 0x1f1   : > { %v1421_v19 = vpop.eup %1420  ;;  %v838_v20 = vmul.f32 1.442695, %v833_v17 }
 0x1f2   : > { %v843_v18 = vsel %vm821_vm2, %v1421_v19, 0.0 }
 0x1f3   : > { %1422 = vpow2.f32 %v838_v20  ;;  %844 = vadd.xlane.f32.xlu2 %v843_v18 }
 0x1f9   : > { %v1423_v22 = vpop.eup %1422 }
 0x1fa   : > { %v846_v23 = vsel %vm821_vm2, %v1423_v22, 0.0 }
 0x1fb   : > { %847 = vadd.xlane.f32.xlu2 %v846_v23 }
 0x25e   : > { %v842_v35 = vpop.xlane.xlu1 %841 }
 0x25f   : > { %1424 = vrcp.f32 %v842_v35 }
 0x265   : > { %v1425_v38 = vpop.eup %1424 }
 0x266   : > { %v845_v37 = vpop.xlane.xlu2 %844  ;;  %v852_v40 = vmul.f32 %v1425_v38, %v1419_v13 }
 0x267   : > { %1426 = vrcp.f32 %v845_v37 }
 0x26d   : > { %v1427_v39 = vpop.eup %1426 }
 0x26e   : > { %v853_v41 = vmul.f32 %v1427_v39, %v1421_v19  ;;  %v848_v42 = vpop.xlane.xlu2 %847 }
 0x26f   : > { %1428 = vrcp.f32 %v848_v42 }
 0x270   : > { %v855_v43 = vpack.c.bf16 %v853_v41, %v852_v40 }
 0x272   : > { %1319 = vmatmul.msk.bf16.vlgmr.msrb.gmra.mxu3 %vm821_vm2, %v855_v43 }
 0x275   : > { %v1429_v44 = vpop.eup %1428 }
 0x276   : > { %v854_v45 = vmul.f32 %v1429_v44, %v1423_v22 }
 0x278   : > { %v856_v46 = vpack.c.bf16 %v854_v45, %v854_v45 }
 0x282   : > { %1320 = vmatmul.msk.bf16.gmra.mxu3 %vm821_vm2, %v856_v46 }
 0x2f5   : > { %v878_v48 = vpop.f32.mrf.mxu3 }
 0x2fd   : > { %v880_v49 = vpop.f32.mrf.mxu3 }
 0x2fe   : > { %v890_v50 = vpack.c.bf16 %v880_v49, %v878_v48 }
 0x300   : > { %1329 = vmatmul.msk.bf16.vlgmr.msrb.gmra.mxu0 %vm781_vm0, %v890_v50 }
 0x305   : > { %v883_v51 = vpop.f32.mrf.mxu3 }
 0x306   : > { %v891_v52 = vpack.c.bf16 %v883_v51, %v883_v51 }
 0x308   : > { %1330 = vmatmul.msk.bf16.vlgmr.msrb.gmra.mxu1 %vm781_vm0, %v891_v52 }
 0x30d   : > { %v885_v53 = vpop.f32.mrf.mxu3 }
 0x37d   : > { %v923_v55 = vpop.f32.mrf.mxu0 }
 0x37e   : > { %v932_v56 = vadd.f32 %v923_v55, %v887_v54 }
 0x380   : > { %935 = vst [vmem:[#allocation2 + $0x10] sm:$0xff] %v932_v56 }
 0x385   : > { %v925_v59 = vpop.f32.mrf.mxu0  ;;  %v928_v60 = vpop.f32.mrf.mxu1 }
 0x386   : > { %v933_v61 = vadd.f32 %v925_v59, %v888_v57  ;;  %v934_v62 = vadd.f32 %v928_v60, %v889_v58 }
 0x388   : > { %936 = vst [vmem:[#allocation2] sm:$0xff] %v933_v61 }
 0x389   : > { %937 = vst [vmem:[#allocation2 + $0x8] sm:$0xff] %v934_v62  ;;  %941 = sbr.rel (%p1331_p8) target bundleno = 1200 (0x4b0), region = 68 }
 0x38d   : > { %v930_v63 = vpop.f32.mrf.mxu1 }
 0x38e   : > { %v942_v0 = vld [vmem:[#allocation2 + $0x10] sm:$0xff]  ;;  %v1430_v1 = vld [vmem:[%s1723_s7] ss:$0 sm:$0xff]  ;;  %v952_v3 = vunpack.c.l.bf16 %v1620_v2  ;;  %v954_v4 = vunpack.c.l.bf16 %v1644_v21  ;;  %v953_v12 = vunpack.c.h.bf16 %v1620_v2  ;;  %v1482_v14 = vmov 128.0  }
 0x38f   : > { %v949_v6 = vadd.f32 %v1430_v1, %v942_v0  ;;  %v943_v8 = vld [vmem:[#allocation2] sm:$0xff]  ;;  %1433 = vrcp.f32 %v1482_v14 }
 0x390   : > { %v944_v5 = vld [vmem:[#allocation2 + $0x8] sm:$0xff]  ;;  %v950_v11 = vadd.f32 %v1430_v1, %v943_v8  ;;  %v1431_v54 = vld [vmem:[%s1724_s8] ss:$0 sm:$0xff] }
 0x391   : > { %v951_v7 = vadd.f32 %v1430_v1, %v944_v5  ;;  %v955_v9 = vadd.f32 %v952_v3, %v949_v6  ;;  %v1432_v60 = vld [vmem:[%s1725_s9] ss:$0 sm:$0xff] }
 0x392   : > { %v956_v13 = vadd.f32 %v953_v12, %v950_v11 }
 0x393   : > { %v957_v10 = vadd.f32 %v954_v4, %v951_v7  ;;  %960 = vadd.xlane.f32.xlu0 %v955_v9 }
 0x395   : > { %964 = vadd.xlane.f32.xlu1 %v957_v10  ;;  %v1434_v15 = vpop.eup %1433 }
 0x396   : > { %v967_v16 = vmul.f32 128.0, %v1434_v15  ;;  %vm971_vm4 = vweird.f32 %v1434_v15 }
 0x398   : > { %v968_v17 = vsub.f32 1.0, %v967_v16 }
 0x39a   : > { %v969_v19 = vmul.f32 %v1434_v15, %v968_v17 }
 0x39b   : > { %962 = vadd.xlane.f32.xlu0 %v956_v13 }
 0x39c   : > { %v970_v21 = vadd.f32 %v1434_v15, %v969_v19 }
 0x39e   : > { %v972_v20 = vsel %vm971_vm4, %v1434_v15, %v970_v21 }
 0x406   : > { %v961_v18 = vpop.xlane.xlu0 %960 }
 0x407   : > { %v973_v22 = vmul.f32 %v972_v20, %v961_v18 }
 0x408   : > { %v965_v26 = vpop.xlane.xlu1 %964 }
 0x409   : > { %v976_v23 = vsub.f32 %v955_v9, %v973_v22  ;;  %v975_v28 = vmul.f32 %v972_v20, %v965_v26 }
 0x40b   : > { %v979_v24 = vmul.f32 %v976_v23, %v976_v23  ;;  %v978_v30 = vsub.f32 %v957_v10, %v975_v28 }
 0x40d   : > { %982 = vadd.xlane.f32.xlu1 %v979_v24  ;;  %v981_v31 = vmul.f32 %v978_v30, %v978_v30 }
 0x40e   : > { %v963_v25 = vpop.xlane.xlu0 %962 }
 0x40f   : > { %v974_v2 = vmul.f32 %v972_v20, %v963_v25 }
 0x411   : > { %v977_v27 = vsub.f32 %v956_v13, %v974_v2 }
 0x413   : > { %v980_v29 = vmul.f32 %v977_v27, %v977_v27 }
 0x415   : > { %984 = vadd.xlane.f32.xlu2 %v980_v29 }
 0x41d   : > { %986 = vadd.xlane.f32.xlu2 %v981_v31 }
 0x480   : > { %v983_v32 = vpop.xlane.xlu1 %982 }
 0x481   : > { %v988_v33 = vmul.f32 %v983_v32, %v972_v20 }
 0x483   : > { %v991_v34 = vadd.f32 1e-05, %v988_v33 }
 0x485   : > { %1435 = vrsqrt.f32 %v991_v34  ;;  %vm1000_vm6 = vweird.f32 %v991_v34 }
 0x488   : > { %v985_v35 = vpop.xlane.xlu2 %984 }
 0x489   : > { %v989_v36 = vmul.f32 %v985_v35, %v972_v20 }
 0x48b   : > { %v1436_v37 = vpop.eup %1435  ;;  %v992_v38 = vadd.f32 1e-05, %v989_v36 }
 0x48c   : > { %v995_v39 = vmul.f32 %v1436_v37, %v991_v34  ;;  %vm1001_vm5 = vweird.f32 %v1436_v37 }
 0x48d   : > { %1437 = vrsqrt.f32 %v992_v38  ;;  %vm1002_vm7 = vmor %vm1000_vm6, %vm1001_vm5  ;;  %vm1010_vm9 = vweird.f32 %v992_v38 }
 0x48e   : > { %v996_v40 = vmul.f32 %v1436_v37, %v995_v39 }
 0x490   : > { %v997_v41 = vmul.f32 0.5, %v996_v40  ;;  %v987_v42 = vpop.xlane.xlu2 %986 }
 0x491   : > { %v990_v43 = vmul.f32 %v987_v42, %v972_v20 }
 0x492   : > { %v998_v44 = vsub.f32 1.5, %v997_v41 }
 0x493   : > { %v1438_v45 = vpop.eup %1437  ;;  %v993_v46 = vadd.f32 1e-05, %v990_v43 }
 0x494   : > { %v999_v47 = vmul.f32 %v1436_v37, %v998_v44  ;;  %v1005_v48 = vmul.f32 %v1438_v45, %v992_v38  ;;  %vm1011_vm8 = vweird.f32 %v1438_v45 }
 0x495   : > { %1439 = vrsqrt.f32 %v993_v46  ;;  %vm1012_vm10 = vmor %vm1010_vm9, %vm1011_vm8  ;;  %vm1020_vm12 = vweird.f32 %v993_v46 }
 0x496   : > { %v1006_v49 = vmul.f32 %v1438_v45, %v1005_v48  ;;  %v1003_v50 = vsel %vm1002_vm7, %v1436_v37, %v999_v47 }
 0x497   : > { %v1024_v55 = vmul.f32 %v1003_v50, %v976_v23 }
 0x498   : > { %v1007_v51 = vmul.f32 0.5, %v1006_v49 }
 0x499   : > { %v1030_v61 = vmul.f32 %v1431_v54, %v1024_v55 }
 0x49a   : > { %v1008_v52 = vsub.f32 1.5, %v1007_v51 }
 0x49b   : > { %v1440_v53 = vpop.eup %1439  ;;  %v1036_v3 = vadd.f32 %v1432_v60, %v1030_v61 }
 0x49c   : > { %v1009_v56 = vmul.f32 %v1438_v45, %v1008_v52  ;;  %v1015_v57 = vmul.f32 %v1440_v53, %v993_v46  ;;  %vm1021_vm11 = vweird.f32 %v1440_v53 }
 0x49d   : > { %vm1022_vm13 = vmor %vm1020_vm12, %vm1021_vm11 }
 0x49e   : > { %v1013_v58 = vsel %vm1012_vm10, %v1438_v45, %v1009_v56  ;;  %v1016_v59 = vmul.f32 %v1440_v53, %v1015_v57 }
 0x49f   : > { %v1025_v62 = vmul.f32 %v1013_v58, %v977_v27 }
 0x4a0   : > { %v1017_v63 = vmul.f32 0.5, %v1016_v59 }
 0x4a1   : > { %v1031_v0 = vmul.f32 %v1431_v54, %v1025_v62 }
 0x4a2   : > { %v1018_v1 = vsub.f32 1.5, %v1017_v63 }
 0x4a3   : > { %v1037_v4 = vadd.f32 %v1432_v60, %v1031_v0 }
 0x4a4   : > { %v1019_v5 = vmul.f32 %v1440_v53, %v1018_v1 }
 0x4a5   : > { %v1368_v6 = vpack.c.bf16 %v1037_v4, %v1036_v3 }
 0x4a6   : > { %v1023_v7 = vsel %vm1022_vm13, %v1440_v53, %v1019_v5 }
 0x4a7   : > { %1369 = vst [vmem:[%s1615_s12] sm:$0xff] %v1368_v6   ;;  %v1026_v8 = vmul.f32 %v1023_v7, %v978_v30 }
 0x4a9   : > { %v1032_v9 = vmul.f32 %v1431_v54, %v1026_v8 }
 0x4ab   : > { %v1038_v10 = vadd.f32 %v1432_v60, %v1032_v9 }
 0x4ad   : > { %v1041_v11 = vpack.c.bf16 %v1038_v10, %v1038_v10 }
 0x4af   : > { %1044 = vst [vmem:[%s1615_s12 + $0x8] sm:$0xf] %v1041_v11 }
 0x4b0 PF: > { %s20_s17 = sadd.s32 1, %s1479_s17   ;;  %s1738_s13 = sld [smem:[#allocation3_spill]] }
 0x4b1   : > { %p17_p9 = scmp.ge.s32.totalorder %s20_s17, 10   ;;  %s1739_s14 = sld [smem:[#allocation4_spill]] }
 0x4b2   : > { %s1740_s15 = sld [smem:[#allocation5_spill]] }
 0x4b3   : > { %s1741_s16 = sld [smem:[#allocation6_spill]]  ;;  %19 = sbr.rel (!%p17_p9) target bundleno = 4 (0x4), region = 118 }

</bundles_post_ra>
